<compile_context>
chip_gen: v5e
topology: v5e:2x2
jax: 0.10.0
libtpu: 0.0.40
codegen_flags: <defaults>
</compile_context>

<pallas_src>
import functools
import math

import jax
import jax.numpy as jnp
from jax.experimental import pallas as pl
from jax.experimental.pallas import tpu as pltpu

_PAD = 8  # sublane-aligned offset of the ReLU(x) rows inside the padded scratch


def _residual_block_kernel(x_ref, B1_ref, b1_ref, B2_ref, b2_ref, o_ref, rx_ref):
    """Fused ResidualBlock for one image, all in lane-dense (H, W*C) layout.

    x_ref  : (1, H, W*C)        unpadded input image (channels minor)
    B1_ref : (3, W*C, W*C)      banded 3x3-conv weights, one matrix per row-tap
    b1_ref : (1, W*C)           conv1 bias tiled along W
    B2_ref : (W*C, W*C)         block-diagonal 1x1-conv weights
    b2_ref : (1, W*C)           conv2 bias tiled along W
    o_ref  : (1, H, W*C)
    rx_ref : VMEM scratch (2*_PAD + H, W*C); rows [_PAD, _PAD+H) hold relu(x),
             rows _PAD-1 and _PAD+H are the zero halo for the H-padding.
    """
    _, H, WC = x_ref.shape

    x = x_ref[0]                                          # (H, W*C) lane-dense
    rx_ref[...] = jnp.zeros_like(rx_ref)                  # zero halo rows (cheap)
    rx_ref[pl.ds(_PAD, H), :] = jnp.maximum(x, 0.0)       # aligned store, ReLU once

    # conv1 (3x3, pad 1): three row-tap matmuls, K = W*C = 512, acc in f32.
    acc = jnp.dot(rx_ref[pl.ds(_PAD - 1, H), :], B1_ref[0],
                  preferred_element_type=jnp.float32)
    acc = acc + jnp.dot(rx_ref[pl.ds(_PAD, H), :], B1_ref[1],
                        preferred_element_type=jnp.float32)
    acc = acc + jnp.dot(rx_ref[pl.ds(_PAD + 1, H), :], B1_ref[2],
                        preferred_element_type=jnp.float32)
    h = jnp.maximum(acc + b1_ref[...], 0.0)

    # conv2 (1x1) + bias + residual add, fused; single lane-dense HBM writeback.
    out = jnp.dot(h, B2_ref[...], preferred_element_type=jnp.float32)
    out = out + b2_ref[...] + x
    o_ref[...] = out[None]


def _build_banded_weights(w1, w2, c, w):
    """Fold the 3x3 taps / W-boundary padding and the 1x1 conv into lane-dense
    (W*C, W*C) matmul weights for the (H, W*C) activation layout."""
    wc = w * c
    # w1 is OIHW -> taps[di, dj, cin, cout]
    taps = jnp.transpose(w1, (2, 3, 1, 0)).astype(jnp.float32)        # (3,3,C,C)
    jj = jnp.arange(w)[:, None]                                       # input col
    j = jnp.arange(w)[None, :]                                        # output col
    off = jj - j + 1                                                  # = dj
    valid = ((off >= 0) & (off < 3)).astype(jnp.float32)              # W-boundary pad
    offc = jnp.clip(off, 0, 2)
    # B1[di, jj, j, cin, cout] = w1[cout, cin, di, jj-j+1] (0 outside the band)
    B1 = taps[:, offc] * valid[None, :, :, None, None]                # (3,W,W,C,C)
    B1 = jnp.transpose(B1, (0, 1, 3, 2, 4)).reshape(3, wc, wc)

    w2m = jnp.transpose(w2[:, :, 0, 0]).astype(jnp.float32)           # (Cin, Cout)
    B2 = (jnp.eye(w, dtype=jnp.float32)[:, None, :, None]
          * w2m[None, :, None, :]).reshape(wc, wc)                    # block-diag
    return B1, B2


def residual_block_forward(w1, b1, w2, b2, x_nchw):
    """x_nchw: (N, C, H, W) float32 -> (N, C, H, W); matches the PyTorch module."""
    n, c, h, w = x_nchw.shape
    wc = w * c

    # NCHW -> lane-dense (N, H, W*C); reshape of contiguous minor dims is free.
    x = jnp.transpose(x_nchw, (0, 2, 3, 1)).astype(jnp.float32).reshape(n, h, wc)

    B1, B2 = _build_banded_weights(w1, w2, c, w)
    b1d = jnp.tile(b1.astype(jnp.float32), w)[None, :]                # (1, W*C)
    b2d = jnp.tile(b2.astype(jnp.float32), w)[None, :]                # (1, W*C)

    out = pl.pallas_call(
        _residual_block_kernel,
        out_shape=jax.ShapeDtypeStruct((n, h, wc), jnp.float32),
        grid=(n,),
        in_specs=[
            pl.BlockSpec((1, h, wc), lambda i: (i, 0, 0)),
            pl.BlockSpec((3, wc, wc), lambda i: (0, 0, 0)),
            pl.BlockSpec((1, wc), lambda i: (0, 0)),
            pl.BlockSpec((wc, wc), lambda i: (0, 0)),
            pl.BlockSpec((1, wc), lambda i: (0, 0)),
        ],
        out_specs=pl.BlockSpec((1, h, wc), lambda i: (i, 0, 0)),
        scratch_shapes=[pltpu.VMEM((2 * _PAD + h, wc), jnp.float32)],
        compiler_params=pltpu.CompilerParams(
            dimension_semantics=("parallel",),       # v7x: images split over 2 TCs
            vmem_limit_bytes=32 * 1024 * 1024),
    )(x, B1, b1d, B2, b2d)

    # Lane-dense (N, H, W*C) -> NHWC -> NCHW for the PyTorch-facing interface.
    return jnp.transpose(out.reshape(n, h, w, c), (0, 3, 1, 2))


def _reference_residual_block(x, w1, b1, w2, b2):
    """Independent XLA reference (NCHW convs) used only for the self-check."""
    dn = ("NCHW", "OIHW", "NCHW")
    t = jnp.maximum(x, 0.0)
    t = jax.lax.conv_general_dilated(t, w1, (1, 1), ((1, 1), (1, 1)),
                                     dimension_numbers=dn,
                                     precision=jax.lax.Precision.HIGHEST)
    t = t + b1[None, :, None, None]
    t = jnp.maximum(t, 0.0)
    t = jax.lax.conv_general_dilated(t, w2, (1, 1), ((0, 0), (0, 0)),
                                     dimension_numbers=dn,
                                     precision=jax.lax.Precision.HIGHEST)
    t = t + b2[None, :, None, None]
    return x + t


if __name__ == "__main__":
    N, DIM, H, W = 2, 32, 16, 16

    key = jax.random.PRNGKey(0)
    k1, k2, k3, k4, kx = jax.random.split(key, 5)

    # PyTorch-style uniform fan-in init.
    bound1 = 1.0 / math.sqrt(DIM * 3 * 3)
    w1 = jax.random.uniform(k1, (DIM, DIM, 3, 3), jnp.float32, -bound1, bound1)
    b1 = jax.random.uniform(k2, (DIM,), jnp.float32, -bound1, bound1)
    bound2 = 1.0 / math.sqrt(DIM)
    w2 = jax.random.uniform(k3, (DIM, DIM, 1, 1), jnp.float32, -bound2, bound2)
    b2 = jax.random.uniform(k4, (DIM,), jnp.float32, -bound2, bound2)

    x = jax.random.normal(kx, (N, DIM, H, W), jnp.float32)   # NCHW, like PyTorch

    fwd = jax.jit(functools.partial(residual_block_forward, w1, b1, w2, b2))
    out = fwd(x)
    jax.block_until_ready(out)

    assert out.shape == (N, DIM, H, W)
    ref = _reference_residual_block(x, w1, b1, w2, b2)
    err = float(jnp.max(jnp.abs(out - ref)))
    assert err < 1e-3, f"max abs error vs reference: {err}"
    print("KERNEL_OK")
</pallas_src>

<mosaic_0001>
module attributes {stable_mosaic.version = 11 : i64} {
  func.func @_residual_block_kernel(%arg0: i32, %arg1: memref<1x16x512xf32, #tpu.memory_space<vmem>>, %arg2: memref<3x512x512xf32, #tpu.memory_space<vmem>>, %arg3: memref<1x512xf32, #tpu.memory_space<vmem>>, %arg4: memref<512x512xf32, #tpu.memory_space<vmem>>, %arg5: memref<1x512xf32, #tpu.memory_space<vmem>>, %arg6: memref<1x16x512xf32, #tpu.memory_space<vmem>>, %arg7: memref<32x512xf32, #tpu.memory_space<vmem>>) attributes {dimension_semantics = [#tpu.dimension_semantics<parallel>], iteration_bounds = array<i64: 2>, scalar_prefetch = 0 : i64, scratch_operands = 1 : i64, tpu.core_type = #tpu.core_type<tc>, window_params = [{transform_indices = @transform_0, window_bounds = array<i64: 1, 16, 512>}, {pipeline_mode = #tpu.pipeline_mode<synchronous>, transform_indices = @transform_1, window_bounds = array<i64: 3, 512, 512>}, {pipeline_mode = #tpu.pipeline_mode<synchronous>, transform_indices = @transform_2, window_bounds = array<i64: 1, 512>}, {pipeline_mode = #tpu.pipeline_mode<synchronous>, transform_indices = @transform_3, window_bounds = array<i64: 512, 512>}, {pipeline_mode = #tpu.pipeline_mode<synchronous>, transform_indices = @transform_4, window_bounds = array<i64: 1, 512>}, {transform_indices = @transform_5, window_bounds = array<i64: 1, 16, 512>}]} {
    %c0 = arith.constant 0 : index
    %c0_0 = arith.constant 0 : index
    %c0_1 = arith.constant 0 : index
    %0 = vector.load %arg1[%c0, %c0_0, %c0_1] : memref<1x16x512xf32, #tpu.memory_space<vmem>>, vector<1x16x512xf32>
    %1 = vector.shape_cast %0 : vector<1x16x512xf32> to vector<16x512xf32>
    %cst = arith.constant 0.000000e+00 : f32
    %2 = vector.broadcast %cst : f32 to vector<32x512xf32>
    %c0_2 = arith.constant 0 : index
    %c0_3 = arith.constant 0 : index
    %3 = vector.load %arg7[%c0_2, %c0_3] : memref<32x512xf32, #tpu.memory_space<vmem>>, vector<32x512xf32>
    tpu.vector_store %arg7[%c0_2, %c0_3], %2 {strides = array<i32>} : memref<32x512xf32, #tpu.memory_space<vmem>>, vector<32x512xf32>,
    %cst_4 = arith.constant 0.000000e+00 : f32
    %4 = vector.broadcast %cst_4 : f32 to vector<16x512xf32>
    %5 = arith.maximumf %1, %4 : vector<16x512xf32>
    %c8 = arith.constant 8 : index
    %c0_5 = arith.constant 0 : index
    %6 = vector.load %arg7[%c8, %c0_5] : memref<32x512xf32, #tpu.memory_space<vmem>>, vector<16x512xf32>
    tpu.vector_store %arg7[%c8, %c0_5], %5 {strides = array<i32>} : memref<32x512xf32, #tpu.memory_space<vmem>>, vector<16x512xf32>,
    %c7 = arith.constant 7 : index
    %c0_6 = arith.constant 0 : index
    %7 = vector.load %arg7[%c7, %c0_6] : memref<32x512xf32, #tpu.memory_space<vmem>>, vector<16x512xf32>
    %c0_7 = arith.constant 0 : index
    %c0_8 = arith.constant 0 : index
    %c0_9 = arith.constant 0 : index
    %8 = vector.load %arg2[%c0_7, %c0_8, %c0_9] : memref<3x512x512xf32, #tpu.memory_space<vmem>>, vector<1x512x512xf32>
    %9 = vector.shape_cast %8 : vector<1x512x512xf32> to vector<512x512xf32>
    %cst_10 = arith.constant dense<0.000000e+00> : vector<16x512xf32>
    %10 = tpu.matmul %7, %9, %cst_10 {dimension_numbers = #tpu.dot_dimension_numbers<[1], [0], [0], [1], [0, 0, 1, 1], [], []>} : vector<16x512xf32>, vector<512x512xf32>, vector<16x512xf32> -> vector<16x512xf32>
    %c8_11 = arith.constant 8 : index
    %c0_12 = arith.constant 0 : index
    %11 = vector.load %arg7[%c8_11, %c0_12] : memref<32x512xf32, #tpu.memory_space<vmem>>, vector<16x512xf32>
    %c1 = arith.constant 1 : index
    %c0_13 = arith.constant 0 : index
    %c0_14 = arith.constant 0 : index
    %12 = vector.load %arg2[%c1, %c0_13, %c0_14] : memref<3x512x512xf32, #tpu.memory_space<vmem>>, vector<1x512x512xf32>
    %13 = vector.shape_cast %12 : vector<1x512x512xf32> to vector<512x512xf32>
    %cst_15 = arith.constant dense<0.000000e+00> : vector<16x512xf32>
    %14 = tpu.matmul %11, %13, %cst_15 {dimension_numbers = #tpu.dot_dimension_numbers<[1], [0], [0], [1], [0, 0, 1, 1], [], []>} : vector<16x512xf32>, vector<512x512xf32>, vector<16x512xf32> -> vector<16x512xf32>
    %15 = arith.addf %10, %14 : vector<16x512xf32>
    %c9 = arith.constant 9 : index
    %c0_16 = arith.constant 0 : index
    %16 = vector.load %arg7[%c9, %c0_16] : memref<32x512xf32, #tpu.memory_space<vmem>>, vector<16x512xf32>
    %c2 = arith.constant 2 : index
    %c0_17 = arith.constant 0 : index
    %c0_18 = arith.constant 0 : index
    %17 = vector.load %arg2[%c2, %c0_17, %c0_18] : memref<3x512x512xf32, #tpu.memory_space<vmem>>, vector<1x512x512xf32>
    %18 = vector.shape_cast %17 : vector<1x512x512xf32> to vector<512x512xf32>
    %cst_19 = arith.constant dense<0.000000e+00> : vector<16x512xf32>
    %19 = tpu.matmul %16, %18, %cst_19 {dimension_numbers = #tpu.dot_dimension_numbers<[1], [0], [0], [1], [0, 0, 1, 1], [], []>} : vector<16x512xf32>, vector<512x512xf32>, vector<16x512xf32> -> vector<16x512xf32>
    %20 = arith.addf %15, %19 : vector<16x512xf32>
    %c0_20 = arith.constant 0 : index
    %c0_21 = arith.constant 0 : index
    %21 = vector.load %arg3[%c0_20, %c0_21] : memref<1x512xf32, #tpu.memory_space<vmem>>, vector<1x512xf32>
    %22 = vector.broadcast %21 : vector<1x512xf32> to vector<16x512xf32>
    %23 = arith.addf %20, %22 : vector<16x512xf32>
    %cst_22 = arith.constant 0.000000e+00 : f32
    %24 = vector.broadcast %cst_22 : f32 to vector<16x512xf32>
    %25 = arith.maximumf %23, %24 : vector<16x512xf32>
    %c0_23 = arith.constant 0 : index
    %c0_24 = arith.constant 0 : index
    %26 = vector.load %arg4[%c0_23, %c0_24] : memref<512x512xf32, #tpu.memory_space<vmem>>, vector<512x512xf32>
    %cst_25 = arith.constant dense<0.000000e+00> : vector<16x512xf32>
    %27 = tpu.matmul %25, %26, %cst_25 {dimension_numbers = #tpu.dot_dimension_numbers<[1], [0], [0], [1], [0, 0, 1, 1], [], []>} : vector<16x512xf32>, vector<512x512xf32>, vector<16x512xf32> -> vector<16x512xf32>
    %c0_26 = arith.constant 0 : index
    %c0_27 = arith.constant 0 : index
    %28 = vector.load %arg5[%c0_26, %c0_27] : memref<1x512xf32, #tpu.memory_space<vmem>>, vector<1x512xf32>
    %29 = vector.broadcast %28 : vector<1x512xf32> to vector<16x512xf32>
    %30 = arith.addf %27, %29 : vector<16x512xf32>
    %31 = arith.addf %30, %1 : vector<16x512xf32>
    %32 = vector.shape_cast %31 : vector<16x512xf32> to vector<1x16x512xf32>
    %c0_28 = arith.constant 0 : index
    %c0_29 = arith.constant 0 : index
    %c0_30 = arith.constant 0 : index
    %33 = vector.load %arg6[%c0_28, %c0_29, %c0_30] : memref<1x16x512xf32, #tpu.memory_space<vmem>>, vector<1x16x512xf32>
    tpu.vector_store %arg6[%c0_28, %c0_29, %c0_30], %32 {strides = array<i32>} : memref<1x16x512xf32, #tpu.memory_space<vmem>>, vector<1x16x512xf32>,
    return
  }
  func.func @transform_0(%arg0: i32) -> (i32, i32, i32) {
    %c0_i32 = arith.constant 0 : i32
    %c0_i32_0 = arith.constant 0 : i32
    %c0_i32_1 = arith.constant 0 : i32
    return %arg0, %c0_i32, %c0_i32_0 : i32, i32, i32
  }
  func.func @transform_1(%arg0: i32) -> (i32, i32, i32) {
    %c0_i32 = arith.constant 0 : i32
    %c0_i32_0 = arith.constant 0 : i32
    %c0_i32_1 = arith.constant 0 : i32
    %c0_i32_2 = arith.constant 0 : i32
    return %c0_i32, %c0_i32_0, %c0_i32_1 : i32, i32, i32
  }
  func.func @transform_2(%arg0: i32) -> (i32, i32) {
    %c0_i32 = arith.constant 0 : i32
    %c0_i32_0 = arith.constant 0 : i32
    %c0_i32_1 = arith.constant 0 : i32
    return %c0_i32, %c0_i32_0 : i32, i32
  }
  func.func @transform_3(%arg0: i32) -> (i32, i32) {
    %c0_i32 = arith.constant 0 : i32
    %c0_i32_0 = arith.constant 0 : i32
    %c0_i32_1 = arith.constant 0 : i32
    return %c0_i32, %c0_i32_0 : i32, i32
  }
  func.func @transform_4(%arg0: i32) -> (i32, i32) {
    %c0_i32 = arith.constant 0 : i32
    %c0_i32_0 = arith.constant 0 : i32
    %c0_i32_1 = arith.constant 0 : i32
    return %c0_i32, %c0_i32_0 : i32, i32
  }
  func.func @transform_5(%arg0: i32) -> (i32, i32, i32) {
    %c0_i32 = arith.constant 0 : i32
    %c0_i32_0 = arith.constant 0 : i32
    %c0_i32_1 = arith.constant 0 : i32
    return %arg0, %c0_i32, %c0_i32_0 : i32, i32, i32
  }
}

</mosaic_0001>

<bundles_post_ra>
// kernel: tile.10
= control target key start
LH: loop header
LB: loop body
LE: loop exit
PB: predicated region body
PF: predicated region fallthrough
CT: control target
= control target key end

     0   :  { %s28_s0 = inlined_call_operand.vmem [shape: f32[32], index: 0, kind: input, shape index: {}]   ;;  %s29_s1 = inlined_call_operand.vmem [shape: f32[16,32], index: 1, kind: output, shape index: {}]  }
   0x1   :  { %v4_v0 = vld [vmem:[%s28_s0] ss:$0 sm:$0xff] }
   0x2   :  { %5 = vst [vmem:[%s29_s1] sm:$0xff] %v4_v0 }
   0x3   :  { %8 = vst [vmem:[%s29_s1 + $0x8] sm:$0xff] %v4_v0 }

// kernel: tile.11
= control target key start
LH: loop header
LB: loop body
LE: loop exit
PB: predicated region body
PF: predicated region fallthrough
CT: control target
= control target key end

     0   :  { %s56_s8 = smov 96   ;;  %s57_s11 = smov 32   ;;  %vm3_vm0 = vcmask 261120   ;;  %vm9_vm1 = vcmask 1048320   ;;  %vm15_vm2 = vcmask 785920   ;;  %vm21_vm3 = vcmask 523520   ;;  %s93_s0 = inlined_call_operand.vmem [shape: f32[16,32], index: 0, kind: input, shape index: {}]   ;;  %s94_s1 = inlined_call_operand.vmem [shape: f32[1,512], index: 1, kind: output, shape index: {}]  }
   0x1   :  { %v47_v0 = vld [vmem:[%s93_s0 + $0x3] ss:$4 sm:$0xf]   ;;  %v49_v1 = vld [vmem:[%s93_s0 + $0x1] ss:$4 sm:$0xf]  }
   0x2   :  { %7 = vrot.lane.b32.xlu0 %v47_v0, %s56_s8  ;;  %19 = vrot.lane.b32.xlu1 %v49_v1, %s57_s11  ;;  %v48_v2 = vld [vmem:[%s93_s0 + $0x2] ss:$4 sm:$0xf]   ;;  %s58_s14 = smov 64  }
   0x3   :  { %v2_v3 = vld [vmem:[%s93_s0] ss:$4 sm:$0xf]  }
   0x4   :  { %4 = vst.msk [vmem:[#allocation0] ss:$8 sm:$0xf] %vm3_vm0, %v2_v3  }
   0xa   :  { %13 = vrot.lane.b32.xlu0 %v48_v2, %s58_s14 }
  0x74   :  { %v8_v4 = vpop.permute.xlu0 %7   ;;  %v20_v5 = vpop.permute.xlu1 %19  }
  0x75   :  { %10 = vst.msk [vmem:[#allocation0] ss:$8 sm:$0xf] %vm9_vm1, %v8_v4  }
  0x7c   :  { %v14_v6 = vpop.permute.xlu0 %13  }
  0x7d   :  { %16 = vst.msk [vmem:[#allocation0] ss:$8 sm:$0xf] %vm15_vm2, %v14_v6  }
  0x7e   :  { %22 = vst.msk [vmem:[#allocation0] ss:$8 sm:$0xf] %vm21_vm3, %v20_v5  }
  0x85   :  { %v25_v7 = vld [vmem:[#allocation0] sm:$0x1]  ;;  %v30_v8 = vld [vmem:[#allocation0 + $0x8] sm:$0x1]  ;;  %v36_v9 = vld [vmem:[#allocation0 + $0x10] sm:$0x1] }
  0x86   :  { %28 = vst [vmem:[%s94_s1] sm:$0x1] %v25_v7  ;;  %v42_v10 = vld [vmem:[#allocation0 + $0x18] sm:$0x1] }
  0x87   :  { %50 = vst [vmem:[%s94_s1 + $0x1] sm:$0x1] %v30_v8 }
  0x88   :  { %51 = vst [vmem:[%s94_s1 + $0x2] sm:$0x1] %v36_v9 }
  0x89   :  { %52 = vst [vmem:[%s94_s1 + $0x3] sm:$0x1] %v42_v10 }

// kernel: residual_block_forward.1
= control target key start
LH: loop header
LB: loop body
LE: loop exit
PB: predicated region body
PF: predicated region fallthrough
CT: control target
= control target key end

     0   :  { %s3569_s18 = smov 0   ;;  %s7105_s0 = inlined_call_operand.vmem [shape: f32[2,16,512], index: 0, kind: input, shape index: {}]   ;;  %s7106_s1 = inlined_call_operand.vmem [shape: f32[3,512,512], index: 1, kind: input, shape index: {}]   ;;  %s7107_s2 = inlined_call_operand.vmem [shape: f32[1,512], index: 2, kind: input, shape index: {}]   ;;  %s7108_s3 = inlined_call_operand.vmem [shape: f32[512,512], index: 3, kind: input, shape index: {}]   ;;  %s7109_s4 = inlined_call_operand.vmem [shape: f32[1,512], index: 4, kind: input, shape index: {}]   ;;  %s7110_s5 = inlined_call_operand.vmem [shape: f32[2,16,512], index: 5, kind: output, shape index: {}]  }
   0x1 LB: > { %s2988_s19 = sadd.s32 4294967295, %s3536_s18   ;;  %p2992_p0 = scmp.ge.s32.totalorder %s3536_s18, 1  ;;  %s3536_s18 = sphi %s3569_s18, %s15_s18  }
   0x2   : > { %p187_p1 = scmp.lt.s32.totalorder %s3536_s18, 3 }
   0x4   : > { %p188_p2 = pnand %p2992_p0, %p187_p1 }
   0x5   : > { %p3765_p3 = scmp.lt.s32.totalorder (!%p188_p2), %s2988_s19, 1 }
   0x6   : > { %191 = sbr.rel (%p188_p2) target bundleno = 841 (0x349), region = 40 }
   0xb   : > { %v3057_v0 = vld [vmem:[%s7106_s1 + $0x9e0] sm:$0xff]  ;;  %v3058_v62 = vld [vmem:[%s7106_s1 + $0x9e8] sm:$0xff]  ;;  %s7113_s19 = smov (!%p3765_p3, %s2988_s19), 1  ;;  %vm1174_vm0 = vcmask 1040384   ;;  %vm1852_vm1 = vcmask 1046528  }
   0xc   : > { %v3185_v1 = vld [vmem:[%s7106_s1 + $0xde0] sm:$0xff]  ;;  %794 = vmatpush.msra.mxu0 %v3057_v0  ;;  %v3186_v63 = vld [vmem:[%s7106_s1 + $0xde8] sm:$0xff]  ;;  %s3511_s14 = sshll.u32 %s7113_s19, 6 }
   0xd   : > { %v3053_v2 = vld [vmem:[%s7106_s1 + $0x9c0] sm:$0xff]  ;;  %840 = vmatpush.msra.mxu2 %v3185_v1  ;;  %s3847_s6 = scalar_lea.vmem %s7105_s0, %s3511_s14  ;;  %s7081_s27 = scalar_lea.vmem %s7110_s5, %s3511_s14 }
   0xe   : > { %v3121_v3 = vld [vmem:[%s7106_s1 + $0xbe0] sm:$0xff]  ;;  %795 = vmatpush.msra.mxu0 %v3053_v2  ;;  %v3054_v2 = vld [vmem:[%s7106_s1 + $0x9c8] sm:$0xff] }
   0xf   : > { %v3181_v4 = vld [vmem:[%s7106_s1 + $0xdc0] sm:$0xff]  ;;  %817 = vmatpush.msra.mxu1 %v3121_v3  ;;  %v3122_v3 = vld [vmem:[%s7106_s1 + $0xbe8] sm:$0xff] }
  0x10   : > { %v3249_v5 = vld [vmem:[%s7106_s1 + $0xfe0] sm:$0xff]  ;;  %841 = vmatpush.msra.mxu2 %v3181_v4  ;;  %v3182_v4 = vld [vmem:[%s7106_s1 + $0xdc8] sm:$0xff] }
  0x11   : > { %863 = vmatpush.msra.mxu3 %v3249_v5  ;;  %v3049_v6 = vld [vmem:[%s7106_s1 + $0x9a0] sm:$0xff]  ;;  %v3250_v5 = vld [vmem:[%s7106_s1 + $0xfe8] sm:$0xff] }
  0x12   : > { %v3117_v7 = vld [vmem:[%s7106_s1 + $0xbc0] sm:$0xff]  ;;  %796 = vmatpush.msra.mxu0 %v3049_v6  ;;  %v3538_v6 = vmov 0.0  }
  0x13   : > { %v3177_v8 = vld [vmem:[%s7106_s1 + $0xda0] sm:$0xff]  ;;  %818 = vmatpush.msra.mxu1 %v3117_v7  ;;  %233 = vst [vmem:[#allocation2 + $0x30] sm:$0xff] %v3538_v6  ;;  %v3050_v7 = vld [vmem:[%s7106_s1 + $0x9a8] sm:$0xff] }
  0x14   : > { %v3245_v9 = vld [vmem:[%s7106_s1 + $0xfc0] sm:$0xff]  ;;  %842 = vmatpush.msra.mxu2 %v3177_v8  ;;  %v3118_v8 = vld [vmem:[%s7106_s1 + $0xbc8] sm:$0xff]  ;;  %234 = vst [vmem:[#allocation2] sm:$0xff] %v3538_v6 }
  0x15   : > { %v3113_v10 = vld [vmem:[%s7106_s1 + $0xba0] sm:$0xff]  ;;  %864 = vmatpush.msra.mxu3 %v3245_v9  ;;  %v3178_v9 = vld [vmem:[%s7106_s1 + $0xda8] sm:$0xff]  ;;  %235 = vst [vmem:[#allocation2 + $0x58] sm:$0xff] %v3538_v6 }
  0x16   : > { %v3045_v11 = vld [vmem:[%s7106_s1 + $0x980] sm:$0xff]  ;;  %819 = vmatpush.msra.mxu1 %v3113_v10  ;;  %v3246_v10 = vld [vmem:[%s7106_s1 + $0xfc8] sm:$0xff]  ;;  %236 = vst [vmem:[#allocation2 + $0x18] sm:$0xff] %v3538_v6 }
  0x17   : > { %v3173_v12 = vld [vmem:[%s7106_s1 + $0xd80] sm:$0xff]  ;;  %797 = vmatpush.msra.mxu0 %v3045_v11  ;;  %v3046_v11 = vld [vmem:[%s7106_s1 + $0x988] sm:$0xff]  ;;  %245 = vst [vmem:[#allocation2 + $0x60] sm:$0xff] %v3538_v6 }
  0x18   : > { %v3241_v13 = vld [vmem:[%s7106_s1 + $0xfa0] sm:$0xff]  ;;  %843 = vmatpush.msra.mxu2 %v3173_v12  ;;  %v3114_v12 = vld [vmem:[%s7106_s1 + $0xba8] sm:$0xff]  ;;  %246 = vst [vmem:[#allocation2 + $0x70] sm:$0xff] %v3538_v6 }
  0x19   : > { %v3109_v14 = vld [vmem:[%s7106_s1 + $0xb80] sm:$0xff]  ;;  %865 = vmatpush.msra.mxu3 %v3241_v13  ;;  %v3174_v13 = vld [vmem:[%s7106_s1 + $0xd88] sm:$0xff]  ;;  %247 = vst [vmem:[#allocation2 + $0x78] sm:$0xff] %v3538_v6 }
  0x1a   : > { %v3237_v15 = vld [vmem:[%s7106_s1 + $0xf80] sm:$0xff]  ;;  %820 = vmatpush.msra.mxu1 %v3109_v14  ;;  %v3242_v14 = vld [vmem:[%s7106_s1 + $0xfa8] sm:$0xff]  ;;  %248 = vst [vmem:[#allocation2 + $0x28] sm:$0xff] %v3538_v6  ;;  %v231_v6 = vld [vmem:[%s3847_s6 + $0x30] sm:$0xff] }
  0x1b   : > { %v3041_v16 = vld [vmem:[%s7106_s1 + $0x960] sm:$0xff]  ;;  %866 = vmatpush.msra.mxu3 %v3237_v15  ;;  %v3042_v15 = vld [vmem:[%s7106_s1 + $0x968] sm:$0xff] }
  0x1c   : > { %v3169_v17 = vld [vmem:[%s7106_s1 + $0xd60] sm:$0xff]  ;;  %798 = vmatpush.msra.mxu0 %v3041_v16  ;;  %v3110_v16 = vld [vmem:[%s7106_s1 + $0xb88] sm:$0xff] }
  0x1d   : > { %v3105_v18 = vld [vmem:[%s7106_s1 + $0xb60] sm:$0xff]  ;;  %844 = vmatpush.msra.mxu2 %v3169_v17  ;;  %v3170_v17 = vld [vmem:[%s7106_s1 + $0xd68] sm:$0xff] }
  0x1e   : > { %v3233_v19 = vld [vmem:[%s7106_s1 + $0xf60] sm:$0xff]  ;;  %821 = vmatpush.msra.mxu1 %v3105_v18  ;;  %v3238_v18 = vld [vmem:[%s7106_s1 + $0xf88] sm:$0xff] }
  0x1f   : > { %v3037_v20 = vld [vmem:[%s7106_s1 + $0x940] sm:$0xff]  ;;  %867 = vmatpush.msra.mxu3 %v3233_v19  ;;  %v3038_v19 = vld [vmem:[%s7106_s1 + $0x948] sm:$0xff] }
  0x20   : > { %v3165_v21 = vld [vmem:[%s7106_s1 + $0xd40] sm:$0xff]  ;;  %799 = vmatpush.msra.mxu0 %v3037_v20  ;;  %v3106_v20 = vld [vmem:[%s7106_s1 + $0xb68] sm:$0xff] }
  0x21   : > { %v3101_v22 = vld [vmem:[%s7106_s1 + $0xb40] sm:$0xff]  ;;  %845 = vmatpush.msra.mxu2 %v3165_v21  ;;  %v3166_v21 = vld [vmem:[%s7106_s1 + $0xd48] sm:$0xff] }
  0x22   : > { %v3229_v23 = vld [vmem:[%s7106_s1 + $0xf40] sm:$0xff]  ;;  %822 = vmatpush.msra.mxu1 %v3101_v22  ;;  %v3234_v22 = vld [vmem:[%s7106_s1 + $0xf68] sm:$0xff] }
  0x23   : > { %v3033_v24 = vld [vmem:[%s7106_s1 + $0x920] sm:$0xff]  ;;  %868 = vmatpush.msra.mxu3 %v3229_v23  ;;  %v3034_v23 = vld [vmem:[%s7106_s1 + $0x928] sm:$0xff] }
  0x24   : > { %v3161_v25 = vld [vmem:[%s7106_s1 + $0xd20] sm:$0xff]  ;;  %800 = vmatpush.msra.mxu0 %v3033_v24  ;;  %v3102_v24 = vld [vmem:[%s7106_s1 + $0xb48] sm:$0xff] }
  0x25   : > { %v3097_v26 = vld [vmem:[%s7106_s1 + $0xb20] sm:$0xff]  ;;  %846 = vmatpush.msra.mxu2 %v3161_v25  ;;  %v3162_v25 = vld [vmem:[%s7106_s1 + $0xd28] sm:$0xff] }
  0x26   : > { %v3225_v27 = vld [vmem:[%s7106_s1 + $0xf20] sm:$0xff]  ;;  %823 = vmatpush.msra.mxu1 %v3097_v26  ;;  %v3230_v26 = vld [vmem:[%s7106_s1 + $0xf48] sm:$0xff] }
  0x27   : > { %v3029_v28 = vld [vmem:[%s7106_s1 + $0x900] sm:$0xff]  ;;  %869 = vmatpush.msra.mxu3 %v3225_v27 }
  0x28   : > { %v3157_v29 = vld [vmem:[%s7106_s1 + $0xd00] sm:$0xff]  ;;  %801 = vmatpush.msra.mxu0 %v3029_v28  ;;  %v227_v28 = vld [vmem:[%s3847_s6 + $0x10] sm:$0xff] }
  0x29   : > { %v3093_v30 = vld [vmem:[%s7106_s1 + $0xb00] sm:$0xff]  ;;  %847 = vmatpush.msra.mxu2 %v3157_v29  ;;  %v3030_v29 = vld [vmem:[%s7106_s1 + $0x908] sm:$0xff] }
  0x2a   : > { %v3221_v31 = vld [vmem:[%s7106_s1 + $0xf00] sm:$0xff]  ;;  %824 = vmatpush.msra.mxu1 %v3093_v30  ;;  %v3098_v30 = vld [vmem:[%s7106_s1 + $0xb28] sm:$0xff] }
  0x2b   : > { %v3025_v32 = vld [vmem:[%s7106_s1 + $0x8e0] sm:$0xff]  ;;  %870 = vmatpush.msra.mxu3 %v3221_v31  ;;  %v3158_v31 = vld [vmem:[%s7106_s1 + $0xd08] sm:$0xff] }
  0x2c   : > { %v3153_v33 = vld [vmem:[%s7106_s1 + $0xce0] sm:$0xff]  ;;  %802 = vmatpush.msra.mxu0 %v3025_v32 }
  0x2d   : > { %v3089_v34 = vld [vmem:[%s7106_s1 + $0xae0] sm:$0xff]  ;;  %848 = vmatpush.msra.mxu2 %v3153_v33  ;;  %v3226_v33 = vld [vmem:[%s7106_s1 + $0xf28] sm:$0xff] }
  0x2e   : > { %v3217_v35 = vld [vmem:[%s7106_s1 + $0xee0] sm:$0xff]  ;;  %825 = vmatpush.msra.mxu1 %v3089_v34  ;;  %v3883_v34 = vmax.f32 %v227_v28, 0.0  ;;  %v3115_v28 = vld [vmem:[%s7106_s1 + $0xbb0] sm:$0xff] }
  0x2f   : > { %v3021_v36 = vld [vmem:[%s7106_s1 + $0x8c0] sm:$0xff]  ;;  %871 = vmatpush.msra.mxu3 %v3217_v35  ;;  %v226_v35 = vld [vmem:[%s3847_s6 + $0x8] sm:$0xff] }
  0x30   : > { %v3149_v37 = vld [vmem:[%s7106_s1 + $0xcc0] sm:$0xff]  ;;  %803 = vmatpush.msra.mxu0 %v3021_v36  ;;  %v228_v36 = vld [vmem:[%s3847_s6 + $0x18] sm:$0xff]  ;;  %259 = vst [vmem:[#allocation2 + $0x8] sm:$0xff] %v3883_v34 }
  0x31   : > { %v3085_v38 = vld [vmem:[%s7106_s1 + $0xac0] sm:$0xff]  ;;  %849 = vmatpush.msra.mxu2 %v3149_v37  ;;  %v3026_v37 = vld [vmem:[%s7106_s1 + $0x8e8] sm:$0xff] }
  0x32   : > { %v3213_v39 = vld [vmem:[%s7106_s1 + $0xec0] sm:$0xff]  ;;  %826 = vmatpush.msra.mxu1 %v3085_v38  ;;  %v3094_v38 = vld [vmem:[%s7106_s1 + $0xb08] sm:$0xff] }
  0x33   : > { %v3017_v40 = vld [vmem:[%s7106_s1 + $0x8a0] sm:$0xff]  ;;  %872 = vmatpush.msra.mxu3 %v3213_v39  ;;  %v3894_v39 = vmax.f32 %v226_v35, 0.0  ;;  %v3171_v35 = vld [vmem:[%s7106_s1 + $0xd70] sm:$0xff] }
  0x34   : > { %v3145_v41 = vld [vmem:[%s7106_s1 + $0xca0] sm:$0xff]  ;;  %804 = vmatpush.msra.mxu0 %v3017_v40  ;;  %v3154_v40 = vld [vmem:[%s7106_s1 + $0xce8] sm:$0xff] }
  0x35   : > { %v3081_v42 = vld [vmem:[%s7106_s1 + $0xaa0] sm:$0xff]  ;;  %850 = vmatpush.msra.mxu2 %v3145_v41  ;;  %v3222_v41 = vld [vmem:[%s7106_s1 + $0xf08] sm:$0xff]  ;;  %258 = vst [vmem:[#allocation2 + $0x68] sm:$0xff] %v3894_v39 }
  0x36   : > { %v3209_v43 = vld [vmem:[%s7106_s1 + $0xea0] sm:$0xff]  ;;  %827 = vmatpush.msra.mxu1 %v3081_v42  ;;  %v3903_v42 = vmax.f32 %v228_v36, 0.0  ;;  %v3239_v36 = vld [vmem:[%s7106_s1 + $0xf90] sm:$0xff] }
  0x37   : > { %v3013_v44 = vld [vmem:[%s7106_s1 + $0x880] sm:$0xff]  ;;  %873 = vmatpush.msra.mxu3 %v3209_v43  ;;  %v3022_v43 = vld [vmem:[%s7106_s1 + $0x8c8] sm:$0xff] }
  0x38   : > { %v3141_v45 = vld [vmem:[%s7106_s1 + $0xc80] sm:$0xff]  ;;  %805 = vmatpush.msra.mxu0 %v3013_v44  ;;  %v3090_v44 = vld [vmem:[%s7106_s1 + $0xae8] sm:$0xff]  ;;  %260 = vst [vmem:[#allocation2 + $0x48] sm:$0xff] %v3903_v42 }
  0x39   : > { %v3077_v46 = vld [vmem:[%s7106_s1 + $0xa80] sm:$0xff]  ;;  %851 = vmatpush.msra.mxu2 %v3141_v45  ;;  %v3150_v45 = vld [vmem:[%s7106_s1 + $0xcc8] sm:$0xff] }
  0x3a   : > { %v3205_v47 = vld [vmem:[%s7106_s1 + $0xe80] sm:$0xff]  ;;  %828 = vmatpush.msra.mxu1 %v3077_v46  ;;  %v3218_v46 = vld [vmem:[%s7106_s1 + $0xee8] sm:$0xff] }
  0x3b   : > { %v3009_v48 = vld [vmem:[%s7106_s1 + $0x860] sm:$0xff]  ;;  %874 = vmatpush.msra.mxu3 %v3205_v47  ;;  %v3018_v47 = vld [vmem:[%s7106_s1 + $0x8a8] sm:$0xff] }
  0x3c   : > { %v3137_v49 = vld [vmem:[%s7106_s1 + $0xc60] sm:$0xff]  ;;  %806 = vmatpush.msra.mxu0 %v3009_v48  ;;  %v3086_v48 = vld [vmem:[%s7106_s1 + $0xac8] sm:$0xff] }
  0x3d   : > { %v3073_v50 = vld [vmem:[%s7106_s1 + $0xa60] sm:$0xff]  ;;  %852 = vmatpush.msra.mxu2 %v3137_v49  ;;  %v3146_v49 = vld [vmem:[%s7106_s1 + $0xca8] sm:$0xff] }
  0x3e   : > { %v3201_v51 = vld [vmem:[%s7106_s1 + $0xe60] sm:$0xff]  ;;  %829 = vmatpush.msra.mxu1 %v3073_v50  ;;  %v3214_v50 = vld [vmem:[%s7106_s1 + $0xec8] sm:$0xff] }
  0x3f   : > { %v3005_v52 = vld [vmem:[%s7106_s1 + $0x840] sm:$0xff]  ;;  %875 = vmatpush.msra.mxu3 %v3201_v51  ;;  %v3014_v51 = vld [vmem:[%s7106_s1 + $0x888] sm:$0xff] }
  0x40   : > { %v3133_v53 = vld [vmem:[%s7106_s1 + $0xc40] sm:$0xff]  ;;  %807 = vmatpush.msra.mxu0 %v3005_v52  ;;  %v3082_v52 = vld [vmem:[%s7106_s1 + $0xaa8] sm:$0xff] }
  0x41   : > { %v3069_v54 = vld [vmem:[%s7106_s1 + $0xa40] sm:$0xff]  ;;  %853 = vmatpush.msra.mxu2 %v3133_v53  ;;  %v3142_v53 = vld [vmem:[%s7106_s1 + $0xc88] sm:$0xff] }
  0x42   : > { %v3197_v55 = vld [vmem:[%s7106_s1 + $0xe40] sm:$0xff]  ;;  %830 = vmatpush.msra.mxu1 %v3069_v54  ;;  %v3210_v54 = vld [vmem:[%s7106_s1 + $0xea8] sm:$0xff] }
  0x43   : > { %v3001_v56 = vld [vmem:[%s7106_s1 + $0x820] sm:$0xff]  ;;  %876 = vmatpush.msra.mxu3 %v3197_v55  ;;  %v3010_v55 = vld [vmem:[%s7106_s1 + $0x868] sm:$0xff] }
  0x44   : > { %v3129_v57 = vld [vmem:[%s7106_s1 + $0xc20] sm:$0xff]  ;;  %808 = vmatpush.msra.mxu0 %v3001_v56  ;;  %v3078_v56 = vld [vmem:[%s7106_s1 + $0xa88] sm:$0xff] }
  0x45   : > { %v3065_v58 = vld [vmem:[%s7106_s1 + $0xa20] sm:$0xff]  ;;  %854 = vmatpush.msra.mxu2 %v3129_v57  ;;  %v3138_v57 = vld [vmem:[%s7106_s1 + $0xc68] sm:$0xff] }
  0x46   : > { %v3193_v59 = vld [vmem:[%s7106_s1 + $0xe20] sm:$0xff]  ;;  %831 = vmatpush.msra.mxu1 %v3065_v58  ;;  %v3206_v58 = vld [vmem:[%s7106_s1 + $0xe88] sm:$0xff] }
  0x47   : > { %v2997_v60 = vld [vmem:[%s7106_s1 + $0x800] sm:$0xff]  ;;  %877 = vmatpush.msra.mxu3 %v3193_v59  ;;  %v3006_v59 = vld [vmem:[%s7106_s1 + $0x848] sm:$0xff] }
  0x48   : > { %v3125_v61 = vld [vmem:[%s7106_s1 + $0xc00] sm:$0xff]  ;;  %809 = vmatpush.msra.mxu0 %v2997_v60  ;;  %v3074_v60 = vld [vmem:[%s7106_s1 + $0xa68] sm:$0xff] }
  0x49   : > { %v3061_v0 = vld [vmem:[%s7106_s1 + $0xa00] sm:$0xff]  ;;  %855 = vmatpush.msra.mxu2 %v3125_v61  ;;  %v3134_v61 = vld [vmem:[%s7106_s1 + $0xc48] sm:$0xff] }
  0x4a   : > { %v3189_v1 = vld [vmem:[%s7106_s1 + $0xe00] sm:$0xff]  ;;  %886 = vmatpush.msrb.mxu0 %v3058_v62  ;;  %832 = vmatpush.msra.mxu1 %v3061_v0  ;;  %v3202_v62 = vld [vmem:[%s7106_s1 + $0xe68] sm:$0xff] }
  0x4b   : > { %932 = vmatpush.msrb.mxu2 %v3186_v63  ;;  %878 = vmatpush.msra.mxu3 %v3189_v1  ;;  %v225_v27 = vld [vmem:[%s3847_s6] sm:$0xff]  ;;  %v3002_v63 = vld [vmem:[%s7106_s1 + $0x828] sm:$0xff] }
  0x4c   : > { %887 = vmatpush.msrb.mxu0 %v3054_v2  ;;  %909 = vmatpush.msrb.mxu1 %v3122_v3  ;;  %v3878_v32 = vmax.f32 %v225_v27, 0.0  ;;  %v3070_v0 = vld [vmem:[%s7106_s1 + $0xa48] sm:$0xff]  ;;  %v3047_v27 = vld [vmem:[%s7106_s1 + $0x990] sm:$0xff] }
  0x4d   : > { %933 = vmatpush.msrb.mxu2 %v3182_v4  ;;  %955 = vmatpush.msrb.mxu3 %v3250_v5  ;;  %v3130_v1 = vld [vmem:[%s7106_s1 + $0xc28] sm:$0xff]  ;;  %v229_v5 = vld [vmem:[%s3847_s6 + $0x20] sm:$0xff] }
  0x4e   : > { %888 = vmatpush.msrb.mxu0 %v3050_v7  ;;  %910 = vmatpush.msrb.mxu1 %v3118_v8  ;;  %257 = vst [vmem:[#allocation2 + $0x50] sm:$0xff] %v3878_v32  ;;  %v3198_v2 = vld [vmem:[%s7106_s1 + $0xe48] sm:$0xff] }
  0x4f   : > { %934 = vmatpush.msrb.mxu2 %v3178_v9  ;;  %956 = vmatpush.msrb.mxu3 %v3246_v10  ;;  %v2998_v3 = vld [vmem:[%s7106_s1 + $0x808] sm:$0xff]  ;;  %v3993_v9 = vmax.f32 %v229_v5, 0.0  ;;  %v3995_v10 = vmax.f32 %v231_v6, 0.0  ;;  %v3139_v5 = vld [vmem:[%s7106_s1 + $0xc70] sm:$0xff] }
  0x50   : > { %889 = vmatpush.msrb.mxu0 %v3046_v11  ;;  %911 = vmatpush.msrb.mxu1 %v3114_v12  ;;  %v3066_v4 = vld [vmem:[%s7106_s1 + $0xa28] sm:$0xff]  ;;  %v232_v12 = vld [vmem:[%s3847_s6 + $0x38] sm:$0xff]  ;;  %v3207_v6 = vld [vmem:[%s7106_s1 + $0xe90] sm:$0xff] }
  0x51   : > { %935 = vmatpush.msrb.mxu2 %v3174_v13  ;;  %957 = vmatpush.msrb.mxu3 %v3242_v14  ;;  %v3126_v7 = vld [vmem:[%s7106_s1 + $0xc08] sm:$0xff]  ;;  %v3059_v13 = vld [vmem:[%s7106_s1 + $0x9f0] sm:$0xff]  ;;  %261 = vst [vmem:[#allocation2 + $0x40] sm:$0xff] %v3993_v9 }
  0x52   : > { %890 = vmatpush.msrb.mxu0 %v3042_v15  ;;  %912 = vmatpush.msrb.mxu1 %v3110_v16  ;;  %v3194_v8 = vld [vmem:[%s7106_s1 + $0xe28] sm:$0xff]  ;;  %v3187_v14 = vld [vmem:[%s7106_s1 + $0xdf0] sm:$0xff]  ;;  %263 = vst [vmem:[#allocation2 + $0x10] sm:$0xff] %v3995_v10 }
  0x53   : > { %936 = vmatpush.msrb.mxu2 %v3170_v17  ;;  %958 = vmatpush.msrb.mxu3 %v3238_v18  ;;  %v230_v11 = vld [vmem:[%s3847_s6 + $0x28] sm:$0xff]  ;;  %v4015_v18 = vmax.f32 %v232_v12, 0.0  ;;  %v3203_v12 = vld [vmem:[%s7106_s1 + $0xe70] sm:$0xff] }
  0x54   : > { %891 = vmatpush.msrb.mxu0 %v3038_v19  ;;  %913 = vmatpush.msrb.mxu1 %v3106_v20  ;;  %v4006_v15 = vmax.f32 %v230_v11, 0.0  ;;  %v3062_v16 = vld [vmem:[%s7106_s1 + $0xa08] sm:$0xff]  ;;  %v3055_v19 = vld [vmem:[%s7106_s1 + $0x9d0] sm:$0xff] }
  0x55   : > { %937 = vmatpush.msrb.mxu2 %v3166_v21  ;;  %959 = vmatpush.msrb.mxu3 %v3234_v22  ;;  %v3190_v17 = vld [vmem:[%s7106_s1 + $0xe08] sm:$0xff]  ;;  %v3123_v20 = vld [vmem:[%s7106_s1 + $0xbf0] sm:$0xff]  ;;  %264 = vst [vmem:[#allocation2 + $0x38] sm:$0xff] %v4015_v18 }
  0x56   : > { %892 = vmatpush.msrb.mxu0 %v3034_v23  ;;  %914 = vmatpush.msrb.mxu1 %v3102_v24  ;;  %262 = vst [vmem:[#allocation2 + $0x20] sm:$0xff] %v4006_v15  ;;  %v3183_v21 = vld [vmem:[%s7106_s1 + $0xdd0] sm:$0xff] }
  0x57   : > { %938 = vmatpush.msrb.mxu2 %v3162_v25  ;;  %960 = vmatpush.msrb.mxu3 %v3230_v26  ;;  %v3251_v22 = vld [vmem:[%s7106_s1 + $0xff0] sm:$0xff] }
  0x58   : > { %893 = vmatpush.msrb.mxu0 %v3030_v29  ;;  %915 = vmatpush.msrb.mxu1 %v3098_v30  ;;  %v3051_v23 = vld [vmem:[%s7106_s1 + $0x9b0] sm:$0xff] }
  0x59   : > { %939 = vmatpush.msrb.mxu2 %v3158_v31  ;;  %961 = vmatpush.msrb.mxu3 %v3226_v33  ;;  %v3119_v24 = vld [vmem:[%s7106_s1 + $0xbd0] sm:$0xff] }
  0x5a   : > { %894 = vmatpush.msrb.mxu0 %v3026_v37  ;;  %916 = vmatpush.msrb.mxu1 %v3094_v38  ;;  %v3179_v25 = vld [vmem:[%s7106_s1 + $0xdb0] sm:$0xff] }
  0x5b   : > { %940 = vmatpush.msrb.mxu2 %v3154_v40  ;;  %962 = vmatpush.msrb.mxu3 %v3222_v41  ;;  %v3247_v26 = vld [vmem:[%s7106_s1 + $0xfd0] sm:$0xff] }
  0x5c   : > { %895 = vmatpush.msrb.mxu0 %v3022_v43  ;;  %917 = vmatpush.msrb.mxu1 %v3090_v44  ;;  %v3175_v29 = vld [vmem:[%s7106_s1 + $0xd90] sm:$0xff] }
  0x5d   : > { %941 = vmatpush.msrb.mxu2 %v3150_v45  ;;  %963 = vmatpush.msrb.mxu3 %v3218_v46  ;;  %v3243_v30 = vld [vmem:[%s7106_s1 + $0xfb0] sm:$0xff] }
  0x5e   : > { %896 = vmatpush.msrb.mxu0 %v3018_v47  ;;  %918 = vmatpush.msrb.mxu1 %v3086_v48  ;;  %v3043_v31 = vld [vmem:[%s7106_s1 + $0x970] sm:$0xff] }
  0x5f   : > { %942 = vmatpush.msrb.mxu2 %v3146_v49  ;;  %964 = vmatpush.msrb.mxu3 %v3214_v50  ;;  %v3111_v33 = vld [vmem:[%s7106_s1 + $0xb90] sm:$0xff] }
  0x60   : > { %897 = vmatpush.msrb.mxu0 %v3014_v51  ;;  %919 = vmatpush.msrb.mxu1 %v3082_v52  ;;  %v3039_v37 = vld [vmem:[%s7106_s1 + $0x950] sm:$0xff] }
  0x61   : > { %943 = vmatpush.msrb.mxu2 %v3142_v53  ;;  %965 = vmatpush.msrb.mxu3 %v3210_v54  ;;  %v3107_v38 = vld [vmem:[%s7106_s1 + $0xb70] sm:$0xff] }
  0x62   : > { %898 = vmatpush.msrb.mxu0 %v3010_v55  ;;  %920 = vmatpush.msrb.mxu1 %v3078_v56  ;;  %v3167_v40 = vld [vmem:[%s7106_s1 + $0xd50] sm:$0xff] }
  0x63   : > { %944 = vmatpush.msrb.mxu2 %v3138_v57  ;;  %966 = vmatpush.msrb.mxu3 %v3206_v58  ;;  %v3235_v41 = vld [vmem:[%s7106_s1 + $0xf70] sm:$0xff] }
  0x64   : > { %899 = vmatpush.msrb.mxu0 %v3006_v59  ;;  %921 = vmatpush.msrb.mxu1 %v3074_v60  ;;  %v3035_v43 = vld [vmem:[%s7106_s1 + $0x930] sm:$0xff] }
  0x65   : > { %945 = vmatpush.msrb.mxu2 %v3134_v61  ;;  %967 = vmatpush.msrb.mxu3 %v3202_v62  ;;  %v3103_v44 = vld [vmem:[%s7106_s1 + $0xb50] sm:$0xff] }
  0x66   : > { %900 = vmatpush.msrb.mxu0 %v3002_v63  ;;  %922 = vmatpush.msrb.mxu1 %v3070_v0  ;;  %v3163_v45 = vld [vmem:[%s7106_s1 + $0xd30] sm:$0xff] }
  0x67   : > { %946 = vmatpush.msrb.mxu2 %v3130_v1  ;;  %968 = vmatpush.msrb.mxu3 %v3198_v2  ;;  %v3231_v46 = vld [vmem:[%s7106_s1 + $0xf50] sm:$0xff] }
  0x68   : > { %901 = vmatpush.msrb.mxu0 %v2998_v3  ;;  %923 = vmatpush.msrb.mxu1 %v3066_v4  ;;  %v3031_v47 = vld [vmem:[%s7106_s1 + $0x910] sm:$0xff] }
  0x69   : > { %947 = vmatpush.msrb.mxu2 %v3126_v7  ;;  %969 = vmatpush.msrb.mxu3 %v3194_v8  ;;  %v3099_v48 = vld [vmem:[%s7106_s1 + $0xb30] sm:$0xff] }
  0x6a   : > { %810 = vmatmul.f32.vlgmr.msra.gmra.mxu0 %v3878_v32  ;;  %856 = vmatmul.f32.vlgmr.msra.gmra.mxu2 %v3883_v34  ;;  %v3159_v49 = vld [vmem:[%s7106_s1 + $0xd10] sm:$0xff] }
  0x6b   : > { %978 = vmatpush.msra.mxu0 %v3059_v13  ;;  %1024 = vmatpush.msra.mxu2 %v3187_v14  ;;  %v3227_v50 = vld [vmem:[%s7106_s1 + $0xf30] sm:$0xff] }
  0x6c   : > { %924 = vmatpush.msrb.mxu1 %v3062_v16  ;;  %970 = vmatpush.msrb.mxu3 %v3190_v17  ;;  %v3027_v51 = vld [vmem:[%s7106_s1 + $0x8f0] sm:$0xff] }
  0x6d   : > { %833 = vmatmul.f32.vlgmr.msra.gmra.mxu1 %v3894_v39  ;;  %879 = vmatmul.f32.vlgmr.msra.gmra.mxu3 %v3903_v42  ;;  %v3095_v52 = vld [vmem:[%s7106_s1 + $0xb10] sm:$0xff] }
  0x6e   : > { %979 = vmatpush.msra.mxu0 %v3055_v19  ;;  %1001 = vmatpush.msra.mxu1 %v3123_v20  ;;  %v3155_v53 = vld [vmem:[%s7106_s1 + $0xcf0] sm:$0xff] }
  0x6f   : > { %1025 = vmatpush.msra.mxu2 %v3183_v21  ;;  %1047 = vmatpush.msra.mxu3 %v3251_v22  ;;  %v3223_v54 = vld [vmem:[%s7106_s1 + $0xf10] sm:$0xff] }
  0x70   : > { %980 = vmatpush.msra.mxu0 %v3051_v23  ;;  %1002 = vmatpush.msra.mxu1 %v3119_v24  ;;  %v3023_v55 = vld [vmem:[%s7106_s1 + $0x8d0] sm:$0xff]  ;;  %v3060_v23 = vld [vmem:[%s7106_s1 + $0x9f8] sm:$0xff] }
  0x71   : > { %1026 = vmatpush.msra.mxu2 %v3179_v25  ;;  %1048 = vmatpush.msra.mxu3 %v3247_v26  ;;  %v3091_v56 = vld [vmem:[%s7106_s1 + $0xaf0] sm:$0xff]  ;;  %v3188_v24 = vld [vmem:[%s7106_s1 + $0xdf8] sm:$0xff] }
  0x72   : > { %981 = vmatpush.msra.mxu0 %v3047_v27  ;;  %1003 = vmatpush.msra.mxu1 %v3115_v28  ;;  %v3151_v57 = vld [vmem:[%s7106_s1 + $0xcd0] sm:$0xff]  ;;  %v3056_v27 = vld [vmem:[%s7106_s1 + $0x9d8] sm:$0xff] }
  0x73   : > { %1027 = vmatpush.msra.mxu2 %v3175_v29  ;;  %1049 = vmatpush.msra.mxu3 %v3243_v30  ;;  %v3219_v58 = vld [vmem:[%s7106_s1 + $0xef0] sm:$0xff]  ;;  %v3124_v28 = vld [vmem:[%s7106_s1 + $0xbf8] sm:$0xff] }
  0x74   : > { %982 = vmatpush.msra.mxu0 %v3043_v31  ;;  %1004 = vmatpush.msra.mxu1 %v3111_v33  ;;  %v3019_v59 = vld [vmem:[%s7106_s1 + $0x8b0] sm:$0xff]  ;;  %v3184_v29 = vld [vmem:[%s7106_s1 + $0xdd8] sm:$0xff] }
  0x75   : > { %1028 = vmatpush.msra.mxu2 %v3171_v35  ;;  %1050 = vmatpush.msra.mxu3 %v3239_v36  ;;  %v3087_v60 = vld [vmem:[%s7106_s1 + $0xad0] sm:$0xff]  ;;  %v3252_v30 = vld [vmem:[%s7106_s1 + $0xff8] sm:$0xff] }
  0x76   : > { %983 = vmatpush.msra.mxu0 %v3039_v37  ;;  %1005 = vmatpush.msra.mxu1 %v3107_v38  ;;  %v3147_v61 = vld [vmem:[%s7106_s1 + $0xcb0] sm:$0xff]  ;;  %v3052_v31 = vld [vmem:[%s7106_s1 + $0x9b8] sm:$0xff] }
  0x77   : > { %1029 = vmatpush.msra.mxu2 %v3167_v40  ;;  %1051 = vmatpush.msra.mxu3 %v3235_v41  ;;  %v3215_v62 = vld [vmem:[%s7106_s1 + $0xed0] sm:$0xff]  ;;  %v3120_v33 = vld [vmem:[%s7106_s1 + $0xbd8] sm:$0xff] }
  0x78   : > { %984 = vmatpush.msra.mxu0 %v3035_v43  ;;  %1006 = vmatpush.msra.mxu1 %v3103_v44  ;;  %v3015_v63 = vld [vmem:[%s7106_s1 + $0x890] sm:$0xff]  ;;  %v3180_v35 = vld [vmem:[%s7106_s1 + $0xdb8] sm:$0xff] }
  0x79   : > { %1030 = vmatpush.msra.mxu2 %v3163_v45  ;;  %1052 = vmatpush.msra.mxu3 %v3231_v46  ;;  %v3083_v0 = vld [vmem:[%s7106_s1 + $0xab0] sm:$0xff]  ;;  %v3248_v36 = vld [vmem:[%s7106_s1 + $0xfd8] sm:$0xff] }
  0x7a   : > { %985 = vmatpush.msra.mxu0 %v3031_v47  ;;  %1007 = vmatpush.msra.mxu1 %v3099_v48  ;;  %v3143_v1 = vld [vmem:[%s7106_s1 + $0xc90] sm:$0xff]  ;;  %v3048_v37 = vld [vmem:[%s7106_s1 + $0x998] sm:$0xff] }
  0x7b   : > { %1031 = vmatpush.msra.mxu2 %v3159_v49  ;;  %1053 = vmatpush.msra.mxu3 %v3227_v50  ;;  %v3211_v2 = vld [vmem:[%s7106_s1 + $0xeb0] sm:$0xff]  ;;  %v3116_v38 = vld [vmem:[%s7106_s1 + $0xbb8] sm:$0xff] }
  0x7c   : > { %986 = vmatpush.msra.mxu0 %v3027_v51  ;;  %1008 = vmatpush.msra.mxu1 %v3095_v52  ;;  %v3011_v3 = vld [vmem:[%s7106_s1 + $0x870] sm:$0xff]  ;;  %v3176_v40 = vld [vmem:[%s7106_s1 + $0xd98] sm:$0xff] }
  0x7d   : > { %1032 = vmatpush.msra.mxu2 %v3155_v53  ;;  %1054 = vmatpush.msra.mxu3 %v3223_v54  ;;  %v3079_v4 = vld [vmem:[%s7106_s1 + $0xa90] sm:$0xff]  ;;  %v3244_v41 = vld [vmem:[%s7106_s1 + $0xfb8] sm:$0xff] }
  0x7e   : > { %987 = vmatpush.msra.mxu0 %v3023_v55  ;;  %1009 = vmatpush.msra.mxu1 %v3091_v56  ;;  %v3007_v7 = vld [vmem:[%s7106_s1 + $0x850] sm:$0xff]  ;;  %v3044_v43 = vld [vmem:[%s7106_s1 + $0x978] sm:$0xff] }
  0x7f   : > { %1033 = vmatpush.msra.mxu2 %v3151_v57  ;;  %1055 = vmatpush.msra.mxu3 %v3219_v58  ;;  %v3075_v8 = vld [vmem:[%s7106_s1 + $0xa70] sm:$0xff]  ;;  %v3112_v44 = vld [vmem:[%s7106_s1 + $0xb98] sm:$0xff] }
  0x80   : > { %988 = vmatpush.msra.mxu0 %v3019_v59  ;;  %1010 = vmatpush.msra.mxu1 %v3087_v60  ;;  %v3135_v11 = vld [vmem:[%s7106_s1 + $0xc50] sm:$0xff]  ;;  %v3172_v45 = vld [vmem:[%s7106_s1 + $0xd78] sm:$0xff] }
  0x81   : > { %1034 = vmatpush.msra.mxu2 %v3147_v61  ;;  %1056 = vmatpush.msra.mxu3 %v3215_v62  ;;  %v3003_v13 = vld [vmem:[%s7106_s1 + $0x830] sm:$0xff]  ;;  %v3240_v46 = vld [vmem:[%s7106_s1 + $0xf98] sm:$0xff] }
  0x82   : > { %989 = vmatpush.msra.mxu0 %v3015_v63  ;;  %1011 = vmatpush.msra.mxu1 %v3083_v0  ;;  %v3071_v14 = vld [vmem:[%s7106_s1 + $0xa50] sm:$0xff]  ;;  %v3040_v47 = vld [vmem:[%s7106_s1 + $0x958] sm:$0xff] }
  0x83   : > { %1035 = vmatpush.msra.mxu2 %v3143_v1  ;;  %1057 = vmatpush.msra.mxu3 %v3211_v2  ;;  %v3131_v16 = vld [vmem:[%s7106_s1 + $0xc30] sm:$0xff]  ;;  %v3108_v48 = vld [vmem:[%s7106_s1 + $0xb78] sm:$0xff] }
  0x84   : > { %813 = vmatmul.f32.gmra.mxu0 %v3993_v9  ;;  %859 = vmatmul.f32.gmra.mxu2 %v3995_v10  ;;  %v3199_v17 = vld [vmem:[%s7106_s1 + $0xe50] sm:$0xff]  ;;  %v3168_v49 = vld [vmem:[%s7106_s1 + $0xd58] sm:$0xff] }
  0x85   : > { %990 = vmatpush.msra.mxu0 %v3011_v3  ;;  %1012 = vmatpush.msra.mxu1 %v3079_v4  ;;  %v2999_v19 = vld [vmem:[%s7106_s1 + $0x810] sm:$0xff]  ;;  %v3236_v50 = vld [vmem:[%s7106_s1 + $0xf78] sm:$0xff] }
  0x86   : > { %1036 = vmatpush.msra.mxu2 %v3139_v5  ;;  %1058 = vmatpush.msra.mxu3 %v3207_v6  ;;  %v3067_v20 = vld [vmem:[%s7106_s1 + $0xa30] sm:$0xff]  ;;  %v3036_v51 = vld [vmem:[%s7106_s1 + $0x938] sm:$0xff] }
  0x87   : > { %836 = vmatmul.f32.gmra.mxu1 %v4006_v15  ;;  %882 = vmatmul.f32.gmra.mxu3 %v4015_v18  ;;  %v3127_v21 = vld [vmem:[%s7106_s1 + $0xc10] sm:$0xff]  ;;  %v3104_v52 = vld [vmem:[%s7106_s1 + $0xb58] sm:$0xff] }
  0x88   : > { %991 = vmatpush.msra.mxu0 %v3007_v7  ;;  %1013 = vmatpush.msra.mxu1 %v3075_v8  ;;  %v3195_v22 = vld [vmem:[%s7106_s1 + $0xe30] sm:$0xff]  ;;  %v3164_v53 = vld [vmem:[%s7106_s1 + $0xd38] sm:$0xff] }
  0x89   : > { %1037 = vmatpush.msra.mxu2 %v3135_v11  ;;  %1059 = vmatpush.msra.mxu3 %v3203_v12  ;;  %v3063_v25 = vld [vmem:[%s7106_s1 + $0xa10] sm:$0xff]  ;;  %v3232_v54 = vld [vmem:[%s7106_s1 + $0xf58] sm:$0xff] }
  0x8a   : > { %992 = vmatpush.msra.mxu0 %v3003_v13  ;;  %1014 = vmatpush.msra.mxu1 %v3071_v14  ;;  %v3191_v26 = vld [vmem:[%s7106_s1 + $0xe10] sm:$0xff]  ;;  %v3032_v55 = vld [vmem:[%s7106_s1 + $0x918] sm:$0xff] }
  0x8b   : > { %1038 = vmatpush.msra.mxu2 %v3131_v16  ;;  %1060 = vmatpush.msra.mxu3 %v3199_v17  ;;  %v3100_v56 = vld [vmem:[%s7106_s1 + $0xb38] sm:$0xff] }
  0x8c   : > { %993 = vmatpush.msra.mxu0 %v2999_v19  ;;  %1015 = vmatpush.msra.mxu1 %v3067_v20  ;;  %v3160_v57 = vld [vmem:[%s7106_s1 + $0xd18] sm:$0xff] }
  0x8d   : > { %1039 = vmatpush.msra.mxu2 %v3127_v21  ;;  %1061 = vmatpush.msra.mxu3 %v3195_v22  ;;  %v3228_v58 = vld [vmem:[%s7106_s1 + $0xf38] sm:$0xff] }
  0x8e   : > { %902 = vmatmul.f32.vlgmr.msrb.gmra.mxu0 %v3878_v32  ;;  %948 = vmatmul.f32.vlgmr.msrb.gmra.mxu2 %v3883_v34  ;;  %v3028_v59 = vld [vmem:[%s7106_s1 + $0x8f8] sm:$0xff] }
  0x8f   : > { %1070 = vmatpush.msrb.mxu0 %v3060_v23  ;;  %1116 = vmatpush.msrb.mxu2 %v3188_v24  ;;  %v3096_v60 = vld [vmem:[%s7106_s1 + $0xb18] sm:$0xff] }
  0x90   : > { %1016 = vmatpush.msra.mxu1 %v3063_v25  ;;  %1062 = vmatpush.msra.mxu3 %v3191_v26  ;;  %v3156_v61 = vld [vmem:[%s7106_s1 + $0xcf8] sm:$0xff] }
  0x91   : > { %925 = vmatmul.f32.vlgmr.msrb.gmra.mxu1 %v3894_v39  ;;  %971 = vmatmul.f32.vlgmr.msrb.gmra.mxu3 %v3903_v42  ;;  %v3224_v62 = vld [vmem:[%s7106_s1 + $0xf18] sm:$0xff] }
  0x92   : > { %1071 = vmatpush.msrb.mxu0 %v3056_v27  ;;  %1093 = vmatpush.msrb.mxu1 %v3124_v28  ;;  %v3024_v63 = vld [vmem:[%s7106_s1 + $0x8d8] sm:$0xff] }
  0x93   : > { %1117 = vmatpush.msrb.mxu2 %v3184_v29  ;;  %1139 = vmatpush.msrb.mxu3 %v3252_v30  ;;  %v3092_v0 = vld [vmem:[%s7106_s1 + $0xaf8] sm:$0xff] }
  0x94   : > { %1072 = vmatpush.msrb.mxu0 %v3052_v31  ;;  %1094 = vmatpush.msrb.mxu1 %v3120_v33  ;;  %v3152_v1 = vld [vmem:[%s7106_s1 + $0xcd8] sm:$0xff]  ;;  %v337_v31 = vld [vmem:[%s7106_s1 + $0x1e0] sm:$0xff] }
  0x95   : > { %1118 = vmatpush.msrb.mxu2 %v3180_v35  ;;  %1140 = vmatpush.msrb.mxu3 %v3248_v36  ;;  %v3220_v2 = vld [vmem:[%s7106_s1 + $0xef8] sm:$0xff]  ;;  %v465_v33 = vld [vmem:[%s7106_s1 + $0x5e0] sm:$0xff] }
  0x96   : > { %1073 = vmatpush.msrb.mxu0 %v3048_v37  ;;  %1095 = vmatpush.msrb.mxu1 %v3116_v38  ;;  %v3020_v3 = vld [vmem:[%s7106_s1 + $0x8b8] sm:$0xff]  ;;  %v333_v37 = vld [vmem:[%s7106_s1 + $0x1c0] sm:$0xff] }
  0x97   : > { %1119 = vmatpush.msrb.mxu2 %v3176_v40  ;;  %1141 = vmatpush.msrb.mxu3 %v3244_v41  ;;  %v3088_v4 = vld [vmem:[%s7106_s1 + $0xad8] sm:$0xff]  ;;  %v401_v38 = vld [vmem:[%s7106_s1 + $0x3e0] sm:$0xff] }
  0x98   : > { %1074 = vmatpush.msrb.mxu0 %v3044_v43  ;;  %1096 = vmatpush.msrb.mxu1 %v3112_v44  ;;  %v3148_v5 = vld [vmem:[%s7106_s1 + $0xcb8] sm:$0xff]  ;;  %v461_v40 = vld [vmem:[%s7106_s1 + $0x5c0] sm:$0xff] }
  0x99   : > { %1120 = vmatpush.msrb.mxu2 %v3172_v45  ;;  %1142 = vmatpush.msrb.mxu3 %v3240_v46  ;;  %v3216_v6 = vld [vmem:[%s7106_s1 + $0xed8] sm:$0xff]  ;;  %v529_v41 = vld [vmem:[%s7106_s1 + $0x7e0] sm:$0xff] }
  0x9a   : > { %1075 = vmatpush.msrb.mxu0 %v3040_v47  ;;  %1097 = vmatpush.msrb.mxu1 %v3108_v48  ;;  %v3016_v7 = vld [vmem:[%s7106_s1 + $0x898] sm:$0xff]  ;;  %v329_v43 = vld [vmem:[%s7106_s1 + $0x1a0] sm:$0xff] }
  0x9b   : > { %1121 = vmatpush.msrb.mxu2 %v3168_v49  ;;  %1143 = vmatpush.msrb.mxu3 %v3236_v50  ;;  %v3084_v8 = vld [vmem:[%s7106_s1 + $0xab8] sm:$0xff]  ;;  %v397_v44 = vld [vmem:[%s7106_s1 + $0x3c0] sm:$0xff] }
  0x9c   : > { %1076 = vmatpush.msrb.mxu0 %v3036_v51  ;;  %1098 = vmatpush.msrb.mxu1 %v3104_v52  ;;  %v3144_v11 = vld [vmem:[%s7106_s1 + $0xc98] sm:$0xff]  ;;  %v457_v45 = vld [vmem:[%s7106_s1 + $0x5a0] sm:$0xff] }
  0x9d   : > { %1122 = vmatpush.msrb.mxu2 %v3164_v53  ;;  %1144 = vmatpush.msrb.mxu3 %v3232_v54  ;;  %v3212_v12 = vld [vmem:[%s7106_s1 + $0xeb8] sm:$0xff]  ;;  %v525_v46 = vld [vmem:[%s7106_s1 + $0x7c0] sm:$0xff] }
  0x9e   : > { %1077 = vmatpush.msrb.mxu0 %v3032_v55  ;;  %1099 = vmatpush.msrb.mxu1 %v3100_v56  ;;  %v3012_v13 = vld [vmem:[%s7106_s1 + $0x878] sm:$0xff]  ;;  %v325_v47 = vld [vmem:[%s7106_s1 + $0x180] sm:$0xff] }
  0x9f   : > { %1123 = vmatpush.msrb.mxu2 %v3160_v57  ;;  %1145 = vmatpush.msrb.mxu3 %v3228_v58  ;;  %v3080_v14 = vld [vmem:[%s7106_s1 + $0xa98] sm:$0xff]  ;;  %v393_v48 = vld [vmem:[%s7106_s1 + $0x3a0] sm:$0xff] }
  0xa0   : > { %1078 = vmatpush.msrb.mxu0 %v3028_v59  ;;  %1100 = vmatpush.msrb.mxu1 %v3096_v60  ;;  %v3140_v16 = vld [vmem:[%s7106_s1 + $0xc78] sm:$0xff]  ;;  %v453_v49 = vld [vmem:[%s7106_s1 + $0x580] sm:$0xff] }
  0xa1   : > { %1124 = vmatpush.msrb.mxu2 %v3156_v61  ;;  %1146 = vmatpush.msrb.mxu3 %v3224_v62  ;;  %v3208_v17 = vld [vmem:[%s7106_s1 + $0xe98] sm:$0xff]  ;;  %v521_v50 = vld [vmem:[%s7106_s1 + $0x7a0] sm:$0xff] }
  0xa2   : > { %1079 = vmatpush.msrb.mxu0 %v3024_v63  ;;  %1101 = vmatpush.msrb.mxu1 %v3092_v0  ;;  %v3008_v19 = vld [vmem:[%s7106_s1 + $0x858] sm:$0xff]  ;;  %v321_v51 = vld [vmem:[%s7106_s1 + $0x160] sm:$0xff] }
  0xa3   : > { %1125 = vmatpush.msrb.mxu2 %v3152_v1  ;;  %1147 = vmatpush.msrb.mxu3 %v3220_v2  ;;  %v3076_v20 = vld [vmem:[%s7106_s1 + $0xa78] sm:$0xff]  ;;  %v389_v52 = vld [vmem:[%s7106_s1 + $0x380] sm:$0xff] }
  0xa4   : > { %1080 = vmatpush.msrb.mxu0 %v3020_v3  ;;  %1102 = vmatpush.msrb.mxu1 %v3088_v4  ;;  %v3136_v21 = vld [vmem:[%s7106_s1 + $0xc58] sm:$0xff]  ;;  %v449_v53 = vld [vmem:[%s7106_s1 + $0x560] sm:$0xff] }
  0xa5   : > { %1126 = vmatpush.msrb.mxu2 %v3148_v5  ;;  %1148 = vmatpush.msrb.mxu3 %v3216_v6  ;;  %v3204_v22 = vld [vmem:[%s7106_s1 + $0xe78] sm:$0xff]  ;;  %v517_v54 = vld [vmem:[%s7106_s1 + $0x780] sm:$0xff] }
  0xa6   : > { %905 = vmatmul.f32.gmra.mxu0 %v3993_v9  ;;  %951 = vmatmul.f32.gmra.mxu2 %v3995_v10  ;;  %v3004_v23 = vld [vmem:[%s7106_s1 + $0x838] sm:$0xff]  ;;  %v317_v55 = vld [vmem:[%s7106_s1 + $0x140] sm:$0xff] }
  0xa7   : > { %1081 = vmatpush.msrb.mxu0 %v3016_v7  ;;  %1103 = vmatpush.msrb.mxu1 %v3084_v8  ;;  %v3072_v24 = vld [vmem:[%s7106_s1 + $0xa58] sm:$0xff]  ;;  %v385_v56 = vld [vmem:[%s7106_s1 + $0x360] sm:$0xff] }
  0xa8   : > { %1127 = vmatpush.msrb.mxu2 %v3144_v11  ;;  %1149 = vmatpush.msrb.mxu3 %v3212_v12  ;;  %v3132_v25 = vld [vmem:[%s7106_s1 + $0xc38] sm:$0xff]  ;;  %v445_v57 = vld [vmem:[%s7106_s1 + $0x540] sm:$0xff] }
  0xa9   : > { %928 = vmatmul.f32.gmra.mxu1 %v4006_v15  ;;  %974 = vmatmul.f32.gmra.mxu3 %v4015_v18  ;;  %v3200_v26 = vld [vmem:[%s7106_s1 + $0xe58] sm:$0xff]  ;;  %v513_v58 = vld [vmem:[%s7106_s1 + $0x760] sm:$0xff] }
  0xaa   : > { %1082 = vmatpush.msrb.mxu0 %v3012_v13  ;;  %1104 = vmatpush.msrb.mxu1 %v3080_v14  ;;  %v3000_v27 = vld [vmem:[%s7106_s1 + $0x818] sm:$0xff]  ;;  %v313_v59 = vld [vmem:[%s7106_s1 + $0x120] sm:$0xff] }
  0xab   : > { %1128 = vmatpush.msrb.mxu2 %v3140_v16  ;;  %1150 = vmatpush.msrb.mxu3 %v3208_v17  ;;  %v3068_v28 = vld [vmem:[%s7106_s1 + $0xa38] sm:$0xff]  ;;  %v381_v60 = vld [vmem:[%s7106_s1 + $0x340] sm:$0xff] }
  0xac   : > { %1083 = vmatpush.msrb.mxu0 %v3008_v19  ;;  %1105 = vmatpush.msrb.mxu1 %v3076_v20  ;;  %v3128_v29 = vld [vmem:[%s7106_s1 + $0xc18] sm:$0xff]  ;;  %v441_v61 = vld [vmem:[%s7106_s1 + $0x520] sm:$0xff] }
  0xad   : > { %1129 = vmatpush.msrb.mxu2 %v3136_v21  ;;  %1151 = vmatpush.msrb.mxu3 %v3204_v22  ;;  %v3196_v30 = vld [vmem:[%s7106_s1 + $0xe38] sm:$0xff]  ;;  %v509_v62 = vld [vmem:[%s7106_s1 + $0x740] sm:$0xff] }
  0xae   : > { %1084 = vmatpush.msrb.mxu0 %v3004_v23  ;;  %1106 = vmatpush.msrb.mxu1 %v3072_v24  ;;  %v3064_v35 = vld [vmem:[%s7106_s1 + $0xa18] sm:$0xff]  ;;  %v309_v63 = vld [vmem:[%s7106_s1 + $0x100] sm:$0xff] }
  0xaf   : > { %1130 = vmatpush.msrb.mxu2 %v3132_v25  ;;  %1152 = vmatpush.msrb.mxu3 %v3200_v26  ;;  %v3192_v36 = vld [vmem:[%s7106_s1 + $0xe18] sm:$0xff]  ;;  %v377_v0 = vld [vmem:[%s7106_s1 + $0x320] sm:$0xff] }
  0xb0   : > { %994 = vmatmul.f32.vlgmr.msra.gmra.mxu0 %v3878_v32  ;;  %1040 = vmatmul.f32.vlgmr.msra.gmra.mxu2 %v3883_v34  ;;  %v437_v1 = vld [vmem:[%s7106_s1 + $0x500] sm:$0xff] }
  0xb1   : > { %1085 = vmatpush.msrb.mxu0 %v3000_v27  ;;  %1107 = vmatpush.msrb.mxu1 %v3068_v28  ;;  %v505_v2 = vld [vmem:[%s7106_s1 + $0x720] sm:$0xff]  ;;  %v265_v27 = vld [vmem:[#allocation2 + $0x30] sm:$0x80]  ;;  %v267_v28 = vld [vmem:[#allocation2 + $0x58] sm:$0x80] }
  0xb2   : > { %1131 = vmatpush.msrb.mxu2 %v3128_v29  ;;  %1153 = vmatpush.msrb.mxu3 %v3196_v30  ;;  %v305_v3 = vld [vmem:[%s7106_s1 + $0xe0] sm:$0xff] }
  0xb3   : > { %1203 = vmatpush.msra.mxu0 %v337_v31  ;;  %1017 = vmatmul.f32.vlgmr.msra.gmra.mxu1 %v3894_v39  ;;  %v373_v4 = vld [vmem:[%s7106_s1 + $0x300] sm:$0xff] }
  0xb4   : > { %1249 = vmatpush.msra.mxu2 %v465_v33  ;;  %1063 = vmatmul.f32.vlgmr.msra.gmra.mxu3 %v3903_v42  ;;  %v433_v5 = vld [vmem:[%s7106_s1 + $0x4e0] sm:$0xff] }
  0xb5   : > { %1108 = vmatpush.msrb.mxu1 %v3064_v35  ;;  %1154 = vmatpush.msrb.mxu3 %v3192_v36  ;;  %v501_v6 = vld [vmem:[%s7106_s1 + $0x700] sm:$0xff]  ;;  %v1175_v35 = vrot.slane %v265_v27, 7  ;;  %v1176_v36 = vrot.slane %v3878_v32, 7  ;;  %v314_v27 = vld [vmem:[%s7106_s1 + $0x128] sm:$0xff] }
  0xb6   : > { %1204 = vmatpush.msra.mxu0 %v333_v37  ;;  %1250 = vmatpush.msra.mxu2 %v461_v40  ;;  %v301_v7 = vld [vmem:[%s7106_s1 + $0xc0] sm:$0xff]  ;;  %v1181_v37 = vrot.slane %v267_v28, 7  ;;  %v382_v28 = vld [vmem:[%s7106_s1 + $0x348] sm:$0xff] }
  0xb7   : > { %1226 = vmatpush.msra.mxu1 %v401_v38  ;;  %1272 = vmatpush.msra.mxu3 %v529_v41  ;;  %v369_v8 = vld [vmem:[%s7106_s1 + $0x2e0] sm:$0xff]  ;;  %v1182_v38 = vrot.slane %v3883_v34, 7  ;;  %v268_v41 = vld [vmem:[#allocation2 + $0x18] sm:$0x80] }
  0xb8   : > { %1205 = vmatpush.msra.mxu0 %v329_v43  ;;  %1251 = vmatpush.msra.mxu2 %v457_v45  ;;  %v429_v11 = vld [vmem:[%s7106_s1 + $0x4c0] sm:$0xff] }
  0xb9   : > { %1227 = vmatpush.msra.mxu1 %v397_v44  ;;  %1273 = vmatpush.msra.mxu3 %v525_v46  ;;  %v497_v12 = vld [vmem:[%s7106_s1 + $0x6e0] sm:$0xff] }
  0xba   : > { %1206 = vmatpush.msra.mxu0 %v325_v47  ;;  %1252 = vmatpush.msra.mxu2 %v453_v49  ;;  %v297_v13 = vld [vmem:[%s7106_s1 + $0xa0] sm:$0xff]  ;;  %v1184_v49 = vrot.slane %v268_v41, 7  ;;  %v370_v41 = vld [vmem:[%s7106_s1 + $0x2e8] sm:$0xff] }
  0xbb   : > { %1228 = vmatpush.msra.mxu1 %v393_v48  ;;  %1274 = vmatpush.msra.mxu3 %v521_v50  ;;  %v365_v14 = vld [vmem:[%s7106_s1 + $0x2c0] sm:$0xff]  ;;  %v1179_v48 = vrot.slane %v3894_v39, 7  ;;  %v1185_v50 = vrot.slane %v3903_v42, 7 }
  0xbc   : > { %997 = vmatmul.f32.gmra.mxu0 %v3993_v9  ;;  %1043 = vmatmul.f32.gmra.mxu2 %v3995_v10  ;;  %v425_v16 = vld [vmem:[%s7106_s1 + $0x4a0] sm:$0xff] }
  0xbd   : > { %1207 = vmatpush.msra.mxu0 %v321_v51  ;;  %1229 = vmatpush.msra.mxu1 %v389_v52  ;;  %v493_v17 = vld [vmem:[%s7106_s1 + $0x6c0] sm:$0xff]  ;;  %v4622_v51 = vsel %vm1174_vm0, %v1175_v35, %v1176_v36  ;;  %v4627_v52 = vsel %vm1174_vm0, %v1181_v37, %v1182_v38  ;;  %v306_v35 = vld [vmem:[%s7106_s1 + $0xe8] sm:$0xff] }
  0xbe   : > { %1253 = vmatpush.msra.mxu2 %v449_v53  ;;  %1275 = vmatpush.msra.mxu3 %v517_v54  ;;  %v293_v19 = vld [vmem:[%s7106_s1 + $0x80] sm:$0xff]  ;;  %v338_v53 = vld [vmem:[%s7106_s1 + $0x1e8] sm:$0xff] }
  0xbf   : > { %1020 = vmatmul.f32.gmra.mxu1 %v4006_v15  ;;  %1066 = vmatmul.f32.gmra.mxu3 %v4015_v18  ;;  %v361_v20 = vld [vmem:[%s7106_s1 + $0x2a0] sm:$0xff]  ;;  %v466_v54 = vld [vmem:[%s7106_s1 + $0x5e8] sm:$0xff] }
  0xc0   : > { %1208 = vmatpush.msra.mxu0 %v317_v55  ;;  %1230 = vmatpush.msra.mxu1 %v385_v56  ;;  %v421_v21 = vld [vmem:[%s7106_s1 + $0x480] sm:$0xff]  ;;  %v434_v37 = vld [vmem:[%s7106_s1 + $0x4e8] sm:$0xff] }
  0xc1   : > { %1254 = vmatpush.msra.mxu2 %v445_v57  ;;  %1276 = vmatpush.msra.mxu3 %v513_v58  ;;  %v489_v22 = vld [vmem:[%s7106_s1 + $0x6a0] sm:$0xff]  ;;  %v4651_v58 = vsel %vm1174_vm0, %v1184_v49, %v1185_v50  ;;  %v422_v49 = vld [vmem:[%s7106_s1 + $0x488] sm:$0xff] }
  0xc2   : > { %1209 = vmatpush.msra.mxu0 %v313_v59  ;;  %1231 = vmatpush.msra.mxu1 %v381_v60  ;;  %v289_v23 = vld [vmem:[%s7106_s1 + $0x60] sm:$0xff]  ;;  %v275_v60 = vld [vmem:[#allocation2 + $0x10] sm:$0x7f] }
  0xc3   : > { %1255 = vmatpush.msra.mxu2 %v441_v61  ;;  %1277 = vmatpush.msra.mxu3 %v509_v62  ;;  %v357_v24 = vld [vmem:[%s7106_s1 + $0x280] sm:$0xff]  ;;  %v334_v61 = vld [vmem:[%s7106_s1 + $0x1c8] sm:$0xff] }
  0xc4   : > { %1210 = vmatpush.msra.mxu0 %v309_v63  ;;  %1232 = vmatpush.msra.mxu1 %v377_v0  ;;  %v417_v25 = vld [vmem:[%s7106_s1 + $0x460] sm:$0xff]  ;;  %v402_v62 = vld [vmem:[%s7106_s1 + $0x3e8] sm:$0xff] }
  0xc5   : > { %1256 = vmatpush.msra.mxu2 %v437_v1  ;;  %1278 = vmatpush.msra.mxu3 %v505_v2  ;;  %v485_v26 = vld [vmem:[%s7106_s1 + $0x680] sm:$0xff]  ;;  %v462_v63 = vld [vmem:[%s7106_s1 + $0x5c8] sm:$0xff] }
  0xc6   : > { %1086 = vmatmul.f32.vlgmr.msrb.gmra.mxu0 %v3878_v32  ;;  %1132 = vmatmul.f32.vlgmr.msrb.gmra.mxu2 %v3883_v34  ;;  %v285_v29 = vld [vmem:[%s7106_s1 + $0x40] sm:$0xff]  ;;  %v530_v0 = vld [vmem:[%s7106_s1 + $0x7e8] sm:$0xff] }
  0xc7   : > { %1211 = vmatpush.msra.mxu0 %v305_v3  ;;  %1233 = vmatpush.msra.mxu1 %v373_v4  ;;  %v353_v30 = vld [vmem:[%s7106_s1 + $0x260] sm:$0xff]  ;;  %v330_v1 = vld [vmem:[%s7106_s1 + $0x1a8] sm:$0xff]  ;;  %v1191_v4 = vrot.slane %v275_v60, 7 }
  0xc8   : > { %1257 = vmatpush.msra.mxu2 %v433_v5  ;;  %1279 = vmatpush.msra.mxu3 %v501_v6  ;;  %v413_v31 = vld [vmem:[%s7106_s1 + $0x440] sm:$0xff]  ;;  %v398_v2 = vld [vmem:[%s7106_s1 + $0x3c8] sm:$0xff]  ;;  %v276_v6 = vld [vmem:[#allocation2 + $0x38] sm:$0x7f] }
  0xc9   : > { %1109 = vmatmul.f32.vlgmr.msrb.gmra.mxu1 %v3894_v39  ;;  %1155 = vmatmul.f32.vlgmr.msrb.gmra.mxu3 %v3903_v42  ;;  %v349_v33 = vld [vmem:[%s7106_s1 + $0x240] sm:$0xff]  ;;  %v450_v32 = vld [vmem:[%s7106_s1 + $0x568] sm:$0xff] }
  0xca   : > { %1212 = vmatpush.msra.mxu0 %v301_v7  ;;  %1234 = vmatpush.msra.mxu1 %v369_v8  ;;  %v266_v40 = vld [vmem:[#allocation2] sm:$0x80]  ;;  %v273_v59 = vld [vmem:[#allocation2 + $0x40] sm:$0x7f]  ;;  %v458_v7 = vld [vmem:[%s7106_s1 + $0x5a8] sm:$0xff] }
  0xcb   : > { %1258 = vmatpush.msra.mxu2 %v429_v11  ;;  %1280 = vmatpush.msra.mxu3 %v497_v12  ;;  %v409_v43 = vld [vmem:[%s7106_s1 + $0x420] sm:$0xff]  ;;  %v1178_v47 = vrot.slane %v266_v40, 7  ;;  %v1187_v3 = vrot.slane %v273_v59, 7  ;;  %v526_v8 = vld [vmem:[%s7106_s1 + $0x7c8] sm:$0xff] }
  0xcc   : > { %1213 = vmatpush.msra.mxu0 %v297_v13  ;;  %1235 = vmatpush.msra.mxu1 %v365_v14  ;;  %v477_v44 = vld [vmem:[%s7106_s1 + $0x640] sm:$0xff]  ;;  %v326_v11 = vld [vmem:[%s7106_s1 + $0x188] sm:$0xff] }
  0xcd   : > { %1259 = vmatpush.msra.mxu2 %v425_v16  ;;  %1281 = vmatpush.msra.mxu3 %v493_v17  ;;  %v405_v45 = vld [vmem:[%s7106_s1 + $0x400] sm:$0xff]  ;;  %v4646_v57 = vsel %vm1174_vm0, %v1178_v47, %v1179_v48  ;;  %v394_v12 = vld [vmem:[%s7106_s1 + $0x3a8] sm:$0xff]  ;;  %v1193_v17 = vrot.slane %v276_v6, 7 }
  0xce   : > { %1214 = vmatpush.msra.mxu0 %v293_v19  ;;  %1236 = vmatpush.msra.mxu1 %v361_v20  ;;  %v473_v46 = vld [vmem:[%s7106_s1 + $0x620] sm:$0xff]  ;;  %v454_v13 = vld [vmem:[%s7106_s1 + $0x588] sm:$0xff]  ;;  %v4694_v19 = vsel %vm1174_vm0, %v1176_v36, %v1187_v3  ;;  %v4699_v20 = vsel %vm1174_vm0, %v1182_v38, %v1191_v4 }
  0xcf   : > { %1260 = vmatpush.msra.mxu2 %v421_v21  ;;  %1282 = vmatpush.msra.mxu3 %v489_v22  ;;  %v341_v55 = vld [vmem:[%s7106_s1 + $0x200] sm:$0xff]  ;;  %v522_v14 = vld [vmem:[%s7106_s1 + $0x7a8] sm:$0xff] }
  0xd0   : > { %1089 = vmatmul.f32.gmra.mxu0 %v3993_v9  ;;  %1135 = vmatmul.f32.gmra.mxu2 %v3995_v10  ;;  %v481_v9 = vld [vmem:[%s7106_s1 + $0x660] sm:$0xff]  ;;  %v322_v21 = vld [vmem:[%s7106_s1 + $0x168] sm:$0xff] }
  0xd1   : > { %1215 = vmatpush.msra.mxu0 %v289_v23  ;;  %1237 = vmatpush.msra.mxu1 %v357_v24  ;;  %v281_v10 = vld [vmem:[%s7106_s1 + $0x20] sm:$0xff]  ;;  %v390_v22 = vld [vmem:[%s7106_s1 + $0x388] sm:$0xff]  ;;  %v4723_v24 = vsel %vm1174_vm0, %v1185_v50, %v1193_v17  ;;  %v531_v17 = vld [vmem:[%s7106_s1 + $0x7f0] sm:$0xff] }
  0xd2   : > { %1261 = vmatpush.msra.mxu2 %v417_v25  ;;  %1283 = vmatpush.msra.mxu3 %v485_v26  ;;  %v469_v56 = vld [vmem:[%s7106_s1 + $0x600] sm:$0xff]  ;;  %v518_v34 = vld [vmem:[%s7106_s1 + $0x788] sm:$0xff] }
  0xd3   : > { %1112 = vmatmul.f32.gmra.mxu1 %v4006_v15  ;;  %1158 = vmatmul.f32.gmra.mxu3 %v4015_v18  ;;  %v277_v15 = vld [vmem:[%s7106_s1] sm:$0xff]  ;;  %v318_v25 = vld [vmem:[%s7106_s1 + $0x148] sm:$0xff] }
  0xd4   : > { %1216 = vmatpush.msra.mxu0 %v285_v29  ;;  %1238 = vmatpush.msra.mxu1 %v353_v30  ;;  %v345_v18 = vld [vmem:[%s7106_s1 + $0x220] sm:$0xff]  ;;  %v386_v26 = vld [vmem:[%s7106_s1 + $0x368] sm:$0xff] }
  0xd5   : > { %1262 = vmatpush.msra.mxu2 %v413_v31  ;;  %1284 = vmatpush.msra.mxu3 %v481_v9  ;;  %v274_v5 = vld [vmem:[#allocation2 + $0x20] sm:$0x7f]  ;;  %v446_v39 = vld [vmem:[%s7106_s1 + $0x548] sm:$0xff] }
  0xd6   : > { %1217 = vmatpush.msra.mxu0 %v281_v10  ;;  %1239 = vmatpush.msra.mxu1 %v349_v33  ;;  %v1189_v16 = vrot.slane %v274_v5, 7  ;;  %v514_v42 = vld [vmem:[%s7106_s1 + $0x768] sm:$0xff] }
  0xd7   : > { %1263 = vmatpush.msra.mxu2 %v409_v43  ;;  %1285 = vmatpush.msra.mxu3 %v477_v44  ;;  %v442_v29 = vld [vmem:[%s7106_s1 + $0x528] sm:$0xff] }
  0xd8   : > { %1218 = vmatpush.msra.mxu0 %v277_v15  ;;  %1240 = vmatpush.msra.mxu1 %v345_v18  ;;  %v4718_v23 = vsel %vm1174_vm0, %v1179_v48, %v1189_v16  ;;  %v510_v30 = vld [vmem:[%s7106_s1 + $0x748] sm:$0xff]  ;;  %v463_v16 = vld [vmem:[%s7106_s1 + $0x5d0] sm:$0xff] }
  0xd9   : > { %1264 = vmatpush.msra.mxu2 %v405_v45  ;;  %1286 = vmatpush.msra.mxu3 %v473_v46  ;;  %v310_v31 = vld [vmem:[%s7106_s1 + $0x108] sm:$0xff] }
  0xda   : > { %1219 = vmatmul.f32.vlgmr.msra.gmra.mxu0 %v4622_v51  ;;  %1265 = vmatmul.f32.vlgmr.msra.gmra.mxu2 %v4627_v52  ;;  %v378_v9 = vld [vmem:[%s7106_s1 + $0x328] sm:$0xff] }
  0xdb   : > { %1295 = vmatpush.msrb.mxu0 %v338_v53  ;;  %1341 = vmatpush.msrb.mxu2 %v466_v54  ;;  %v438_v10 = vld [vmem:[%s7106_s1 + $0x508] sm:$0xff] }
  0xdc   : > { %1241 = vmatpush.msra.mxu1 %v341_v55  ;;  %1287 = vmatpush.msra.mxu3 %v469_v56  ;;  %v506_v33 = vld [vmem:[%s7106_s1 + $0x728] sm:$0xff] }
  0xdd   : > { %1242 = vmatmul.f32.vlgmr.msra.gmra.mxu1 %v4646_v57  ;;  %1288 = vmatmul.f32.vlgmr.msra.gmra.mxu3 %v4651_v58  ;;  %v374_v36 = vld [vmem:[%s7106_s1 + $0x308] sm:$0xff] }
  0xde   : > { %1296 = vmatpush.msrb.mxu0 %v334_v61  ;;  %1318 = vmatpush.msrb.mxu1 %v402_v62  ;;  %v502_v38 = vld [vmem:[%s7106_s1 + $0x708] sm:$0xff] }
  0xdf   : > { %1342 = vmatpush.msrb.mxu2 %v462_v63  ;;  %1364 = vmatpush.msrb.mxu3 %v530_v0  ;;  %v302_v40 = vld [vmem:[%s7106_s1 + $0xc8] sm:$0xff] }
  0xe0   : > { %1297 = vmatpush.msrb.mxu0 %v330_v1  ;;  %1319 = vmatpush.msrb.mxu1 %v398_v2  ;;  %v430_v43 = vld [vmem:[%s7106_s1 + $0x4c8] sm:$0xff] }
  0xe1   : > { %1343 = vmatpush.msrb.mxu2 %v458_v7  ;;  %1365 = vmatpush.msrb.mxu3 %v526_v8  ;;  %v498_v44 = vld [vmem:[%s7106_s1 + $0x6e8] sm:$0xff]  ;;  %v339_v7 = vld [vmem:[%s7106_s1 + $0x1f0] sm:$0xff] }
  0xe2   : > { %1298 = vmatpush.msrb.mxu0 %v326_v11  ;;  %1320 = vmatpush.msrb.mxu1 %v394_v12  ;;  %v298_v15 = vld [vmem:[%s7106_s1 + $0xa8] sm:$0xff]  ;;  %v467_v8 = vld [vmem:[%s7106_s1 + $0x5f0] sm:$0xff] }
  0xe3   : > { %1344 = vmatpush.msrb.mxu2 %v454_v13  ;;  %1366 = vmatpush.msrb.mxu3 %v522_v14  ;;  %v366_v18 = vld [vmem:[%s7106_s1 + $0x2c8] sm:$0xff]  ;;  %v335_v13 = vld [vmem:[%s7106_s1 + $0x1d0] sm:$0xff] }
  0xe4   : > { %1222 = vmatmul.f32.gmra.mxu0 %v4694_v19  ;;  %1268 = vmatmul.f32.gmra.mxu2 %v4699_v20  ;;  %v426_v45 = vld [vmem:[%s7106_s1 + $0x4a8] sm:$0xff]  ;;  %v403_v14 = vld [vmem:[%s7106_s1 + $0x3f0] sm:$0xff] }
  0xe5   : > { %1299 = vmatpush.msrb.mxu0 %v322_v21  ;;  %1321 = vmatpush.msrb.mxu1 %v390_v22  ;;  %v494_v46 = vld [vmem:[%s7106_s1 + $0x6c8] sm:$0xff]  ;;  %v331_v21 = vld [vmem:[%s7106_s1 + $0x1b0] sm:$0xff] }
  0xe6   : > { %1345 = vmatpush.msrb.mxu2 %v450_v32  ;;  %1367 = vmatpush.msrb.mxu3 %v518_v34  ;;  %v294_v47 = vld [vmem:[%s7106_s1 + $0x88] sm:$0xff]  ;;  %v399_v22 = vld [vmem:[%s7106_s1 + $0x3d0] sm:$0xff] }
  0xe7   : > { %1245 = vmatmul.f32.gmra.mxu1 %v4718_v23  ;;  %1291 = vmatmul.f32.gmra.mxu3 %v4723_v24  ;;  %v362_v48 = vld [vmem:[%s7106_s1 + $0x2a8] sm:$0xff]  ;;  %v459_v32 = vld [vmem:[%s7106_s1 + $0x5b0] sm:$0xff] }
  0xe8   : > { %1300 = vmatpush.msrb.mxu0 %v318_v25  ;;  %1322 = vmatpush.msrb.mxu1 %v386_v26  ;;  %v490_v50 = vld [vmem:[%s7106_s1 + $0x6a8] sm:$0xff]  ;;  %v527_v34 = vld [vmem:[%s7106_s1 + $0x7d0] sm:$0xff] }
  0xe9   : > { %1346 = vmatpush.msrb.mxu2 %v446_v39  ;;  %1368 = vmatpush.msrb.mxu3 %v514_v42  ;;  %v290_v53 = vld [vmem:[%s7106_s1 + $0x68] sm:$0xff]  ;;  %v327_v25 = vld [vmem:[%s7106_s1 + $0x190] sm:$0xff] }
  0xea   : > { %1301 = vmatpush.msrb.mxu0 %v314_v27  ;;  %1323 = vmatpush.msrb.mxu1 %v382_v28  ;;  %v358_v54 = vld [vmem:[%s7106_s1 + $0x288] sm:$0xff]  ;;  %v395_v26 = vld [vmem:[%s7106_s1 + $0x3b0] sm:$0xff] }
  0xeb   : > { %1347 = vmatpush.msrb.mxu2 %v442_v29  ;;  %1369 = vmatpush.msrb.mxu3 %v510_v30  ;;  %v418_v55 = vld [vmem:[%s7106_s1 + $0x468] sm:$0xff]  ;;  %v455_v39 = vld [vmem:[%s7106_s1 + $0x590] sm:$0xff] }
  0xec   : > { %1302 = vmatpush.msrb.mxu0 %v310_v31  ;;  %1324 = vmatpush.msrb.mxu1 %v378_v9  ;;  %v486_v56 = vld [vmem:[%s7106_s1 + $0x688] sm:$0xff]  ;;  %v523_v42 = vld [vmem:[%s7106_s1 + $0x7b0] sm:$0xff] }
  0xed   : > { %1348 = vmatpush.msrb.mxu2 %v438_v10  ;;  %1370 = vmatpush.msrb.mxu3 %v506_v33  ;;  %v286_v59 = vld [vmem:[%s7106_s1 + $0x48] sm:$0xff]  ;;  %v323_v27 = vld [vmem:[%s7106_s1 + $0x170] sm:$0xff] }
  0xee   : > { %1303 = vmatpush.msrb.mxu0 %v306_v35  ;;  %1325 = vmatpush.msrb.mxu1 %v374_v36  ;;  %v354_v60 = vld [vmem:[%s7106_s1 + $0x268] sm:$0xff]  ;;  %v391_v28 = vld [vmem:[%s7106_s1 + $0x390] sm:$0xff]  ;;  %v4937_v35 = vpop.f32.mrf.mxu0 }
  0xef   : > { %1349 = vmatpush.msrb.mxu2 %v434_v37  ;;  %1371 = vmatpush.msrb.mxu3 %v502_v38  ;;  %v414_v61 = vld [vmem:[%s7106_s1 + $0x448] sm:$0xff]  ;;  %v451_v29 = vld [vmem:[%s7106_s1 + $0x570] sm:$0xff] }
  0xf0   : > { %1304 = vmatpush.msrb.mxu0 %v302_v40  ;;  %1326 = vmatpush.msrb.mxu1 %v370_v41  ;;  %v482_v62 = vld [vmem:[%s7106_s1 + $0x668] sm:$0xff]  ;;  %v519_v30 = vld [vmem:[%s7106_s1 + $0x790] sm:$0xff] }
  0xf1   : > { %1350 = vmatpush.msrb.mxu2 %v430_v43  ;;  %1372 = vmatpush.msrb.mxu3 %v498_v44  ;;  %v282_v63 = vld [vmem:[%s7106_s1 + $0x28] sm:$0xff]  ;;  %v319_v31 = vld [vmem:[%s7106_s1 + $0x150] sm:$0xff]  ;;  %v4959_v44 = vpop.f32.mrf.mxu1 }
  0xf2   : > { %1305 = vmatpush.msrb.mxu0 %v298_v15  ;;  %1327 = vmatpush.msrb.mxu1 %v366_v18  ;;  %v350_v0 = vld [vmem:[%s7106_s1 + $0x248] sm:$0xff]  ;;  %v387_v9 = vld [vmem:[%s7106_s1 + $0x370] sm:$0xff] }
  0xf3   : > { %1351 = vmatpush.msrb.mxu2 %v426_v45  ;;  %1373 = vmatpush.msrb.mxu3 %v494_v46  ;;  %v410_v1 = vld [vmem:[%s7106_s1 + $0x428] sm:$0xff]  ;;  %v447_v10 = vld [vmem:[%s7106_s1 + $0x550] sm:$0xff] }
  0xf4   : > { %1306 = vmatpush.msrb.mxu0 %v294_v47  ;;  %1328 = vmatpush.msrb.mxu1 %v362_v48  ;;  %v478_v2 = vld [vmem:[%s7106_s1 + $0x648] sm:$0xff]  ;;  %v515_v33 = vld [vmem:[%s7106_s1 + $0x770] sm:$0xff] }
  0xf5   : > { %1352 = vmatpush.msrb.mxu2 %v422_v49  ;;  %1374 = vmatpush.msrb.mxu3 %v490_v50  ;;  %v278_v3 = vld [vmem:[%s7106_s1 + $0x8] sm:$0xff]  ;;  %v315_v36 = vld [vmem:[%s7106_s1 + $0x130] sm:$0xff]  ;;  %v4979_v49 = vpop.f32.mrf.mxu2 }
  0xf6   : > { %1307 = vmatpush.msrb.mxu0 %v290_v53  ;;  %1329 = vmatpush.msrb.mxu1 %v358_v54  ;;  %v346_v4 = vld [vmem:[%s7106_s1 + $0x228] sm:$0xff]  ;;  %v383_v37 = vld [vmem:[%s7106_s1 + $0x350] sm:$0xff] }
  0xf7   : > { %1353 = vmatpush.msrb.mxu2 %v418_v55  ;;  %1375 = vmatpush.msrb.mxu3 %v486_v56  ;;  %v406_v5 = vld [vmem:[%s7106_s1 + $0x408] sm:$0xff]  ;;  %v443_v38 = vld [vmem:[%s7106_s1 + $0x530] sm:$0xff] }
  0xf8   : > { %1308 = vmatpush.msrb.mxu0 %v286_v59  ;;  %1330 = vmatpush.msrb.mxu1 %v354_v60  ;;  %v474_v6 = vld [vmem:[%s7106_s1 + $0x628] sm:$0xff]  ;;  %v511_v40 = vld [vmem:[%s7106_s1 + $0x750] sm:$0xff] }
  0xf9   : > { %1354 = vmatpush.msrb.mxu2 %v414_v61  ;;  %1376 = vmatpush.msrb.mxu3 %v482_v62  ;;  %v342_v11 = vld [vmem:[%s7106_s1 + $0x208] sm:$0xff]  ;;  %v311_v41 = vld [vmem:[%s7106_s1 + $0x110] sm:$0xff]  ;;  %v5001_v61 = vpop.f32.mrf.mxu3 }
  0xfa   : > { %1309 = vmatpush.msrb.mxu0 %v282_v63  ;;  %1331 = vmatpush.msrb.mxu1 %v350_v0  ;;  %v470_v12 = vld [vmem:[%s7106_s1 + $0x608] sm:$0xff]  ;;  %v379_v43 = vld [vmem:[%s7106_s1 + $0x330] sm:$0xff] }
  0xfb   : > { %1355 = vmatpush.msrb.mxu2 %v410_v1  ;;  %1377 = vmatpush.msrb.mxu3 %v478_v2  ;;  %v439_v15 = vld [vmem:[%s7106_s1 + $0x510] sm:$0xff] }
  0xfc   : > { %1310 = vmatpush.msrb.mxu0 %v278_v3  ;;  %1332 = vmatpush.msrb.mxu1 %v346_v4  ;;  %v507_v18 = vld [vmem:[%s7106_s1 + $0x730] sm:$0xff] }
  0xfd   : > { %1356 = vmatpush.msrb.mxu2 %v406_v5  ;;  %1378 = vmatpush.msrb.mxu3 %v474_v6  ;;  %v307_v45 = vld [vmem:[%s7106_s1 + $0xf0] sm:$0xff] }
  0xfe   : > { %1311 = vmatmul.f32.vlgmr.msrb.gmra.mxu0 %v4622_v51  ;;  %1357 = vmatmul.f32.vlgmr.msrb.gmra.mxu2 %v4627_v52  ;;  %v375_v46 = vld [vmem:[%s7106_s1 + $0x310] sm:$0xff] }
  0xff   : > { %1387 = vmatpush.msra.mxu0 %v339_v7  ;;  %1433 = vmatpush.msra.mxu2 %v467_v8  ;;  %v435_v47 = vld [vmem:[%s7106_s1 + $0x4f0] sm:$0xff] }
 0x100   : > { %1333 = vmatpush.msrb.mxu1 %v342_v11  ;;  %1379 = vmatpush.msrb.mxu3 %v470_v12  ;;  %v503_v48 = vld [vmem:[%s7106_s1 + $0x710] sm:$0xff] }
 0x101   : > { %1334 = vmatmul.f32.vlgmr.msrb.gmra.mxu1 %v4646_v57  ;;  %1380 = vmatmul.f32.vlgmr.msrb.gmra.mxu3 %v4651_v58  ;;  %v303_v50 = vld [vmem:[%s7106_s1 + $0xd0] sm:$0xff]  ;;  %v4999_v60 = vpop.f32.mrf.mxu0 }
 0x102   : > { %1388 = vmatpush.msra.mxu0 %v335_v13  ;;  %1410 = vmatpush.msra.mxu1 %v403_v14  ;;  %v371_v53 = vld [vmem:[%s7106_s1 + $0x2f0] sm:$0xff] }
 0x103   : > { %1434 = vmatpush.msra.mxu2 %v463_v16  ;;  %1456 = vmatpush.msra.mxu3 %v531_v17  ;;  %v431_v54 = vld [vmem:[%s7106_s1 + $0x4d0] sm:$0xff] }
 0x104   : > { %1389 = vmatpush.msra.mxu0 %v331_v21  ;;  %1411 = vmatpush.msra.mxu1 %v399_v22  ;;  %v499_v55 = vld [vmem:[%s7106_s1 + $0x6f0] sm:$0xff]  ;;  %v5021_v4 = vpop.f32.mrf.mxu1 }
 0x105   : > { %1435 = vmatpush.msra.mxu2 %v459_v32  ;;  %1457 = vmatpush.msra.mxu3 %v527_v34  ;;  %v299_v56 = vld [vmem:[%s7106_s1 + $0xb0] sm:$0xff] }
 0x106   : > { %1390 = vmatpush.msra.mxu0 %v327_v25  ;;  %1412 = vmatpush.msra.mxu1 %v395_v26  ;;  %v367_v59 = vld [vmem:[%s7106_s1 + $0x2d0] sm:$0xff] }
 0x107   : > { %1436 = vmatpush.msra.mxu2 %v455_v39  ;;  %1458 = vmatpush.msra.mxu3 %v523_v42  ;;  %v427_v62 = vld [vmem:[%s7106_s1 + $0x4b0] sm:$0xff]  ;;  %v5041_v13 = vpop.f32.mrf.mxu2 }
 0x108   : > { %1314 = vmatmul.f32.gmra.mxu0 %v4694_v19  ;;  %1360 = vmatmul.f32.gmra.mxu2 %v4699_v20  ;;  %v495_v63 = vld [vmem:[%s7106_s1 + $0x6d0] sm:$0xff] }
 0x109   : > { %1391 = vmatpush.msra.mxu0 %v323_v27  ;;  %1413 = vmatpush.msra.mxu1 %v391_v28  ;;  %v295_v0 = vld [vmem:[%s7106_s1 + $0x90] sm:$0xff]  ;;  %v340_v28 = vld [vmem:[%s7106_s1 + $0x1f8] sm:$0xff] }
 0x10a   : > { %1437 = vmatpush.msra.mxu2 %v451_v29  ;;  %1459 = vmatpush.msra.mxu3 %v519_v30  ;;  %v363_v1 = vld [vmem:[%s7106_s1 + $0x2b0] sm:$0xff]  ;;  %v5061_v34 = vpop.f32.mrf.mxu3  ;;  %v468_v29 = vld [vmem:[%s7106_s1 + $0x5f8] sm:$0xff] }
 0x10b   : > { %1337 = vmatmul.f32.gmra.mxu1 %v4718_v23  ;;  %1383 = vmatmul.f32.gmra.mxu3 %v4723_v24  ;;  %v423_v2 = vld [vmem:[%s7106_s1 + $0x490] sm:$0xff]  ;;  %v5069_v39 = vpop.f32.mrf.mxu0 }
 0x10c   : > { %1392 = vmatpush.msra.mxu0 %v319_v31  ;;  %1414 = vmatpush.msra.mxu1 %v387_v9  ;;  %v491_v3 = vld [vmem:[%s7106_s1 + $0x6b0] sm:$0xff] }
 0x10d   : > { %1438 = vmatpush.msra.mxu2 %v447_v10  ;;  %1460 = vmatpush.msra.mxu3 %v515_v33  ;;  %v291_v5 = vld [vmem:[%s7106_s1 + $0x70] sm:$0xff]  ;;  %v336_v10 = vld [vmem:[%s7106_s1 + $0x1d8] sm:$0xff] }
 0x10e   : > { %1393 = vmatpush.msra.mxu0 %v315_v36  ;;  %1415 = vmatpush.msra.mxu1 %v383_v37  ;;  %v359_v6 = vld [vmem:[%s7106_s1 + $0x290] sm:$0xff]  ;;  %v5083_v30 = vpop.f32.mrf.mxu1  ;;  %v404_v33 = vld [vmem:[%s7106_s1 + $0x3f8] sm:$0xff] }
 0x10f   : > { %1439 = vmatpush.msra.mxu2 %v443_v38  ;;  %1461 = vmatpush.msra.mxu3 %v511_v40  ;;  %v419_v7 = vld [vmem:[%s7106_s1 + $0x470] sm:$0xff]  ;;  %v464_v37 = vld [vmem:[%s7106_s1 + $0x5d8] sm:$0xff] }
 0x110   : > { %1394 = vmatpush.msra.mxu0 %v311_v41  ;;  %1416 = vmatpush.msra.mxu1 %v379_v43  ;;  %v487_v8 = vld [vmem:[%s7106_s1 + $0x690] sm:$0xff]  ;;  %v532_v38 = vld [vmem:[%s7106_s1 + $0x7f8] sm:$0xff] }
 0x111   : > { %1440 = vmatpush.msra.mxu2 %v439_v15  ;;  %1462 = vmatpush.msra.mxu3 %v507_v18  ;;  %v287_v11 = vld [vmem:[%s7106_s1 + $0x50] sm:$0xff]  ;;  %v5099_v36 = vpop.f32.mrf.mxu2  ;;  %v332_v40 = vld [vmem:[%s7106_s1 + $0x1b8] sm:$0xff] }
 0x112   : > { %1395 = vmatpush.msra.mxu0 %v307_v45  ;;  %1417 = vmatpush.msra.mxu1 %v375_v46  ;;  %v355_v12 = vld [vmem:[%s7106_s1 + $0x270] sm:$0xff]  ;;  %v400_v41 = vld [vmem:[%s7106_s1 + $0x3d8] sm:$0xff] }
 0x113   : > { %1441 = vmatpush.msra.mxu2 %v435_v47  ;;  %1463 = vmatpush.msra.mxu3 %v503_v48  ;;  %v415_v14 = vld [vmem:[%s7106_s1 + $0x450] sm:$0xff]  ;;  %v460_v15 = vld [vmem:[%s7106_s1 + $0x5b8] sm:$0xff] }
 0x114   : > { %1396 = vmatpush.msra.mxu0 %v303_v50  ;;  %1418 = vmatpush.msra.mxu1 %v371_v53  ;;  %v483_v16 = vld [vmem:[%s7106_s1 + $0x670] sm:$0xff]  ;;  %v528_v18 = vld [vmem:[%s7106_s1 + $0x7d8] sm:$0xff]  ;;  %v5123_v45 = vpop.f32.mrf.mxu3 }
 0x115   : > { %1442 = vmatpush.msra.mxu2 %v431_v54  ;;  %1464 = vmatpush.msra.mxu3 %v499_v55  ;;  %v283_v17 = vld [vmem:[%s7106_s1 + $0x30] sm:$0xff]  ;;  %v328_v46 = vld [vmem:[%s7106_s1 + $0x198] sm:$0xff] }
 0x116   : > { %1397 = vmatpush.msra.mxu0 %v299_v56  ;;  %1419 = vmatpush.msra.mxu1 %v367_v59  ;;  %v351_v21 = vld [vmem:[%s7106_s1 + $0x250] sm:$0xff]  ;;  %v396_v47 = vld [vmem:[%s7106_s1 + $0x3b8] sm:$0xff] }
 0x117   : > { %1443 = vmatpush.msra.mxu2 %v427_v62  ;;  %1465 = vmatpush.msra.mxu3 %v495_v63  ;;  %v411_v22 = vld [vmem:[%s7106_s1 + $0x430] sm:$0xff]  ;;  %v456_v48 = vld [vmem:[%s7106_s1 + $0x598] sm:$0xff] }
 0x118   : > { %1398 = vmatpush.msra.mxu0 %v295_v0  ;;  %1420 = vmatpush.msra.mxu1 %v363_v1  ;;  %v479_v32 = vld [vmem:[%s7106_s1 + $0x650] sm:$0xff]  ;;  %v524_v50 = vld [vmem:[%s7106_s1 + $0x7b8] sm:$0xff] }
 0x119   : > { %1444 = vmatpush.msra.mxu2 %v423_v2  ;;  %1466 = vmatpush.msra.mxu3 %v491_v3  ;;  %v279_v25 = vld [vmem:[%s7106_s1 + $0x10] sm:$0xff]  ;;  %v324_v54 = vld [vmem:[%s7106_s1 + $0x178] sm:$0xff] }
 0x11a   : > { %1399 = vmatpush.msra.mxu0 %v291_v5  ;;  %1421 = vmatpush.msra.mxu1 %v359_v6  ;;  %v347_v26 = vld [vmem:[%s7106_s1 + $0x230] sm:$0xff]  ;;  %v392_v55 = vld [vmem:[%s7106_s1 + $0x398] sm:$0xff] }
 0x11b   : > { %1445 = vmatpush.msra.mxu2 %v419_v7  ;;  %1467 = vmatpush.msra.mxu3 %v487_v8  ;;  %v407_v42 = vld [vmem:[%s7106_s1 + $0x410] sm:$0xff]  ;;  %v452_v56 = vld [vmem:[%s7106_s1 + $0x578] sm:$0xff] }
 0x11c   : > { %1400 = vmatpush.msra.mxu0 %v287_v11  ;;  %1422 = vmatpush.msra.mxu1 %v355_v12  ;;  %v475_v27 = vld [vmem:[%s7106_s1 + $0x630] sm:$0xff]  ;;  %v520_v59 = vld [vmem:[%s7106_s1 + $0x798] sm:$0xff] }
 0x11d   : > { %1446 = vmatpush.msra.mxu2 %v415_v14  ;;  %1468 = vmatpush.msra.mxu3 %v483_v16  ;;  %v343_v31 = vld [vmem:[%s7106_s1 + $0x210] sm:$0xff]  ;;  %v320_v63 = vld [vmem:[%s7106_s1 + $0x158] sm:$0xff] }
 0x11e   : > { %1401 = vmatpush.msra.mxu0 %v283_v17  ;;  %1423 = vmatpush.msra.mxu1 %v351_v21  ;;  %v471_v9 = vld [vmem:[%s7106_s1 + $0x610] sm:$0xff]  ;;  %v388_v0 = vld [vmem:[%s7106_s1 + $0x378] sm:$0xff] }
 0x11f   : > { %1447 = vmatpush.msra.mxu2 %v411_v22  ;;  %1469 = vmatpush.msra.mxu3 %v479_v32  ;;  %v448_v1 = vld [vmem:[%s7106_s1 + $0x558] sm:$0xff] }
 0x120   : > { %1402 = vmatpush.msra.mxu0 %v279_v25  ;;  %1424 = vmatpush.msra.mxu1 %v347_v26  ;;  %v516_v2 = vld [vmem:[%s7106_s1 + $0x778] sm:$0xff] }
 0x121   : > { %1448 = vmatpush.msra.mxu2 %v407_v42  ;;  %1470 = vmatpush.msra.mxu3 %v475_v27  ;;  %v316_v5 = vld [vmem:[%s7106_s1 + $0x138] sm:$0xff] }
 0x122   : > { %1403 = vmatmul.f32.vlgmr.msra.gmra.mxu0 %v4622_v51  ;;  %1449 = vmatmul.f32.vlgmr.msra.gmra.mxu2 %v4627_v52  ;;  %v384_v6 = vld [vmem:[%s7106_s1 + $0x358] sm:$0xff] }
 0x123   : > { %1479 = vmatpush.msrb.mxu0 %v340_v28  ;;  %1525 = vmatpush.msrb.mxu2 %v468_v29  ;;  %v5115_v43 = vpop.f32.mrf.mxu0  ;;  %v444_v8 = vld [vmem:[%s7106_s1 + $0x538] sm:$0xff] }
 0x124   : > { %1425 = vmatpush.msra.mxu1 %v343_v31  ;;  %1471 = vmatpush.msra.mxu3 %v471_v9  ;;  %v512_v11 = vld [vmem:[%s7106_s1 + $0x758] sm:$0xff] }
 0x125   : > { %1426 = vmatmul.f32.vlgmr.msra.gmra.mxu1 %v4646_v57  ;;  %1472 = vmatmul.f32.vlgmr.msra.gmra.mxu3 %v4651_v58  ;;  %v312_v12 = vld [vmem:[%s7106_s1 + $0x118] sm:$0xff] }
 0x126   : > { %1480 = vmatpush.msrb.mxu0 %v336_v10  ;;  %1502 = vmatpush.msrb.mxu1 %v404_v33  ;;  %v5137_v53 = vpop.f32.mrf.mxu1  ;;  %v380_v14 = vld [vmem:[%s7106_s1 + $0x338] sm:$0xff] }
 0x127   : > { %1526 = vmatpush.msrb.mxu2 %v464_v37  ;;  %1548 = vmatpush.msrb.mxu3 %v532_v38  ;;  %v440_v16 = vld [vmem:[%s7106_s1 + $0x518] sm:$0xff] }
 0x128   : > { %1481 = vmatpush.msrb.mxu0 %v332_v40  ;;  %1503 = vmatpush.msrb.mxu1 %v400_v41  ;;  %v508_v17 = vld [vmem:[%s7106_s1 + $0x738] sm:$0xff] }
 0x129   : > { %1527 = vmatpush.msrb.mxu2 %v460_v15  ;;  %1549 = vmatpush.msrb.mxu3 %v528_v18  ;;  %v5151_v62 = vpop.f32.mrf.mxu2  ;;  %v308_v22 = vld [vmem:[%s7106_s1 + $0xf8] sm:$0xff] }
 0x12a   : > { %1482 = vmatpush.msrb.mxu0 %v328_v46  ;;  %1504 = vmatpush.msrb.mxu1 %v396_v47  ;;  %v376_v32 = vld [vmem:[%s7106_s1 + $0x318] sm:$0xff] }
 0x12b   : > { %1528 = vmatpush.msrb.mxu2 %v456_v48  ;;  %1550 = vmatpush.msrb.mxu3 %v524_v50  ;;  %v436_v25 = vld [vmem:[%s7106_s1 + $0x4f8] sm:$0xff] }
 0x12c   : > { %1406 = vmatmul.f32.gmra.mxu0 %v4694_v19  ;;  %1452 = vmatmul.f32.gmra.mxu2 %v4699_v20  ;;  %v5167_v3 = vpop.f32.mrf.mxu3  ;;  %v504_v26 = vld [vmem:[%s7106_s1 + $0x718] sm:$0xff] }
 0x12d   : > { %1483 = vmatpush.msrb.mxu0 %v324_v54  ;;  %1505 = vmatpush.msrb.mxu1 %v392_v55  ;;  %v5177_v7 = vpop.f32.mrf.mxu0  ;;  %v304_v42 = vld [vmem:[%s7106_s1 + $0xd8] sm:$0xff] }
 0x12e   : > { %1529 = vmatpush.msrb.mxu2 %v452_v56  ;;  %1551 = vmatpush.msrb.mxu3 %v520_v59  ;;  %v372_v27 = vld [vmem:[%s7106_s1 + $0x2f8] sm:$0xff] }
 0x12f   : > { %1429 = vmatmul.f32.gmra.mxu1 %v4718_v23  ;;  %1475 = vmatmul.f32.gmra.mxu3 %v4723_v24  ;;  %v432_v29 = vld [vmem:[%s7106_s1 + $0x4d8] sm:$0xff] }
 0x130   : > { %1484 = vmatpush.msrb.mxu0 %v320_v63  ;;  %1506 = vmatpush.msrb.mxu1 %v388_v0  ;;  %v5197_v21 = vpop.f32.mrf.mxu1  ;;  %v500_v31 = vld [vmem:[%s7106_s1 + $0x6f8] sm:$0xff] }
 0x131   : > { %1530 = vmatpush.msrb.mxu2 %v448_v1  ;;  %1552 = vmatpush.msrb.mxu3 %v516_v2  ;;  %v300_v9 = vld [vmem:[%s7106_s1 + $0xb8] sm:$0xff] }
 0x132   : > { %1485 = vmatpush.msrb.mxu0 %v316_v5  ;;  %1507 = vmatpush.msrb.mxu1 %v384_v6  ;;  %v368_v10 = vld [vmem:[%s7106_s1 + $0x2d8] sm:$0xff] }
 0x133   : > { %1531 = vmatpush.msrb.mxu2 %v444_v8  ;;  %1553 = vmatpush.msrb.mxu3 %v512_v11  ;;  %v5217_v28 = vpop.f32.mrf.mxu2  ;;  %v428_v33 = vld [vmem:[%s7106_s1 + $0x4b8] sm:$0xff] }
 0x134   : > { %1486 = vmatpush.msrb.mxu0 %v312_v12  ;;  %1508 = vmatpush.msrb.mxu1 %v380_v14  ;;  %v496_v37 = vld [vmem:[%s7106_s1 + $0x6d8] sm:$0xff] }
 0x135   : > { %1532 = vmatpush.msrb.mxu2 %v440_v16  ;;  %1554 = vmatpush.msrb.mxu3 %v508_v17  ;;  %v296_v40 = vld [vmem:[%s7106_s1 + $0x98] sm:$0xff] }
 0x136   : > { %1487 = vmatpush.msrb.mxu0 %v308_v22  ;;  %1509 = vmatpush.msrb.mxu1 %v376_v32  ;;  %v364_v41 = vld [vmem:[%s7106_s1 + $0x2b8] sm:$0xff]  ;;  %v3313_v32 = vld [vmem:[%s7106_s1 + $0x11e0] sm:$0xff] }
 0x137   : > { %1533 = vmatpush.msrb.mxu2 %v436_v25  ;;  %1555 = vmatpush.msrb.mxu3 %v504_v26  ;;  %v5237_v38 = vpop.f32.mrf.mxu3  ;;  %v424_v18 = vld [vmem:[%s7106_s1 + $0x498] sm:$0xff]  ;;  %v3441_v25 = vld [vmem:[%s7106_s1 + $0x15e0] sm:$0xff] }
 0x138   : > { %1488 = vmatpush.msrb.mxu0 %v304_v42  ;;  %1510 = vmatpush.msrb.mxu1 %v372_v27  ;;  %v492_v46 = vld [vmem:[%s7106_s1 + $0x6b8] sm:$0xff] }
 0x139   : > { %1534 = vmatpush.msrb.mxu2 %v432_v29  ;;  %1556 = vmatpush.msrb.mxu3 %v500_v31  ;;  %v5245_v15 = vpop.f32.mrf.mxu0  ;;  %v292_v47 = vld [vmem:[%s7106_s1 + $0x78] sm:$0xff]  ;;  %v3309_v29 = vld [vmem:[%s7106_s1 + $0x11c0] sm:$0xff] }
 0x13a   : > { %1489 = vmatpush.msrb.mxu0 %v300_v9  ;;  %1511 = vmatpush.msrb.mxu1 %v368_v10  ;;  %v360_v48 = vld [vmem:[%s7106_s1 + $0x298] sm:$0xff]  ;;  %v3437_v31 = vld [vmem:[%s7106_s1 + $0x15c0] sm:$0xff] }
 0x13b   : > { %1535 = vmatpush.msrb.mxu2 %v428_v33  ;;  %1557 = vmatpush.msrb.mxu3 %v496_v37  ;;  %v420_v50 = vld [vmem:[%s7106_s1 + $0x478] sm:$0xff]  ;;  %v3305_v9 = vld [vmem:[%s7106_s1 + $0x11a0] sm:$0xff] }
 0x13c   : > { %1490 = vmatpush.msrb.mxu0 %v296_v40  ;;  %1512 = vmatpush.msrb.mxu1 %v364_v41  ;;  %v488_v54 = vld [vmem:[%s7106_s1 + $0x698] sm:$0xff]  ;;  %v5265_v55 = vpop.f32.mrf.mxu1  ;;  %v3433_v10 = vld [vmem:[%s7106_s1 + $0x15a0] sm:$0xff] }
 0x13d   : > { %1536 = vmatpush.msrb.mxu2 %v424_v18  ;;  %1558 = vmatpush.msrb.mxu3 %v492_v46  ;;  %v288_v56 = vld [vmem:[%s7106_s1 + $0x58] sm:$0xff]  ;;  %v3501_v37 = vld [vmem:[%s7106_s1 + $0x17c0] sm:$0xff] }
 0x13e   : > { %v356_v59 = vld [vmem:[%s7106_s1 + $0x278] sm:$0xff]  ;;  %1491 = vmatpush.msrb.mxu0 %v292_v47  ;;  %1513 = vmatpush.msrb.mxu1 %v360_v48  ;;  %v3429_v40 = vld [vmem:[%s7106_s1 + $0x1580] sm:$0xff]  ;;  %v835_v48 = vadd.f32 %v4959_v44, %v4937_v35 }
 0x13f   : > { %v416_v63 = vld [vmem:[%s7106_s1 + $0x458] sm:$0xff]  ;;  %1537 = vmatpush.msrb.mxu2 %v420_v50  ;;  %1559 = vmatpush.msrb.mxu3 %v488_v54  ;;  %v5285_v5 = vpop.f32.mrf.mxu2  ;;  %v3497_v41 = vld [vmem:[%s7106_s1 + $0x17a0] sm:$0xff] }
 0x140   : > { %v484_v0 = vld [vmem:[%s7106_s1 + $0x678] sm:$0xff]  ;;  %1492 = vmatpush.msrb.mxu0 %v288_v56  ;;  %1514 = vmatpush.msrb.mxu1 %v356_v59  ;;  %v3297_v46 = vld [vmem:[%s7106_s1 + $0x1160] sm:$0xff] }
 0x141   : > { %v284_v1 = vld [vmem:[%s7106_s1 + $0x38] sm:$0xff]  ;;  %1538 = vmatpush.msrb.mxu2 %v416_v63  ;;  %1560 = vmatpush.msrb.mxu3 %v484_v0  ;;  %v3369_v50 = vld [vmem:[%s7106_s1 + $0x13a0] sm:$0xff]  ;;  %v858_v63 = vadd.f32 %v4979_v49, %v835_v48 }
 0x142   : > { %v352_v2 = vld [vmem:[%s7106_s1 + $0x258] sm:$0xff]  ;;  %1493 = vmatpush.msrb.mxu0 %v284_v1  ;;  %v5305_v17 = vpop.f32.mrf.mxu3  ;;  %v3425_v54 = vld [vmem:[%s7106_s1 + $0x1560] sm:$0xff] }
 0x143   : > { %v412_v6 = vld [vmem:[%s7106_s1 + $0x438] sm:$0xff]  ;;  %1515 = vmatpush.msrb.mxu1 %v352_v2  ;;  %v5307_v22 = vpop.f32.mrf.mxu0  ;;  %v3493_v56 = vld [vmem:[%s7106_s1 + $0x1780] sm:$0xff] }
 0x144   : > { %v480_v8 = vld [vmem:[%s7106_s1 + $0x658] sm:$0xff]  ;;  %1539 = vmatpush.msrb.mxu2 %v412_v6  ;;  %v3293_v35 = vld [vmem:[%s7106_s1 + $0x1140] sm:$0xff] }
 0x145   : > { %v280_v11 = vld [vmem:[%s7106_s1 + $0x18] sm:$0xff]  ;;  %1561 = vmatpush.msrb.mxu3 %v480_v8  ;;  %v3365_v59 = vld [vmem:[%s7106_s1 + $0x1380] sm:$0xff] }
 0x146   : > { %v348_v12 = vld [vmem:[%s7106_s1 + $0x238] sm:$0xff]  ;;  %1494 = vmatpush.msrb.mxu0 %v280_v11  ;;  %v5323_v27 = vpop.f32.mrf.mxu1  ;;  %v3289_v0 = vld [vmem:[%s7106_s1 + $0x1120] sm:$0xff]  ;;  %v881_v11 = vadd.f32 %v5001_v61, %v858_v63  ;;  %v5488_v63 = vld [vmem:[#allocation2 + $0x10] sm:$0xff] }
 0x147   : > { %v408_v14 = vld [vmem:[%s7106_s1 + $0x418] sm:$0xff]  ;;  %1516 = vmatpush.msrb.mxu1 %v348_v12  ;;  %1495 = vmatmul.f32.vlgmr.msrb.gmra.mxu0 %v4622_v51  ;;  %v3505_v51 = vld [vmem:[%s7106_s1 + $0x17e0] sm:$0xff] }
 0x148   : > { %v476_v16 = vld [vmem:[%s7106_s1 + $0x638] sm:$0xff]  ;;  %1540 = vmatpush.msrb.mxu2 %v408_v14  ;;  %1881 = vmatpush.msra.mxu0 %v3313_v32  ;;  %v3361_v1 = vld [vmem:[%s7106_s1 + $0x1360] sm:$0xff] }
 0x149   : > { %1562 = vmatpush.msrb.mxu3 %v476_v16  ;;  %v344_v26 = vld [vmem:[%s7106_s1 + $0x218] sm:$0xff]  ;;  %1541 = vmatmul.f32.vlgmr.msrb.gmra.mxu2 %v4627_v52  ;;  %v3377_v52 = vld [vmem:[%s7106_s1 + $0x13e0] sm:$0xff]  ;;  %v5345_v33 = vpop.f32.mrf.mxu2 }
 0x14a   : > { %v472_v42 = vld [vmem:[%s7106_s1 + $0x618] sm:$0xff]  ;;  %1927 = vmatpush.msra.mxu2 %v3441_v25  ;;  %1517 = vmatpush.msrb.mxu1 %v344_v26  ;;  %v3417_v49 = vld [vmem:[%s7106_s1 + $0x1520] sm:$0xff]  ;;  %v838_v26 = vadd.f32 %v5021_v4, %v4999_v60 }
 0x14b   : > { %1563 = vmatpush.msrb.mxu3 %v472_v42  ;;  %1518 = vmatmul.f32.vlgmr.msrb.gmra.mxu1 %v4646_v57  ;;  %v3373_v57 = vld [vmem:[%s7106_s1 + $0x13c0] sm:$0xff] }
 0x14c   : > { %1564 = vmatmul.f32.vlgmr.msrb.gmra.mxu3 %v4651_v58  ;;  %1882 = vmatpush.msra.mxu0 %v3309_v29  ;;  %v3301_v58 = vld [vmem:[%s7106_s1 + $0x1180] sm:$0xff]  ;;  %v5362_v18 = vpop.f32.mrf.mxu3 }
 0x14d   : > { %1928 = vmatpush.msra.mxu2 %v3437_v31  ;;  %1950 = vmatpush.msra.mxu3 %v3505_v51  ;;  %v5367_v47 = vpop.f32.mrf.mxu0  ;;  %v3485_v2 = vld [vmem:[%s7106_s1 + $0x1740] sm:$0xff] }
 0x14e   : > { %1904 = vmatpush.msra.mxu1 %v3377_v52  ;;  %1883 = vmatpush.msra.mxu0 %v3305_v9  ;;  %v3357_v6 = vld [vmem:[%s7106_s1 + $0x1340] sm:$0xff] }
 0x14f   : > { %1929 = vmatpush.msra.mxu2 %v3433_v10  ;;  %1951 = vmatpush.msra.mxu3 %v3501_v37  ;;  %v3413_v8 = vld [vmem:[%s7106_s1 + $0x1500] sm:$0xff] }
 0x150   : > { %1905 = vmatpush.msra.mxu1 %v3373_v57  ;;  %1884 = vmatpush.msra.mxu0 %v3301_v58  ;;  %v5385_v44 = vpop.f32.mrf.mxu1  ;;  %v3481_v12 = vld [vmem:[%s7106_s1 + $0x1720] sm:$0xff]  ;;  %v861_v57 = vadd.f32 %v5041_v13, %v838_v26 }
 0x151   : > { %1930 = vmatpush.msra.mxu2 %v3429_v40  ;;  %1952 = vmatpush.msra.mxu3 %v3497_v41  ;;  %v3281_v14 = vld [vmem:[%s7106_s1 + $0x10e0] sm:$0xff] }
 0x152   : > { %1498 = vmatmul.f32.gmra.mxu0 %v4694_v19  ;;  %1544 = vmatmul.f32.gmra.mxu2 %v4699_v20  ;;  %v3421_v19 = vld [vmem:[%s7106_s1 + $0x1540] sm:$0xff] }
 0x153   : > { %1885 = vmatpush.msra.mxu0 %v3297_v46  ;;  %1906 = vmatpush.msra.mxu1 %v3369_v50  ;;  %v3489_v20 = vld [vmem:[%s7106_s1 + $0x1760] sm:$0xff] }
 0x154   : > { %1931 = vmatpush.msra.mxu2 %v3425_v54  ;;  %1953 = vmatpush.msra.mxu3 %v3493_v56  ;;  %v3353_v32 = vld [vmem:[%s7106_s1 + $0x1320] sm:$0xff] }
 0x155   : > { %1521 = vmatmul.f32.gmra.mxu1 %v4718_v23  ;;  %1567 = vmatmul.f32.gmra.mxu3 %v4723_v24  ;;  %v5408_v23 = vpop.f32.mrf.mxu2  ;;  %v3285_v24 = vld [vmem:[%s7106_s1 + $0x1100] sm:$0xff] }
 0x156   : > { %1886 = vmatpush.msra.mxu0 %v3293_v35  ;;  %1907 = vmatpush.msra.mxu1 %v3365_v59  ;;  %v5429_v16 = vpop.f32.mrf.mxu3  ;;  %v3409_v61 = vld [vmem:[%s7106_s1 + $0x14e0] sm:$0xff] }
 0x157   : > { %1932 = vmatpush.msra.mxu2 %v3421_v19  ;;  %1954 = vmatpush.msra.mxu3 %v3489_v20  ;;  %v1220_v25 = vpop.f32.mrf.mxu0  ;;  %v3477_v42 = vld [vmem:[%s7106_s1 + $0x1700] sm:$0xff]  ;;  %v1573_v19 = vld [vmem:[#allocation2 + $0x8] sm:$0xfe]  ;;  %v884_v20 = vadd.f32 %v5061_v34, %v861_v57 }
 0x158   : > { %1887 = vmatpush.msra.mxu0 %v3289_v0  ;;  %1908 = vmatpush.msra.mxu1 %v3361_v1  ;;  %v3277_v29 = vld [vmem:[%s7106_s1 + $0x10c0] sm:$0xff]  ;;  %v1221_v31 = vadd.f32 %v1220_v25, %v881_v11  ;;  %v5515_v25 = vld [vmem:[#allocation2 + $0x38] sm:$0xff]  ;;  %v1572_v57 = vld [vmem:[#allocation2 + $0x68] sm:$0xfe] }
 0x159   : > { %1933 = vmatpush.msra.mxu2 %v3417_v49  ;;  %1955 = vmatpush.msra.mxu3 %v3485_v2  ;;  %v3349_v51 = vld [vmem:[%s7106_s1 + $0x1300] sm:$0xff] }
 0x15a   : > { %1888 = vmatpush.msra.mxu0 %v3285_v24  ;;  %1909 = vmatpush.msra.mxu1 %v3357_v6  ;;  %v3405_v60 = vld [vmem:[%s7106_s1 + $0x14c0] sm:$0xff]  ;;  %v1243_v9 = vpop.f32.mrf.mxu1 }
 0x15b   : > { %1934 = vmatpush.msra.mxu2 %v3413_v8  ;;  %1956 = vmatpush.msra.mxu3 %v3481_v12  ;;  %v3473_v4 = vld [vmem:[%s7106_s1 + $0x16e0] sm:$0xff]  ;;  %v1244_v41 = vadd.f32 %v1243_v9, %v1221_v31 }
 0x15c   : > { %1889 = vmatpush.msra.mxu0 %v3281_v14  ;;  %1910 = vmatpush.msra.mxu1 %v3353_v32  ;;  %v3273_v52 = vld [vmem:[%s7106_s1 + $0x10a0] sm:$0xff]  ;;  %v1859_v14 = vrot.slane %v1573_v19, 1  ;;  %v1860_v32 = vrot.slane %v5488_v63, 1  ;;  %v1856_v19 = vrot.slane %v1572_v57, 1  ;;  %v3430_v57 = vld [vmem:[%s7106_s1 + $0x1588] sm:$0xff] }
 0x15d   : > { %1935 = vmatpush.msra.mxu2 %v3409_v61  ;;  %1957 = vmatpush.msra.mxu3 %v3477_v42  ;;  %v3345_v10 = vld [vmem:[%s7106_s1 + $0x12e0] sm:$0xff]  ;;  %v1266_v48 = vpop.f32.mrf.mxu2  ;;  %v1574_v61 = vld [vmem:[#allocation2 + $0x48] sm:$0xfe] }
 0x15e   : > { %1890 = vmatpush.msra.mxu0 %v3277_v29  ;;  %v3401_v37 = vld [vmem:[%s7106_s1 + $0x14a0] sm:$0xff]  ;;  %1911 = vmatpush.msra.mxu1 %v3349_v51  ;;  %v1267_v35 = vadd.f32 %v1266_v48, %v1244_v41  ;;  %v3442_v48 = vld [vmem:[%s7106_s1 + $0x15e8] sm:$0xff] }
 0x15f   : > { %1936 = vmatpush.msra.mxu2 %v3405_v60  ;;  %v3469_v58 = vld [vmem:[%s7106_s1 + $0x16c0] sm:$0xff]  ;;  %1958 = vmatpush.msra.mxu3 %v3473_v4  ;;  %v1571_v60 = vld [vmem:[#allocation2 + $0x50] sm:$0xfe]  ;;  %v3426_v63 = vld [vmem:[%s7106_s1 + $0x1568] sm:$0xff] }
 0x160   : > { %v3269_v40 = vld [vmem:[%s7106_s1 + $0x1080] sm:$0xff]  ;;  %1891 = vmatpush.msra.mxu0 %v3273_v52  ;;  %1912 = vmatpush.msra.mxu1 %v3345_v10  ;;  %v1289_v2 = vpop.f32.mrf.mxu3  ;;  %v1862_v10 = vrot.slane %v1574_v61, 1 }
 0x161   : > { %v3341_v46 = vld [vmem:[%s7106_s1 + $0x12c0] sm:$0xff]  ;;  %1937 = vmatpush.msra.mxu2 %v3401_v37  ;;  %1959 = vmatpush.msra.mxu3 %v3469_v58  ;;  %v1223_v8 = vpop.f32.mrf.mxu0  ;;  %v5509_v11 = vadd.f32 %v1289_v2, %v1267_v35  ;;  %v1863_v37 = vrot.slane %v5515_v25, 1  ;;  %v1581_v2 = vld [vmem:[#allocation2 + $0x78] sm:$0x1]  ;;  %v3490_v25 = vld [vmem:[%s7106_s1 + $0x1768] sm:$0xff] }
 0x162   : > { %v3397_v13 = vld [vmem:[%s7106_s1 + $0x1480] sm:$0xff]  ;;  %1892 = vmatpush.msra.mxu0 %v3269_v40  ;;  %1913 = vmatpush.msra.mxu1 %v3341_v46  ;;  %v1224_v26 = vadd.f32 %v1223_v8, %v884_v20  ;;  %v5543_v46 = vsel %vm1852_vm1, %v1859_v14, %v1860_v32 }
 0x163   : > { %v3465_v50 = vld [vmem:[%s7106_s1 + $0x16a0] sm:$0xff]  ;;  %1938 = vmatpush.msra.mxu2 %v3397_v13  ;;  %v3314_v13 = vld [vmem:[%s7106_s1 + $0x11e8] sm:$0xff] }
 0x164   : > { %v3265_v54 = vld [vmem:[%s7106_s1 + $0x1060] sm:$0xff]  ;;  %1960 = vmatpush.msra.mxu3 %v3465_v50  ;;  %v1246_v52 = vpop.f32.mrf.mxu1  ;;  %v1853_v50 = vrot.slane %v1571_v60, 1  ;;  %v3502_v60 = vld [vmem:[%s7106_s1 + $0x17c8] sm:$0xff] }
 0x165   : > { %v3337_v56 = vld [vmem:[%s7106_s1 + $0x12a0] sm:$0xff]  ;;  %1893 = vmatpush.msra.mxu0 %v3265_v54  ;;  %v1247_v40 = vadd.f32 %v1246_v52, %v1224_v26  ;;  %v3306_v26 = vld [vmem:[%s7106_s1 + $0x11a8] sm:$0xff] }
 0x166   : > { %v3393_v59 = vld [vmem:[%s7106_s1 + $0x1460] sm:$0xff]  ;;  %1914 = vmatpush.msra.mxu1 %v3337_v56  ;;  %v3302_v52 = vld [vmem:[%s7106_s1 + $0x1188] sm:$0xff] }
 0x167   : > { %v3461_v0 = vld [vmem:[%s7106_s1 + $0x1680] sm:$0xff]  ;;  %1939 = vmatpush.msra.mxu2 %v3393_v59  ;;  %v1269_v56 = vpop.f32.mrf.mxu2 }
 0x168   : > { %v3261_v1 = vld [vmem:[%s7106_s1 + $0x1040] sm:$0xff]  ;;  %1961 = vmatpush.msra.mxu3 %v3461_v0  ;;  %v1270_v0 = vadd.f32 %v1269_v56, %v1247_v40  ;;  %v3370_v56 = vld [vmem:[%s7106_s1 + $0x13a8] sm:$0xff] }
 0x169   : > { %v3333_v49 = vld [vmem:[%s7106_s1 + $0x1280] sm:$0xff]  ;;  %1894 = vmatpush.msra.mxu0 %v3261_v1  ;;  %v5563_v1 = vsel %vm1852_vm1, %v1862_v10, %v1863_v37  ;;  %v3374_v10 = vld [vmem:[%s7106_s1 + $0x13c8] sm:$0xff] }
 0x16a   : > { %v3389_v34 = vld [vmem:[%s7106_s1 + $0x1440] sm:$0xff]  ;;  %1915 = vmatpush.msra.mxu1 %v3333_v49  ;;  %v3310_v49 = vld [vmem:[%s7106_s1 + $0x11c8] sm:$0xff] }
 0x16b   : > { %v3457_v24 = vld [vmem:[%s7106_s1 + $0x1660] sm:$0xff]  ;;  %1940 = vmatpush.msra.mxu2 %v3389_v34  ;;  %v3438_v34 = vld [vmem:[%s7106_s1 + $0x15c8] sm:$0xff] }
 0x16c   : > { %v3257_v6 = vld [vmem:[%s7106_s1 + $0x1020] sm:$0xff]  ;;  %1962 = vmatpush.msra.mxu3 %v3457_v24  ;;  %v3506_v24 = vld [vmem:[%s7106_s1 + $0x17e8] sm:$0xff] }
 0x16d   : > { %v3329_v12 = vld [vmem:[%s7106_s1 + $0x1260] sm:$0xff]  ;;  %1895 = vmatpush.msra.mxu0 %v3257_v6  ;;  %v1292_v6 = vpop.f32.mrf.mxu3 }
 0x16e   : > { %v3385_v42 = vld [vmem:[%s7106_s1 + $0x1420] sm:$0xff]  ;;  %1916 = vmatpush.msra.mxu1 %v3329_v12  ;;  %v5582_v14 = vadd.f32 %v1292_v6, %v1270_v0  ;;  %v3414_v6 = vld [vmem:[%s7106_s1 + $0x1508] sm:$0xff] }
 0x16f   : > { %v3453_v29 = vld [vmem:[%s7106_s1 + $0x1640] sm:$0xff]  ;;  %1941 = vmatpush.msra.mxu2 %v3385_v42  ;;  %v1869_v42 = vrot.slane %v1581_v2, 1 }
 0x170   : > { %v3253_v31 = vld [vmem:[%s7106_s1 + $0x1000] sm:$0xff]  ;;  %1963 = vmatpush.msra.mxu3 %v3453_v29  ;;  %v1582_v29 = vld [vmem:[#allocation2 + $0x28] sm:$0x1] }
 0x171   : > { %v3325_v51 = vld [vmem:[%s7106_s1 + $0x1240] sm:$0xff]  ;;  %1896 = vmatpush.msra.mxu0 %v3253_v31  ;;  %v3378_v31 = vld [vmem:[%s7106_s1 + $0x13e8] sm:$0xff]  ;;  %v1871_v40 = vrot.slane %v1582_v29, 1 }
 0x172   : > { %v5529_v4 = vld [vmem:[#allocation2 + $0x40] sm:$0xff]  ;;  %1917 = vmatpush.msra.mxu1 %v3325_v51  ;;  %v3434_v51 = vld [vmem:[%s7106_s1 + $0x15a8] sm:$0xff] }
 0x173   : > { %v3381_v9 = vld [vmem:[%s7106_s1 + $0x1400] sm:$0xff]  ;;  %v1854_v54 = vrot.slane %v5529_v4, 1  ;;  %1973 = vmatpush.msrb.mxu0 %v3314_v13  ;;  %v3498_v13 = vld [vmem:[%s7106_s1 + $0x17a8] sm:$0xff]  ;;  %v5639_v0 = vsel %vm1852_vm1, %v1863_v37, %v1871_v40 }
 0x174   : > { %v5535_v58 = vld [vmem:[#allocation2 + $0x20] sm:$0xff]  ;;  %1942 = vmatpush.msra.mxu2 %v3381_v9  ;;  %v3362_v4 = vld [vmem:[%s7106_s1 + $0x1368] sm:$0xff] }
 0x175   : > { %v3449_v41 = vld [vmem:[%s7106_s1 + $0x1620] sm:$0xff]  ;;  %v1857_v20 = vrot.slane %v5535_v58, 1  ;;  %1943 = vmatmul.f32.vlgmr.msra.gmra.mxu2 %v5543_v46  ;;  %v5580_v12 = vsel %vm1852_vm1, %v1853_v50, %v1854_v54  ;;  %1974 = vmatpush.msrb.mxu0 %v3310_v49  ;;  %v3298_v50 = vld [vmem:[%s7106_s1 + $0x1168] sm:$0xff] }
 0x176   : > { %v3321_v35 = vld [vmem:[%s7106_s1 + $0x1220] sm:$0xff]  ;;  %1964 = vmatpush.msra.mxu3 %v3449_v41  ;;  %2019 = vmatpush.msrb.mxu2 %v3442_v48  ;;  %v1580_v41 = vld [vmem:[#allocation2 + $0x70] sm:$0x1]  ;;  %v5619_v48 = vsel %vm1852_vm1, %v1860_v32, %v1869_v42  ;;  %v3494_v32 = vld [vmem:[%s7106_s1 + $0x1788] sm:$0xff] }
 0x177   : > { %v3445_v59 = vld [vmem:[%s7106_s1 + $0x1600] sm:$0xff]  ;;  %1918 = vmatpush.msra.mxu1 %v3321_v35  ;;  %v5588_v61 = vsel %vm1852_vm1, %v1856_v19, %v1857_v20  ;;  %1897 = vmatmul.f32.vlgmr.msra.gmra.mxu0 %v5580_v12  ;;  %v1867_v19 = vrot.slane %v1580_v41, 1  ;;  %v3422_v49 = vld [vmem:[%s7106_s1 + $0x1548] sm:$0xff] }
 0x178   : > { %1965 = vmatpush.msra.mxu3 %v3445_v59  ;;  %v3317_v8 = vld [vmem:[%s7106_s1 + $0x1200] sm:$0xff]  ;;  %2020 = vmatpush.msrb.mxu2 %v3438_v34  ;;  %v927_v59 = vadd.f32 %v5083_v30, %v5069_v39  ;;  %v3294_v39 = vld [vmem:[%s7106_s1 + $0x1148] sm:$0xff] }
 0x179   : > { %1966 = vmatmul.f32.vlgmr.msra.gmra.mxu3 %v5563_v1  ;;  %1919 = vmatpush.msra.mxu1 %v3317_v8  ;;  %v1579_v9 = vld [vmem:[#allocation2 + $0x60] sm:$0x1]  ;;  %v3366_v30 = vld [vmem:[%s7106_s1 + $0x1388] sm:$0xff]  ;;  %v5663_v34 = vsel %vm1852_vm1, %v1857_v20, %v1867_v19 }
 0x17a   : > { %2042 = vmatpush.msrb.mxu3 %v3506_v24  ;;  %1920 = vmatmul.f32.vlgmr.msra.gmra.mxu1 %v5588_v61  ;;  %v1865_v35 = vrot.slane %v1579_v9, 1  ;;  %v950_v2 = vadd.f32 %v5099_v36, %v927_v59  ;;  %v3290_v24 = vld [vmem:[%s7106_s1 + $0x1128] sm:$0xff] }
 0x17b   : > { %1975 = vmatpush.msrb.mxu0 %v3306_v26  ;;  %1996 = vmatpush.msrb.mxu1 %v3378_v31  ;;  %v3418_v36 = vld [vmem:[%s7106_s1 + $0x1528] sm:$0xff]  ;;  %v1312_v31 = vpop.f32.mrf.mxu0 }
 0x17c   : > { %2021 = vmatpush.msrb.mxu2 %v3434_v51  ;;  %2043 = vmatpush.msrb.mxu3 %v3502_v60  ;;  %v5656_v37 = vsel %vm1852_vm1, %v1854_v54, %v1865_v35  ;;  %v3486_v58 = vld [vmem:[%s7106_s1 + $0x1748] sm:$0xff]  ;;  %v973_v8 = vadd.f32 %v5123_v45, %v950_v2  ;;  %v930_v51 = vadd.f32 %v5137_v53, %v5115_v43 }
 0x17d   : > { %1976 = vmatpush.msrb.mxu0 %v3302_v52  ;;  %1997 = vmatpush.msrb.mxu1 %v3374_v10  ;;  %v3286_v54 = vld [vmem:[%s7106_s1 + $0x1108] sm:$0xff] }
 0x17e   : > { %2022 = vmatpush.msrb.mxu2 %v3430_v57  ;;  %2044 = vmatpush.msrb.mxu3 %v3498_v13  ;;  %v3358_v20 = vld [vmem:[%s7106_s1 + $0x1348] sm:$0xff]  ;;  %v1313_v9 = vadd.f32 %v1312_v31, %v973_v8  ;;  %v1335_v40 = vpop.f32.mrf.mxu1 }
 0x17f   : > { %1946 = vmatmul.f32.gmra.mxu2 %v5619_v48  ;;  %1977 = vmatpush.msrb.mxu0 %v3298_v50  ;;  %v3482_v26 = vld [vmem:[%s7106_s1 + $0x1728] sm:$0xff] }
 0x180   : > { %1998 = vmatpush.msrb.mxu1 %v3370_v56  ;;  %2023 = vmatpush.msrb.mxu2 %v3426_v63  ;;  %v3282_v42 = vld [vmem:[%s7106_s1 + $0x10e8] sm:$0xff]  ;;  %v1336_v50 = vadd.f32 %v1335_v40, %v1313_v9  ;;  %v953_v56 = vadd.f32 %v5151_v62, %v930_v51 }
 0x181   : > { %2045 = vmatpush.msrb.mxu3 %v3494_v32  ;;  %1978 = vmatpush.msrb.mxu0 %v3294_v39  ;;  %v3354_v29 = vld [vmem:[%s7106_s1 + $0x1328] sm:$0xff]  ;;  %v1358_v32 = vpop.f32.mrf.mxu2 }
 0x182   : > { %1969 = vmatmul.f32.gmra.mxu3 %v5639_v0  ;;  %1999 = vmatpush.msrb.mxu1 %v3366_v30  ;;  %v3410_v45 = vld [vmem:[%s7106_s1 + $0x14e8] sm:$0xff]  ;;  %v1359_v30 = vadd.f32 %v1358_v32, %v1336_v50  ;;  %v976_v2 = vadd.f32 %v5167_v3, %v953_v56  ;;  %v3311_v50 = vld [vmem:[%s7106_s1 + $0x11d0] sm:$0xff] }
 0x183   : > { %2024 = vmatpush.msrb.mxu2 %v3422_v49  ;;  %2046 = vmatpush.msrb.mxu3 %v3490_v25  ;;  %v3478_v60 = vld [vmem:[%s7106_s1 + $0x1708] sm:$0xff]  ;;  %v3439_v56 = vld [vmem:[%s7106_s1 + $0x15d0] sm:$0xff] }
 0x184   : > { %1900 = vmatmul.f32.gmra.mxu0 %v5656_v37  ;;  %1923 = vmatmul.f32.gmra.mxu1 %v5663_v34  ;;  %v3278_v52 = vld [vmem:[%s7106_s1 + $0x10c8] sm:$0xff]  ;;  %v3307_v32 = vld [vmem:[%s7106_s1 + $0x11b0] sm:$0xff] }
 0x185   : > { %1979 = vmatpush.msrb.mxu0 %v3290_v24  ;;  %2000 = vmatpush.msrb.mxu1 %v3362_v4  ;;  %v3350_v10 = vld [vmem:[%s7106_s1 + $0x1308] sm:$0xff] }
 0x186   : > { %2025 = vmatpush.msrb.mxu2 %v3418_v36  ;;  %2047 = vmatpush.msrb.mxu3 %v3486_v58  ;;  %v3406_v43 = vld [vmem:[%s7106_s1 + $0x14c8] sm:$0xff]  ;;  %v1381_v36 = vpop.f32.mrf.mxu3 }
 0x187   : > { %1980 = vmatpush.msrb.mxu0 %v3286_v54  ;;  %2001 = vmatpush.msrb.mxu1 %v3358_v20  ;;  %v3474_v53 = vld [vmem:[%s7106_s1 + $0x16e8] sm:$0xff]  ;;  %v1315_v54 = vpop.f32.mrf.mxu0  ;;  %v5765_v20 = vadd.f32 %v1381_v36, %v1359_v30  ;;  %v3503_v30 = vld [vmem:[%s7106_s1 + $0x17d0] sm:$0xff] }
 0x188   : > { %2026 = vmatpush.msrb.mxu2 %v3414_v6  ;;  %2048 = vmatpush.msrb.mxu3 %v3482_v26  ;;  %v3274_v57 = vld [vmem:[%s7106_s1 + $0x10a8] sm:$0xff]  ;;  %v1316_v26 = vadd.f32 %v1315_v54, %v976_v2  ;;  %v1338_v51 = vpop.f32.mrf.mxu1  ;;  %v3431_v2 = vld [vmem:[%s7106_s1 + $0x1590] sm:$0xff] }
 0x189   : > { %1981 = vmatpush.msrb.mxu0 %v3282_v42  ;;  %2002 = vmatpush.msrb.mxu1 %v3354_v29  ;;  %v3346_v41 = vld [vmem:[%s7106_s1 + $0x12e8] sm:$0xff]  ;;  %v3371_v36 = vld [vmem:[%s7106_s1 + $0x13b0] sm:$0xff] }
 0x18a   : > { %2027 = vmatpush.msrb.mxu2 %v3410_v45  ;;  %2049 = vmatpush.msrb.mxu3 %v3478_v60  ;;  %v3402_v13 = vld [vmem:[%s7106_s1 + $0x14a8] sm:$0xff]  ;;  %v1339_v9 = vadd.f32 %v1338_v51, %v1316_v26  ;;  %v3495_v54 = vld [vmem:[%s7106_s1 + $0x1790] sm:$0xff] }
 0x18b   : > { %1982 = vmatpush.msrb.mxu0 %v3278_v52  ;;  %2003 = vmatpush.msrb.mxu1 %v3350_v10  ;;  %v3470_v35 = vld [vmem:[%s7106_s1 + $0x16c8] sm:$0xff]  ;;  %v3359_v51 = vld [vmem:[%s7106_s1 + $0x1350] sm:$0xff] }
 0x18c   : > { %2028 = vmatpush.msrb.mxu2 %v3406_v43  ;;  %v3270_v59 = vld [vmem:[%s7106_s1 + $0x1088] sm:$0xff]  ;;  %2050 = vmatpush.msrb.mxu3 %v3474_v53  ;;  %v3315_v43 = vld [vmem:[%s7106_s1 + $0x11f0] sm:$0xff] }
 0x18d   : > { %1983 = vmatpush.msrb.mxu0 %v3274_v57  ;;  %v3342_v63 = vld [vmem:[%s7106_s1 + $0x12c8] sm:$0xff]  ;;  %2004 = vmatpush.msrb.mxu1 %v3346_v41  ;;  %v3443_v53 = vld [vmem:[%s7106_s1 + $0x15f0] sm:$0xff]  ;;  %v1361_v57 = vpop.f32.mrf.mxu2 }
 0x18e   : > { %v3398_v62 = vld [vmem:[%s7106_s1 + $0x1488] sm:$0xff]  ;;  %2029 = vmatpush.msrb.mxu2 %v3402_v13  ;;  %2051 = vmatpush.msrb.mxu3 %v3470_v35  ;;  %v1362_v13 = vadd.f32 %v1361_v57, %v1339_v9  ;;  %v3507_v35 = vld [vmem:[%s7106_s1 + $0x17f0] sm:$0xff]  ;;  %v1022_v57 = vadd.f32 %v5265_v55, %v5245_v15 }
 0x18f   : > { %v3466_v19 = vld [vmem:[%s7106_s1 + $0x16a8] sm:$0xff]  ;;  %1984 = vmatpush.msrb.mxu0 %v3270_v59  ;;  %2005 = vmatpush.msrb.mxu1 %v3342_v63  ;;  %v1384_v59 = vpop.f32.mrf.mxu3  ;;  %v3483_v9 = vld [vmem:[%s7106_s1 + $0x1730] sm:$0xff] }
 0x190   : > { %v3266_v39 = vld [vmem:[%s7106_s1 + $0x1068] sm:$0xff]  ;;  %2030 = vmatpush.msrb.mxu2 %v3398_v62  ;;  %2052 = vmatpush.msrb.mxu3 %v3466_v19  ;;  %v5819_v62 = vadd.f32 %v1384_v59, %v1362_v13  ;;  %v3379_v19 = vld [vmem:[%s7106_s1 + $0x13f0] sm:$0xff] }
 0x191   : > { %v3338_v49 = vld [vmem:[%s7106_s1 + $0x12a8] sm:$0xff]  ;;  %1985 = vmatpush.msrb.mxu0 %v3266_v39  ;;  %v3435_v39 = vld [vmem:[%s7106_s1 + $0x15b0] sm:$0xff] }
 0x192   : > { %v3394_v25 = vld [vmem:[%s7106_s1 + $0x1468] sm:$0xff]  ;;  %2006 = vmatpush.msrb.mxu1 %v3338_v49  ;;  %v3303_v49 = vld [vmem:[%s7106_s1 + $0x1190] sm:$0xff] }
 0x193   : > { %v3462_v24 = vld [vmem:[%s7106_s1 + $0x1688] sm:$0xff]  ;;  %2031 = vmatpush.msrb.mxu2 %v3394_v25  ;;  %v3375_v25 = vld [vmem:[%s7106_s1 + $0x13d0] sm:$0xff] }
 0x194   : > { %v3262_v4 = vld [vmem:[%s7106_s1 + $0x1048] sm:$0xff]  ;;  %2053 = vmatpush.msrb.mxu3 %v3462_v24  ;;  %v3499_v24 = vld [vmem:[%s7106_s1 + $0x17b0] sm:$0xff] }
 0x195   : > { %v3334_v58 = vld [vmem:[%s7106_s1 + $0x1288] sm:$0xff]  ;;  %1986 = vmatpush.msrb.mxu0 %v3262_v4  ;;  %v3299_v4 = vld [vmem:[%s7106_s1 + $0x1170] sm:$0xff] }
 0x196   : > { %v3390_v3 = vld [vmem:[%s7106_s1 + $0x1448] sm:$0xff]  ;;  %2007 = vmatpush.msrb.mxu1 %v3334_v58  ;;  %v1019_v58 = vadd.f32 %v5197_v21, %v5177_v7  ;;  %v3367_v7 = vld [vmem:[%s7106_s1 + $0x1390] sm:$0xff] }
 0x197   : > { %v3458_v6 = vld [vmem:[%s7106_s1 + $0x1668] sm:$0xff]  ;;  %2032 = vmatpush.msrb.mxu2 %v3390_v3  ;;  %v3427_v3 = vld [vmem:[%s7106_s1 + $0x1570] sm:$0xff] }
 0x198   : > { %v3258_v8 = vld [vmem:[%s7106_s1 + $0x1028] sm:$0xff]  ;;  %2054 = vmatpush.msrb.mxu3 %v3458_v6  ;;  %v3295_v6 = vld [vmem:[%s7106_s1 + $0x1150] sm:$0xff]  ;;  %v1042_v26 = vadd.f32 %v5217_v28, %v1019_v58 }
 0x199   : > { %v3330_v42 = vld [vmem:[%s7106_s1 + $0x1268] sm:$0xff]  ;;  %1987 = vmatpush.msrb.mxu0 %v3258_v8  ;;  %v3423_v21 = vld [vmem:[%s7106_s1 + $0x1550] sm:$0xff] }
 0x19a   : > { %v3386_v29 = vld [vmem:[%s7106_s1 + $0x1428] sm:$0xff]  ;;  %2008 = vmatpush.msrb.mxu1 %v3330_v42  ;;  %v3491_v8 = vld [vmem:[%s7106_s1 + $0x1770] sm:$0xff] }
 0x19b   : > { %v3454_v45 = vld [vmem:[%s7106_s1 + $0x1648] sm:$0xff]  ;;  %2033 = vmatpush.msrb.mxu2 %v3386_v29  ;;  %v3291_v42 = vld [vmem:[%s7106_s1 + $0x1130] sm:$0xff] }
 0x19c   : > { %v3254_v31 = vld [vmem:[%s7106_s1 + $0x1008] sm:$0xff]  ;;  %2055 = vmatpush.msrb.mxu3 %v3454_v45  ;;  %v3363_v29 = vld [vmem:[%s7106_s1 + $0x1370] sm:$0xff] }
 0x19d   : > { %v3326_v60 = vld [vmem:[%s7106_s1 + $0x1248] sm:$0xff]  ;;  %1988 = vmatpush.msrb.mxu0 %v3254_v31  ;;  %v3419_v45 = vld [vmem:[%s7106_s1 + $0x1530] sm:$0xff] }
 0x19e   : > { %v3382_v52 = vld [vmem:[%s7106_s1 + $0x1408] sm:$0xff]  ;;  %2009 = vmatpush.msrb.mxu1 %v3326_v60  ;;  %1989 = vmatmul.f32.vlgmr.msrb.gmra.mxu0 %v5580_v12  ;;  %v3487_v28 = vld [vmem:[%s7106_s1 + $0x1750] sm:$0xff] }
 0x19f   : > { %v3450_v10 = vld [vmem:[%s7106_s1 + $0x1628] sm:$0xff]  ;;  %2034 = vmatpush.msrb.mxu2 %v3382_v52  ;;  %2065 = vmatpush.msra.mxu0 %v3315_v43  ;;  %v3287_v31 = vld [vmem:[%s7106_s1 + $0x1110] sm:$0xff]  ;;  %v1065_v52 = vadd.f32 %v5237_v38, %v1042_v26 }
 0x1a0   : > { %v3322_v40 = vld [vmem:[%s7106_s1 + $0x1228] sm:$0xff]  ;;  %2056 = vmatpush.msrb.mxu3 %v3450_v10  ;;  %2035 = vmatmul.f32.vlgmr.msrb.gmra.mxu2 %v5543_v46  ;;  %v3415_v60 = vld [vmem:[%s7106_s1 + $0x1510] sm:$0xff] }
 0x1a1   : > { %v3446_v41 = vld [vmem:[%s7106_s1 + $0x1608] sm:$0xff]  ;;  %2111 = vmatpush.msra.mxu2 %v3443_v53  ;;  %2010 = vmatpush.msrb.mxu1 %v3322_v40  ;;  %v3283_v10 = vld [vmem:[%s7106_s1 + $0x10f0] sm:$0xff]  ;;  %v1404_v53 = vpop.f32.mrf.mxu0 }
 0x1a2   : > { %2057 = vmatpush.msrb.mxu3 %v3446_v41  ;;  %v3318_v63 = vld [vmem:[%s7106_s1 + $0x1208] sm:$0xff]  ;;  %2066 = vmatpush.msra.mxu0 %v3311_v50  ;;  %v3355_v43 = vld [vmem:[%s7106_s1 + $0x1330] sm:$0xff]  ;;  %v1405_v13 = vadd.f32 %v1404_v53, %v1065_v52  ;;  %v3316_v53 = vld [vmem:[%s7106_s1 + $0x11f8] sm:$0xff] }
 0x1a3   : > { %2058 = vmatmul.f32.vlgmr.msrb.gmra.mxu3 %v5563_v1  ;;  %2112 = vmatpush.msra.mxu2 %v3439_v56  ;;  %v3411_v38 = vld [vmem:[%s7106_s1 + $0x14f0] sm:$0xff] }
 0x1a4   : > { %2134 = vmatpush.msra.mxu3 %v3507_v35  ;;  %2011 = vmatpush.msrb.mxu1 %v3318_v63  ;;  %v3479_v40 = vld [vmem:[%s7106_s1 + $0x1710] sm:$0xff]  ;;  %v1427_v35 = vpop.f32.mrf.mxu1 }
 0x1a5   : > { %2012 = vmatmul.f32.vlgmr.msrb.gmra.mxu1 %v5588_v61  ;;  %2067 = vmatpush.msra.mxu0 %v3307_v32  ;;  %v3279_v41 = vld [vmem:[%s7106_s1 + $0x10d0] sm:$0xff]  ;;  %v1428_v32 = vadd.f32 %v1427_v35, %v1405_v13 }
 0x1a6   : > { %2088 = vmatpush.msra.mxu1 %v3379_v19  ;;  %2113 = vmatpush.msra.mxu2 %v3435_v39  ;;  %v3351_v50 = vld [vmem:[%s7106_s1 + $0x1310] sm:$0xff]  ;;  %v1045_v19 = vadd.f32 %v5285_v5, %v1022_v57  ;;  %v3444_v57 = vld [vmem:[%s7106_s1 + $0x15f8] sm:$0xff] }
 0x1a7   : > { %2135 = vmatpush.msra.mxu3 %v3503_v30  ;;  %2068 = vmatpush.msra.mxu0 %v3303_v49  ;;  %v3407_v15 = vld [vmem:[%s7106_s1 + $0x14d0] sm:$0xff] }
 0x1a8   : > { %2089 = vmatpush.msra.mxu1 %v3375_v25  ;;  %2114 = vmatpush.msra.mxu2 %v3431_v2  ;;  %v3475_v55 = vld [vmem:[%s7106_s1 + $0x16f0] sm:$0xff]  ;;  %v1450_v25 = vpop.f32.mrf.mxu2 }
 0x1a9   : > { %2136 = vmatpush.msra.mxu3 %v3499_v24  ;;  %2038 = vmatmul.f32.gmra.mxu2 %v5619_v48  ;;  %v3275_v56 = vld [vmem:[%s7106_s1 + $0x10b0] sm:$0xff] }
 0x1aa   : > { %2069 = vmatpush.msra.mxu0 %v3299_v4  ;;  %2090 = vmatpush.msra.mxu1 %v3371_v36  ;;  %v3347_v59 = vld [vmem:[%s7106_s1 + $0x12f0] sm:$0xff]  ;;  %v1451_v4 = vadd.f32 %v1450_v25, %v1428_v32  ;;  %v3308_v32 = vld [vmem:[%s7106_s1 + $0x11b8] sm:$0xff] }
 0x1ab   : > { %2115 = vmatpush.msra.mxu2 %v3427_v3  ;;  %2137 = vmatpush.msra.mxu3 %v3495_v54  ;;  %v3403_v63 = vld [vmem:[%s7106_s1 + $0x14b0] sm:$0xff]  ;;  %v1068_v3 = vadd.f32 %v5305_v17, %v1045_v19  ;;  %v3380_v19 = vld [vmem:[%s7106_s1 + $0x13f8] sm:$0xff] }
 0x1ac   : > { %2061 = vmatmul.f32.gmra.mxu3 %v5639_v0  ;;  %2070 = vmatpush.msra.mxu0 %v3295_v6  ;;  %v3471_v39 = vld [vmem:[%s7106_s1 + $0x16d0] sm:$0xff]  ;;  %v1430_v52 = vpop.f32.mrf.mxu1  ;;  %v3432_v25 = vld [vmem:[%s7106_s1 + $0x1598] sm:$0xff] }
 0x1ad   : > { %2091 = vmatpush.msra.mxu1 %v3367_v7  ;;  %2116 = vmatpush.msra.mxu2 %v3423_v21  ;;  %v3271_v30 = vld [vmem:[%s7106_s1 + $0x1090] sm:$0xff]  ;;  %v1473_v7 = vpop.f32.mrf.mxu3 }
 0x1ae   : > { %2138 = vmatpush.msra.mxu3 %v3491_v8  ;;  %1992 = vmatmul.f32.gmra.mxu0 %v5656_v37  ;;  %v3343_v49 = vld [vmem:[%s7106_s1 + $0x12d0] sm:$0xff]  ;;  %v1407_v8 = vpop.f32.mrf.mxu0  ;;  %v5977_v26 = vadd.f32 %v1473_v7, %v1451_v4  ;;  %v3372_v4 = vld [vmem:[%s7106_s1 + $0x13b8] sm:$0xff] }
 0x1af   : > { %2015 = vmatmul.f32.gmra.mxu1 %v5663_v34  ;;  %2071 = vmatpush.msra.mxu0 %v3291_v42  ;;  %v3399_v5 = vld [vmem:[%s7106_s1 + $0x1490] sm:$0xff] }
 0x1b0   : > { %2092 = vmatpush.msra.mxu1 %v3363_v29  ;;  %2117 = vmatpush.msra.mxu2 %v3419_v45  ;;  %v3467_v2 = vld [vmem:[%s7106_s1 + $0x16b0] sm:$0xff]  ;;  %v1408_v45 = vadd.f32 %v1407_v8, %v1068_v3  ;;  %v3496_v3 = vld [vmem:[%s7106_s1 + $0x1798] sm:$0xff] }
 0x1b1   : > { %2139 = vmatpush.msra.mxu3 %v3487_v28  ;;  %2072 = vmatpush.msra.mxu0 %v3287_v31  ;;  %v3267_v24 = vld [vmem:[%s7106_s1 + $0x1070] sm:$0xff]  ;;  %v3420_v8 = vld [vmem:[%s7106_s1 + $0x1538] sm:$0xff] }
 0x1b2   : > { %2093 = vmatpush.msra.mxu1 %v3359_v51  ;;  %2118 = vmatpush.msra.mxu2 %v3415_v60  ;;  %v3339_v36 = vld [vmem:[%s7106_s1 + $0x12b0] sm:$0xff] }
 0x1b3   : > { %2140 = vmatpush.msra.mxu3 %v3483_v9  ;;  %2073 = vmatpush.msra.mxu0 %v3283_v10  ;;  %v3395_v58 = vld [vmem:[%s7106_s1 + $0x1470] sm:$0xff] }
 0x1b4   : > { %2094 = vmatpush.msra.mxu1 %v3355_v43  ;;  %2119 = vmatpush.msra.mxu2 %v3411_v38  ;;  %v3463_v54 = vld [vmem:[%s7106_s1 + $0x1690] sm:$0xff]  ;;  %v1431_v43 = vadd.f32 %v1430_v52, %v1408_v45  ;;  %v3416_v45 = vld [vmem:[%s7106_s1 + $0x1518] sm:$0xff] }
 0x1b5   : > { %2141 = vmatpush.msra.mxu3 %v3479_v40  ;;  %2074 = vmatpush.msra.mxu0 %v3279_v41  ;;  %v3263_v6 = vld [vmem:[%s7106_s1 + $0x1050] sm:$0xff]  ;;  %v1453_v40 = vpop.f32.mrf.mxu2  ;;  %v1476_v35 = vpop.f32.mrf.mxu3  ;;  %v3356_v52 = vld [vmem:[%s7106_s1 + $0x1338] sm:$0xff] }
 0x1b6   : > { %2095 = vmatpush.msra.mxu1 %v3351_v50  ;;  %2120 = vmatpush.msra.mxu2 %v3407_v15  ;;  %v3335_v21 = vld [vmem:[%s7106_s1 + $0x1290] sm:$0xff]  ;;  %v1454_v50 = vadd.f32 %v1453_v40, %v1431_v43  ;;  %v3312_v15 = vld [vmem:[%s7106_s1 + $0x11d8] sm:$0xff] }
 0x1b7   : > { %2142 = vmatpush.msra.mxu3 %v3475_v55  ;;  %2075 = vmatpush.msra.mxu0 %v3275_v56  ;;  %v3391_v17 = vld [vmem:[%s7106_s1 + $0x1450] sm:$0xff]  ;;  %v3440_v55 = vld [vmem:[%s7106_s1 + $0x15d8] sm:$0xff] }
 0x1b8   : > { %2096 = vmatpush.msra.mxu1 %v3347_v59  ;;  %2121 = vmatpush.msra.mxu2 %v3403_v63  ;;  %v3459_v42 = vld [vmem:[%s7106_s1 + $0x1670] sm:$0xff]  ;;  %v3508_v56 = vld [vmem:[%s7106_s1 + $0x17f8] sm:$0xff]  ;;  %v6031_v63 = vadd.f32 %v1476_v35, %v1454_v50 }
 0x1b9   : > { %2143 = vmatpush.msra.mxu3 %v3471_v39  ;;  %2076 = vmatpush.msra.mxu0 %v3271_v30  ;;  %v3259_v29 = vld [vmem:[%s7106_s1 + $0x1030] sm:$0xff]  ;;  %v3436_v39 = vld [vmem:[%s7106_s1 + $0x15b8] sm:$0xff] }
 0x1ba   : > { %2097 = vmatpush.msra.mxu1 %v3343_v49  ;;  %2122 = vmatpush.msra.mxu2 %v3399_v5  ;;  %v3331_v28 = vld [vmem:[%s7106_s1 + $0x1270] sm:$0xff]  ;;  %v3504_v30 = vld [vmem:[%s7106_s1 + $0x17d8] sm:$0xff] }
 0x1bb   : > { %2144 = vmatpush.msra.mxu3 %v3467_v2  ;;  %2077 = vmatpush.msra.mxu0 %v3267_v24  ;;  %v3387_v31 = vld [vmem:[%s7106_s1 + $0x1430] sm:$0xff]  ;;  %v3304_v49 = vld [vmem:[%s7106_s1 + $0x1198] sm:$0xff] }
 0x1bc   : > { %2098 = vmatpush.msra.mxu1 %v3339_v36  ;;  %2123 = vmatpush.msra.mxu2 %v3395_v58  ;;  %v3455_v51 = vld [vmem:[%s7106_s1 + $0x1650] sm:$0xff]  ;;  %v3376_v5 = vld [vmem:[%s7106_s1 + $0x13d8] sm:$0xff]  ;;  %v1111_v36 = vadd.f32 %v5323_v27, %v5307_v22 }
 0x1bd   : > { %2145 = vmatpush.msra.mxu3 %v3463_v54  ;;  %2078 = vmatpush.msra.mxu0 %v3263_v6  ;;  %v3255_v60 = vld [vmem:[%s7106_s1 + $0x1010] sm:$0xff]  ;;  %v3500_v2 = vld [vmem:[%s7106_s1 + $0x17b8] sm:$0xff] }
 0x1be   : > { %2099 = vmatpush.msra.mxu1 %v3335_v21  ;;  %2124 = vmatpush.msra.mxu2 %v3391_v17  ;;  %v3327_v9 = vld [vmem:[%s7106_s1 + $0x1250] sm:$0xff]  ;;  %v3300_v24 = vld [vmem:[%s7106_s1 + $0x1178] sm:$0xff]  ;;  %v1134_v7 = vadd.f32 %v5345_v33, %v1111_v36 }
 0x1bf   : > { %2146 = vmatpush.msra.mxu3 %v3459_v42  ;;  %2079 = vmatpush.msra.mxu0 %v3259_v29  ;;  %v3383_v10 = vld [vmem:[%s7106_s1 + $0x1410] sm:$0xff]  ;;  %v3428_v58 = vld [vmem:[%s7106_s1 + $0x1578] sm:$0xff] }
 0x1c0   : > { %2100 = vmatpush.msra.mxu1 %v3331_v28  ;;  %2125 = vmatpush.msra.mxu2 %v3387_v31  ;;  %v3451_v38 = vld [vmem:[%s7106_s1 + $0x1630] sm:$0xff]  ;;  %v3296_v54 = vld [vmem:[%s7106_s1 + $0x1158] sm:$0xff]  ;;  %v1157_v28 = vadd.f32 %v5362_v18, %v1134_v7 }
 0x1c1   : > { %2147 = vmatpush.msra.mxu3 %v3455_v51  ;;  %2080 = vmatpush.msra.mxu0 %v3255_v60  ;;  %v3323_v41 = vld [vmem:[%s7106_s1 + $0x1230] sm:$0xff]  ;;  %v3368_v22 = vld [vmem:[%s7106_s1 + $0x1398] sm:$0xff]  ;;  %v1114_v60 = vadd.f32 %v5385_v44, %v5367_v47 }
 0x1c2   : > { %2101 = vmatpush.msra.mxu1 %v3327_v9  ;;  %2126 = vmatpush.msra.mxu2 %v3383_v10  ;;  %v3447_v13 = vld [vmem:[%s7106_s1 + $0x1610] sm:$0xff]  ;;  %v3424_v27 = vld [vmem:[%s7106_s1 + $0x1558] sm:$0xff] }
 0x1c3   : > { %2148 = vmatpush.msra.mxu3 %v3451_v38  ;;  %2127 = vmatmul.f32.vlgmr.msra.gmra.mxu2 %v5543_v46  ;;  %v3319_v59 = vld [vmem:[%s7106_s1 + $0x1210] sm:$0xff]  ;;  %v3492_v6 = vld [vmem:[%s7106_s1 + $0x1778] sm:$0xff] }
 0x1c4   : > { %2157 = vmatpush.msrb.mxu0 %v3316_v53  ;;  %2203 = vmatpush.msrb.mxu2 %v3444_v57  ;;  %v3292_v21 = vld [vmem:[%s7106_s1 + $0x1138] sm:$0xff]  ;;  %v1496_v9 = vpop.f32.mrf.mxu0 }
 0x1c5   : > { %2102 = vmatpush.msra.mxu1 %v3323_v41  ;;  %2149 = vmatpush.msra.mxu3 %v3447_v13  ;;  %v3364_v17 = vld [vmem:[%s7106_s1 + $0x1378] sm:$0xff]  ;;  %v1497_v44 = vadd.f32 %v1496_v9, %v1157_v28  ;;  %v1137_v41 = vadd.f32 %v5408_v23, %v1114_v60 }
 0x1c6   : > { %2150 = vmatmul.f32.vlgmr.msra.gmra.mxu3 %v5563_v1  ;;  %2158 = vmatpush.msrb.mxu0 %v3312_v15  ;;  %v3488_v33 = vld [vmem:[%s7106_s1 + $0x1758] sm:$0xff] }
 0x1c7   : > { %2204 = vmatpush.msrb.mxu2 %v3440_v55  ;;  %2226 = vmatpush.msrb.mxu3 %v3508_v56  ;;  %v3288_v42 = vld [vmem:[%s7106_s1 + $0x1118] sm:$0xff] }
 0x1c8   : > { %2103 = vmatpush.msra.mxu1 %v3319_v59  ;;  %2081 = vmatmul.f32.vlgmr.msra.gmra.mxu0 %v5580_v12  ;;  %v3360_v29 = vld [vmem:[%s7106_s1 + $0x1358] sm:$0xff]  ;;  %v1519_v40 = vpop.f32.mrf.mxu1 }
 0x1c9   : > { %2104 = vmatmul.f32.vlgmr.msra.gmra.mxu1 %v5588_v61  ;;  %2159 = vmatpush.msrb.mxu0 %v3308_v32  ;;  %v3484_v31 = vld [vmem:[%s7106_s1 + $0x1738] sm:$0xff]  ;;  %v1520_v15 = vadd.f32 %v1519_v40, %v1497_v44  ;;  %v2331_v44 = vld [vmem:[%s7108_s3 + $0x180] sm:$0xff] }
 0x1ca   : > { %2180 = vmatpush.msrb.mxu1 %v3380_v19  ;;  %2205 = vmatpush.msrb.mxu2 %v3436_v39  ;;  %v3284_v51 = vld [vmem:[%s7106_s1 + $0x10f8] sm:$0xff]  ;;  %v2383_v40 = vld [vmem:[%s7108_s3 + $0x320] sm:$0xff] }
 0x1cb   : > { %2227 = vmatpush.msrb.mxu3 %v3504_v30  ;;  %2160 = vmatpush.msrb.mxu0 %v3304_v49  ;;  %v3412_v18 = vld [vmem:[%s7106_s1 + $0x14f8] sm:$0xff]  ;;  %v1160_v30 = vadd.f32 %v5429_v16, %v1137_v41  ;;  %v2307_v41 = vld [vmem:[%s7108_s3 + $0xc0] sm:$0xff] }
 0x1cc   : > { %2181 = vmatpush.msrb.mxu1 %v3376_v5  ;;  %2206 = vmatpush.msrb.mxu2 %v3432_v25  ;;  %v3480_v10 = vld [vmem:[%s7106_s1 + $0x1718] sm:$0xff]  ;;  %v1542_v59 = vpop.f32.mrf.mxu2 }
 0x1cd   : > { %2228 = vmatpush.msrb.mxu3 %v3500_v2  ;;  %2130 = vmatmul.f32.gmra.mxu2 %v5619_v48  ;;  %v3280_v47 = vld [vmem:[%s7106_s1 + $0x10d8] sm:$0xff]  ;;  %v1543_v39 = vadd.f32 %v1542_v59, %v1520_v15  ;;  %v2467_v15 = vld [vmem:[%s7108_s3 + $0x5c0] sm:$0xff] }
 0x1ce   : > { %2161 = vmatpush.msrb.mxu0 %v3300_v24  ;;  %2182 = vmatpush.msrb.mxu1 %v3372_v4  ;;  %v3352_v43 = vld [vmem:[%s7106_s1 + $0x1318] sm:$0xff]  ;;  %v2295_v59 = vld [vmem:[%s7108_s3 + $0x60] sm:$0xff] }
 0x1cf   : > { %2207 = vmatpush.msrb.mxu2 %v3428_v58  ;;  %2229 = vmatpush.msrb.mxu3 %v3496_v3  ;;  %v3408_v38 = vld [vmem:[%s7106_s1 + $0x14d8] sm:$0xff]  ;;  %v1499_v2 = vpop.f32.mrf.mxu0  ;;  %v1565_v24 = vpop.f32.mrf.mxu3 }
 0x1d0   : > { %2153 = vmatmul.f32.gmra.mxu3 %v5639_v0  ;;  %2162 = vmatpush.msrb.mxu0 %v3296_v54  ;;  %v3476_v53 = vld [vmem:[%s7106_s1 + $0x16f8] sm:$0xff]  ;;  %v1500_v58 = vadd.f32 %v1499_v2, %v1160_v30  ;;  %v6189_v3 = vadd.f32 %v1565_v24, %v1543_v39  ;;  %v6330_v2 = vld [vmem:[%s7107_s2] sm:$0xf] }
 0x1d1   : > { %2183 = vmatpush.msrb.mxu1 %v3368_v22  ;;  %2208 = vmatpush.msrb.mxu2 %v3424_v27  ;;  %v3276_v57 = vld [vmem:[%s7106_s1 + $0x10b8] sm:$0xff]  ;;  %v2363_v24 = vld [vmem:[%s7108_s3 + $0x280] sm:$0xff] }
 0x1d2   : > { %2230 = vmatpush.msrb.mxu3 %v3492_v6  ;;  %2084 = vmatmul.f32.gmra.mxu0 %v5656_v37  ;;  %v3348_v13 = vld [vmem:[%s7106_s1 + $0x12f8] sm:$0xff]  ;;  %v1522_v7 = vpop.f32.mrf.mxu1 }
 0x1d3   : > { %2107 = vmatmul.f32.gmra.mxu1 %v5663_v34  ;;  %2163 = vmatpush.msrb.mxu0 %v3292_v21  ;;  %v3404_v50 = vld [vmem:[%s7106_s1 + $0x14b8] sm:$0xff] }
 0x1d4   : > { %2184 = vmatpush.msrb.mxu1 %v3364_v17  ;;  %2209 = vmatpush.msrb.mxu2 %v3420_v8  ;;  %v3472_v55 = vld [vmem:[%s7106_s1 + $0x16d8] sm:$0xff]  ;;  %v1523_v8 = vadd.f32 %v1522_v7, %v1500_v58  ;;  %v2259_v7 = vperm.slane %v6330_v2, 0 }
 0x1d5   : > { %2231 = vmatpush.msrb.mxu3 %v3488_v33  ;;  %2164 = vmatpush.msrb.mxu0 %v3288_v42  ;;  %v3272_v23 = vld [vmem:[%s7106_s1 + $0x1098] sm:$0xff] }
 0x1d6   : > { %2185 = vmatpush.msrb.mxu1 %v3360_v29  ;;  %2210 = vmatpush.msrb.mxu2 %v3416_v45  ;;  %v3344_v56 = vld [vmem:[%s7106_s1 + $0x12d8] sm:$0xff]  ;;  %v2343_v45 = vld [vmem:[%s7108_s3 + $0x1e0] sm:$0xff] }
 0x1d7   : > { %2232 = vmatpush.msrb.mxu3 %v3484_v31  ;;  %2165 = vmatpush.msrb.mxu0 %v3284_v51  ;;  %v3400_v35 = vld [vmem:[%s7106_s1 + $0x1498] sm:$0xff]  ;;  %v1545_v31 = vpop.f32.mrf.mxu2 }
 0x1d8   : > { %2186 = vmatpush.msrb.mxu1 %v3356_v52  ;;  %2211 = vmatpush.msrb.mxu2 %v3412_v18  ;;  %v3468_v32 = vld [vmem:[%s7106_s1 + $0x16b8] sm:$0xff]  ;;  %v1546_v60 = vadd.f32 %v1545_v31, %v1523_v8  ;;  %v2339_v52 = vld [vmem:[%s7108_s3 + $0x1c0] sm:$0xff]  ;;  %v1568_v9 = vpop.f32.mrf.mxu3 }
 0x1d9   : > { %2233 = vmatpush.msrb.mxu3 %v3480_v10  ;;  %2166 = vmatpush.msrb.mxu0 %v3280_v47  ;;  %v3268_v19 = vld [vmem:[%s7106_s1 + $0x1078] sm:$0xff]  ;;  %v2335_v10 = vld [vmem:[%s7108_s3 + $0x1a0] sm:$0xff] }
 0x1da   : > { %2187 = vmatpush.msrb.mxu1 %v3352_v43  ;;  %2212 = vmatpush.msrb.mxu2 %v3408_v38  ;;  %v3340_v49 = vld [vmem:[%s7106_s1 + $0x12b8] sm:$0xff]  ;;  %v6238_v47 = vadd.f32 %v1568_v9, %v1546_v60  ;;  %v2399_v43 = vld [vmem:[%s7108_s3 + $0x3a0] sm:$0xff] }
 0x1db   : > { %2234 = vmatpush.msrb.mxu3 %v3476_v53  ;;  %2167 = vmatpush.msrb.mxu0 %v3276_v57  ;;  %v3396_v5 = vld [vmem:[%s7106_s1 + $0x1478] sm:$0xff]  ;;  %v2395_v38 = vld [vmem:[%s7108_s3 + $0x380] sm:$0xff] }
 0x1dc   : > { %2188 = vmatpush.msrb.mxu1 %v3348_v13  ;;  %2213 = vmatpush.msrb.mxu2 %v3404_v50  ;;  %v3464_v25 = vld [vmem:[%s7106_s1 + $0x1698] sm:$0xff]  ;;  %v2319_v53 = vld [vmem:[%s7108_s3 + $0x120] sm:$0xff] }
 0x1dd   : > { %2235 = vmatpush.msrb.mxu3 %v3472_v55  ;;  %2168 = vmatpush.msrb.mxu0 %v3272_v23  ;;  %v3264_v16 = vld [vmem:[%s7106_s1 + $0x1058] sm:$0xff]  ;;  %v2315_v57 = vld [vmem:[%s7108_s3 + $0x100] sm:$0xff] }
 0x1de   : > { %2189 = vmatpush.msrb.mxu1 %v3344_v56  ;;  %2214 = vmatpush.msrb.mxu2 %v3400_v35  ;;  %v3336_v4 = vld [vmem:[%s7106_s1 + $0x1298] sm:$0xff]  ;;  %v2379_v13 = vld [vmem:[%s7108_s3 + $0x300] sm:$0xff] }
 0x1df   : > { %2236 = vmatpush.msrb.mxu3 %v3468_v32  ;;  %2169 = vmatpush.msrb.mxu0 %v3268_v19  ;;  %v3392_v36 = vld [vmem:[%s7106_s1 + $0x1458] sm:$0xff]  ;;  %v2303_v50 = vld [vmem:[%s7108_s3 + $0xa0] sm:$0xff] }
 0x1e0   : > { %2190 = vmatpush.msrb.mxu1 %v3340_v49  ;;  %2215 = vmatpush.msrb.mxu2 %v3396_v5  ;;  %v3460_v54 = vld [vmem:[%s7106_s1 + $0x1678] sm:$0xff]  ;;  %v2375_v55 = vld [vmem:[%s7108_s3 + $0x2e0] sm:$0xff] }
 0x1e1   : > { %v3260_v22 = vld [vmem:[%s7106_s1 + $0x1038] sm:$0xff]  ;;  %2237 = vmatpush.msrb.mxu3 %v3464_v25  ;;  %2170 = vmatpush.msrb.mxu0 %v3264_v16  ;;  %v2299_v23 = vld [vmem:[%s7108_s3 + $0x80] sm:$0xff] }
 0x1e2   : > { %v3332_v27 = vld [vmem:[%s7106_s1 + $0x1278] sm:$0xff]  ;;  %2191 = vmatpush.msrb.mxu1 %v3336_v4  ;;  %2216 = vmatpush.msrb.mxu2 %v3392_v36  ;;  %v2463_v56 = vld [vmem:[%s7108_s3 + $0x5a0] sm:$0xff] }
 0x1e3   : > { %v3388_v6 = vld [vmem:[%s7106_s1 + $0x1438] sm:$0xff]  ;;  %2238 = vmatpush.msrb.mxu3 %v3460_v54  ;;  %2171 = vmatpush.msrb.mxu0 %v3260_v22  ;;  %v2371_v35 = vld [vmem:[%s7108_s3 + $0x2c0] sm:$0xff] }
 0x1e4   : > { %v3456_v21 = vld [vmem:[%s7106_s1 + $0x1658] sm:$0xff]  ;;  %2192 = vmatpush.msrb.mxu1 %v3332_v27  ;;  %2217 = vmatpush.msrb.mxu2 %v3388_v6  ;;  %v2459_v19 = vld [vmem:[%s7108_s3 + $0x580] sm:$0xff] }
 0x1e5   : > { %v3256_v17 = vld [vmem:[%s7106_s1 + $0x1018] sm:$0xff]  ;;  %2239 = vmatpush.msrb.mxu3 %v3456_v21  ;;  %v2367_v49 = vld [vmem:[%s7108_s3 + $0x2a0] sm:$0xff] }
 0x1e6   : > { %v3328_v33 = vld [vmem:[%s7106_s1 + $0x1258] sm:$0xff]  ;;  %2172 = vmatpush.msrb.mxu0 %v3256_v17  ;;  %v2291_v5 = vld [vmem:[%s7108_s3 + $0x40] sm:$0xff]  ;;  %v2344_v17 = vld [vmem:[%s7108_s3 + $0x1e8] sm:$0xff] }
 0x1e7   : > { %v3384_v42 = vld [vmem:[%s7106_s1 + $0x1418] sm:$0xff]  ;;  %2193 = vmatpush.msrb.mxu1 %v3328_v33  ;;  %2173 = vmatmul.f32.vlgmr.msrb.gmra.mxu0 %v5580_v12  ;;  %v2403_v12 = vld [vmem:[%s7108_s3 + $0x3c0] sm:$0xff] }
 0x1e8   : > { %v3452_v29 = vld [vmem:[%s7106_s1 + $0x1638] sm:$0xff]  ;;  %2218 = vmatpush.msrb.mxu2 %v3384_v42  ;;  %2549 = vmatpush.msra.mxu0 %v2343_v45  ;;  %v2455_v16 = vld [vmem:[%s7108_s3 + $0x560] sm:$0xff]  ;;  %v2340_v42 = vld [vmem:[%s7108_s3 + $0x1c8] sm:$0xff] }
 0x1e9   : > { %v3324_v28 = vld [vmem:[%s7106_s1 + $0x1238] sm:$0xff]  ;;  %2240 = vmatpush.msrb.mxu3 %v3452_v29  ;;  %2219 = vmatmul.f32.vlgmr.msrb.gmra.mxu2 %v5543_v46  ;;  %v2407_v46 = vld [vmem:[%s7108_s3 + $0x3e0] sm:$0xff] }
 0x1ea   : > { %v3448_v51 = vld [vmem:[%s7106_s1 + $0x1618] sm:$0xff]  ;;  %2194 = vmatpush.msrb.mxu1 %v3324_v28  ;;  %2550 = vmatpush.msra.mxu0 %v2339_v52  ;;  %v2287_v4 = vld [vmem:[%s7108_s3 + $0x20] sm:$0xff] }
 0x1eb   : > { %v3320_v18 = vld [vmem:[%s7106_s1 + $0x1218] sm:$0xff]  ;;  %2241 = vmatpush.msrb.mxu3 %v3448_v51  ;;  %v2451_v54 = vld [vmem:[%s7108_s3 + $0x540] sm:$0xff] }
 0x1ec   : > { %2242 = vmatmul.f32.vlgmr.msrb.gmra.mxu3 %v5563_v1  ;;  %2195 = vmatpush.msrb.mxu1 %v3320_v18  ;;  %v2327_v1 = vld [vmem:[%s7108_s3 + $0x160] sm:$0xff] }
 0x1ed   : > { %2196 = vmatmul.f32.vlgmr.msrb.gmra.mxu1 %v5588_v61  ;;  %2551 = vmatpush.msra.mxu0 %v2335_v10  ;;  %v2323_v61 = vld [vmem:[%s7108_s3 + $0x140] sm:$0xff] }
 0x1ee   : > { %2572 = vmatpush.msra.mxu1 %v2407_v46  ;;  %v2359_v22 = vld [vmem:[%s7108_s3 + $0x260] sm:$0xff]  ;;  %v2408_v46 = vld [vmem:[%s7108_s3 + $0x3e8] sm:$0xff] }
 0x1ef   : > { %2552 = vmatpush.msra.mxu0 %v2331_v44  ;;  %v2283_v27 = vld [vmem:[%s7108_s3] sm:$0xff]  ;;  %v2332_v44 = vld [vmem:[%s7108_s3 + $0x188] sm:$0xff] }
 0x1f0   : > { %2573 = vmatpush.msra.mxu1 %v2403_v12  ;;  %2176 = vmatmul.f32.gmra.mxu0 %v5656_v37  ;;  %v2387_v37 = vld [vmem:[%s7108_s3 + $0x340] sm:$0xff] }
 0x1f1   : > { %2222 = vmatmul.f32.gmra.mxu2 %v5619_v48  ;;  %2553 = vmatpush.msra.mxu0 %v2327_v1  ;;  %v2391_v48 = vld [vmem:[%s7108_s3 + $0x360] sm:$0xff] }
 0x1f2   : > { %2574 = vmatpush.msra.mxu1 %v2399_v43  ;;  %v2447_v21 = vld [vmem:[%s7108_s3 + $0x520] sm:$0xff] }
 0x1f3   : > { %2554 = vmatpush.msra.mxu0 %v2323_v61  ;;  %v2355_v8 = vld [vmem:[%s7108_s3 + $0x240] sm:$0xff]  ;;  %v2404_v61 = vld [vmem:[%s7108_s3 + $0x3c8] sm:$0xff] }
 0x1f4   : > { %2245 = vmatmul.f32.gmra.mxu3 %v5639_v0  ;;  %2575 = vmatpush.msra.mxu1 %v2395_v38  ;;  %v2311_v0 = vld [vmem:[%s7108_s3 + $0xe0] sm:$0xff]  ;;  %v1898_v32 = vpop.f32.mrf.mxu0  ;;  %v2328_v38 = vld [vmem:[%s7108_s3 + $0x168] sm:$0xff] }
 0x1f5   : > { %2199 = vmatmul.f32.gmra.mxu1 %v5663_v34  ;;  %2555 = vmatpush.msra.mxu0 %v2319_v53  ;;  %v2471_v34 = vld [vmem:[%s7108_s3 + $0x5e0] sm:$0xff] }
 0x1f6   : > { %2576 = vmatpush.msra.mxu1 %v2391_v48  ;;  %2595 = vmatpush.msra.mxu2 %v2471_v34  ;;  %v2351_v29 = vld [vmem:[%s7108_s3 + $0x220] sm:$0xff]  ;;  %v2320_v34 = vld [vmem:[%s7108_s3 + $0x128] sm:$0xff] }
 0x1f7   : > { %2556 = vmatpush.msra.mxu0 %v2315_v57  ;;  %v1921_v39 = vpop.f32.mrf.mxu1  ;;  %v2443_v45 = vld [vmem:[%s7108_s3 + $0x500] sm:$0xff]  ;;  %v2400_v57 = vld [vmem:[%s7108_s3 + $0x3a8] sm:$0xff] }
 0x1f8   : > { %2577 = vmatpush.msra.mxu1 %v2387_v37  ;;  %2596 = vmatpush.msra.mxu2 %v2467_v15  ;;  %v1944_v30 = vpop.f32.mrf.mxu2  ;;  %v1922_v25 = vadd.f32 %v1921_v39, %v1898_v32  ;;  %v2347_v52 = vld [vmem:[%s7108_s3 + $0x200] sm:$0xff]  ;;  %v2324_v37 = vld [vmem:[%s7108_s3 + $0x148] sm:$0xff] }
 0x1f9   : > { %2557 = vmatpush.msra.mxu0 %v2311_v0  ;;  %v2439_v18 = vld [vmem:[%s7108_s3 + $0x4e0] sm:$0xff]  ;;  %v2316_v15 = vld [vmem:[%s7108_s3 + $0x108] sm:$0xff] }
 0x1fa   : > { %2578 = vmatpush.msra.mxu1 %v2383_v40  ;;  %2597 = vmatpush.msra.mxu2 %v2463_v56  ;;  %v1945_v36 = vadd.f32 %v1944_v30, %v1922_v25  ;;  %v2435_v12 = vld [vmem:[%s7108_s3 + $0x4c0] sm:$0xff]  ;;  %v2388_v56 = vld [vmem:[%s7108_s3 + $0x348] sm:$0xff] }
 0x1fb   : > { %2558 = vmatpush.msra.mxu0 %v2307_v41  ;;  %v2431_v53 = vld [vmem:[%s7108_s3 + $0x4a0] sm:$0xff]  ;;  %v2396_v41 = vld [vmem:[%s7108_s3 + $0x388] sm:$0xff] }
 0x1fc   : > { %2579 = vmatpush.msra.mxu1 %v2379_v13  ;;  %2598 = vmatpush.msra.mxu2 %v2459_v19  ;;  %v1967_v58 = vpop.f32.mrf.mxu3  ;;  %v2427_v0 = vld [vmem:[%s7108_s3 + $0x480] sm:$0xff]  ;;  %v2384_v32 = vld [vmem:[%s7108_s3 + $0x328] sm:$0xff] }
 0x1fd   : > { %2559 = vmatpush.msra.mxu0 %v2303_v50  ;;  %v1968_v6 = vadd.f32 %v1967_v58, %v1945_v36  ;;  %v2423_v13 = vld [vmem:[%s7108_s3 + $0x460] sm:$0xff]  ;;  %v2308_v19 = vld [vmem:[%s7108_s3 + $0xc8] sm:$0xff] }
 0x1fe   : > { %2580 = vmatpush.msra.mxu1 %v2375_v55  ;;  %2599 = vmatpush.msra.mxu2 %v2455_v16  ;;  %v2419_v55 = vld [vmem:[%s7108_s3 + $0x440] sm:$0xff]  ;;  %v2380_v30 = vld [vmem:[%s7108_s3 + $0x308] sm:$0xff] }
 0x1ff   : > { %2560 = vmatpush.msra.mxu0 %v2299_v23  ;;  %v2249_v33 = vadd.f32 %v1968_v6, %v5509_v11  ;;  %v2336_v11 = vld [vmem:[%s7108_s3 + $0x1a8] sm:$0xff]  ;;  %v2411_v39 = vld [vmem:[%s7108_s3 + $0x400] sm:$0xff] }
 0x200   : > { %2581 = vmatpush.msra.mxu1 %v2371_v35  ;;  %2600 = vmatpush.msra.mxu2 %v2451_v54  ;;  %v2312_v35 = vld [vmem:[%s7108_s3 + $0xe8] sm:$0xff]  ;;  %v2531_v16 = vld [vmem:[%s7108_s3 + $0x7c0] sm:$0xff] }
 0x201   : > { %2561 = vmatpush.msra.mxu0 %v2295_v59  ;;  %v2267_v28 = vadd.f32 %v2259_v7, %v2249_v33  ;;  %v1901_v31 = vpop.f32.mrf.mxu0  ;;  %v1924_v51 = vpop.f32.mrf.mxu1  ;;  %v2415_v59 = vld [vmem:[%s7108_s3 + $0x420] sm:$0xff]  ;;  %v2304_v25 = vld [vmem:[%s7108_s3 + $0xa8] sm:$0xff] }
 0x202   : > { %2582 = vmatpush.msra.mxu1 %v2367_v49  ;;  %2601 = vmatpush.msra.mxu2 %v2447_v21  ;;  %v1947_v60 = vpop.f32.mrf.mxu2  ;;  %v1925_v10 = vadd.f32 %v1924_v51, %v1901_v31  ;;  %v2535_v49 = vld [vmem:[%s7108_s3 + $0x7e0] sm:$0xff]  ;;  %v2300_v36 = vld [vmem:[%s7108_s3 + $0x88] sm:$0xff] }
 0x203   : > { %2562 = vmatpush.msra.mxu0 %v2291_v5  ;;  %v6376_v9 = vmax.f32 %v2267_v28, 0.0  ;;  %v2472_v5 = vld [vmem:[%s7108_s3 + $0x5e8] sm:$0xff]  ;;  %2618 = vmatpush.msra.mxu3 %v2535_v49  ;;  %v2527_v58 = vld [vmem:[%s7108_s3 + $0x7a0] sm:$0xff] }
 0x204   : > { %2583 = vmatpush.msra.mxu1 %v2363_v24  ;;  %2602 = vmatpush.msra.mxu2 %v2443_v45  ;;  %v1948_v1 = vadd.f32 %v1947_v60, %v1925_v10  ;;  %v2376_v24 = vld [vmem:[%s7108_s3 + $0x2e8] sm:$0xff]  ;;  %v2523_v6 = vld [vmem:[%s7108_s3 + $0x780] sm:$0xff]  ;;  %v2345_v10 = vld [vmem:[%s7108_s3 + $0x1f0] sm:$0xff] }
 0x205   : > { %2563 = vmatpush.msra.mxu0 %v2287_v4  ;;  %v1970_v43 = vpop.f32.mrf.mxu3  ;;  %v2468_v4 = vld [vmem:[%s7108_s3 + $0x5c8] sm:$0xff]  ;;  %2619 = vmatpush.msra.mxu3 %v2531_v16  ;;  %v2515_v45 = vld [vmem:[%s7108_s3 + $0x740] sm:$0xff] }
 0x206   : > { %2584 = vmatpush.msra.mxu1 %v2359_v22  ;;  %2603 = vmatpush.msra.mxu2 %v2439_v18  ;;  %v1971_v48 = vadd.f32 %v1970_v43, %v1948_v1  ;;  %v2372_v54 = vld [vmem:[%s7108_s3 + $0x2c8] sm:$0xff]  ;;  %v2511_v18 = vld [vmem:[%s7108_s3 + $0x720] sm:$0xff]  ;;  %v2341_v1 = vld [vmem:[%s7108_s3 + $0x1d0] sm:$0xff] }
 0x207   : > { %2564 = vmatpush.msra.mxu0 %v2283_v27  ;;  %v2464_v22 = vld [vmem:[%s7108_s3 + $0x5a8] sm:$0xff]  ;;  %2620 = vmatpush.msra.mxu3 %v2527_v58  ;;  %v2495_v49 = vld [vmem:[%s7108_s3 + $0x6a0] sm:$0xff] }
 0x208   : > { %2585 = vmatpush.msra.mxu1 %v2355_v8  ;;  %2565 = vmatmul.f32.vlgmr.msra.gmra.mxu0 %v6376_v9  ;;  %v2253_v40 = vadd.f32 %v1971_v48, %v5582_v14  ;;  %v2392_v14 = vld [vmem:[%s7108_s3 + $0x368] sm:$0xff]  ;;  %v2519_v8 = vld [vmem:[%s7108_s3 + $0x760] sm:$0xff] }
 0x209   : > { %2641 = vmatpush.msrb.mxu0 %v2344_v17  ;;  %2604 = vmatpush.msra.mxu2 %v2435_v12  ;;  %v2296_v27 = vld [vmem:[%s7108_s3 + $0x68] sm:$0xff] }
 0x20a   : > { %2586 = vmatpush.msra.mxu1 %v2351_v29  ;;  %v2271_v50 = vadd.f32 %v2259_v7, %v2253_v40  ;;  %v2368_v7 = vld [vmem:[%s7108_s3 + $0x2a8] sm:$0xff]  ;;  %2621 = vmatpush.msra.mxu3 %v2523_v6  ;;  %v2487_v6 = vld [vmem:[%s7108_s3 + $0x660] sm:$0xff] }
 0x20b   : > { %2642 = vmatpush.msrb.mxu0 %v2340_v42  ;;  %2605 = vmatpush.msra.mxu2 %v2431_v53  ;;  %v2460_v21 = vld [vmem:[%s7108_s3 + $0x588] sm:$0xff]  ;;  %v2507_v53 = vld [vmem:[%s7108_s3 + $0x700] sm:$0xff] }
 0x20c   : > { %2587 = vmatpush.msra.mxu1 %v2347_v52  ;;  %v6425_v23 = vmax.f32 %v2271_v50, 0.0  ;;  %v2292_v17 = vld [vmem:[%s7108_s3 + $0x48] sm:$0xff]  ;;  %2622 = vmatpush.msra.mxu3 %v2519_v8  ;;  %v2397_v8 = vld [vmem:[%s7108_s3 + $0x390] sm:$0xff] }
 0x20d   : > { %2643 = vmatpush.msrb.mxu0 %v2336_v11  ;;  %2606 = vmatpush.msra.mxu2 %v2427_v0  ;;  %v2364_v33 = vld [vmem:[%s7108_s3 + $0x288] sm:$0xff]  ;;  %v2260_v0 = vperm.slane %v6330_v2, 1 }
 0x20e   : > { %2664 = vmatpush.msrb.mxu1 %v2408_v46  ;;  %v2456_v42 = vld [vmem:[%s7108_s3 + $0x568] sm:$0xff]  ;;  %2623 = vmatpush.msra.mxu3 %v2515_v45  ;;  %v2393_v45 = vld [vmem:[%s7108_s3 + $0x370] sm:$0xff] }
 0x20f   : > { %2644 = vmatpush.msrb.mxu0 %v2332_v44  ;;  %2607 = vmatpush.msra.mxu2 %v2423_v13  ;;  %v2288_v29 = vld [vmem:[%s7108_s3 + $0x28] sm:$0xff]  ;;  %v2333_v13 = vld [vmem:[%s7108_s3 + $0x190] sm:$0xff] }
 0x210   : > { %2665 = vmatpush.msrb.mxu1 %v2404_v61  ;;  %2568 = vmatmul.f32.gmra.mxu0 %v6425_v23  ;;  %v2360_v31 = vld [vmem:[%s7108_s3 + $0x268] sm:$0xff] }
 0x211   : > { %2645 = vmatpush.msrb.mxu0 %v2328_v38  ;;  %2608 = vmatpush.msra.mxu2 %v2419_v55  ;;  %v2452_v11 = vld [vmem:[%s7108_s3 + $0x548] sm:$0xff]  ;;  %v2329_v55 = vld [vmem:[%s7108_s3 + $0x170] sm:$0xff] }
 0x212   : > { %2666 = vmatpush.msrb.mxu1 %v2400_v57  ;;  %v2284_v51 = vld [vmem:[%s7108_s3 + $0x8] sm:$0xff]  ;;  %2624 = vmatpush.msra.mxu3 %v2511_v18  ;;  %v2337_v57 = vld [vmem:[%s7108_s3 + $0x1b0] sm:$0xff] }
 0x213   : > { %2646 = vmatpush.msrb.mxu0 %v2324_v37  ;;  %2609 = vmatpush.msra.mxu2 %v2415_v59  ;;  %v2356_v44 = vld [vmem:[%s7108_s3 + $0x248] sm:$0xff]  ;;  %v2301_v18 = vld [vmem:[%s7108_s3 + $0x90] sm:$0xff] }
 0x214   : > { %2667 = vmatpush.msrb.mxu1 %v2396_v41  ;;  %v2448_v12 = vld [vmem:[%s7108_s3 + $0x528] sm:$0xff]  ;;  %v2503_v41 = vld [vmem:[%s7108_s3 + $0x6e0] sm:$0xff]  ;;  %2625 = vmatpush.msra.mxu3 %v2507_v53 }
 0x215   : > { %2647 = vmatpush.msrb.mxu0 %v2320_v34  ;;  %2610 = vmatpush.msra.mxu2 %v2411_v39  ;;  %v2352_v38 = vld [vmem:[%s7108_s3 + $0x228] sm:$0xff] }
 0x216   : > { %2668 = vmatpush.msrb.mxu1 %v2392_v14  ;;  %v2444_v48 = vld [vmem:[%s7108_s3 + $0x508] sm:$0xff]  ;;  %v2499_v14 = vld [vmem:[%s7108_s3 + $0x6c0] sm:$0xff]  ;;  %2626 = vmatpush.msra.mxu3 %v2503_v41 }
 0x217   : > { %2648 = vmatpush.msrb.mxu0 %v2316_v15  ;;  %2687 = vmatpush.msrb.mxu2 %v2472_v5  ;;  %v2348_v40 = vld [vmem:[%s7108_s3 + $0x208] sm:$0xff] }
 0x218   : > { %2669 = vmatpush.msrb.mxu1 %v2388_v56  ;;  %v2440_v34 = vld [vmem:[%s7108_s3 + $0x4e8] sm:$0xff]  ;;  %2627 = vmatpush.msra.mxu3 %v2499_v14  ;;  %v2342_v14 = vld [vmem:[%s7108_s3 + $0x1d8] sm:$0xff] }
 0x219   : > { %2649 = vmatpush.msrb.mxu0 %v2312_v35  ;;  %2688 = vmatpush.msrb.mxu2 %v2468_v4  ;;  %v2436_v15 = vld [vmem:[%s7108_s3 + $0x4c8] sm:$0xff]  ;;  %v2405_v4 = vld [vmem:[%s7108_s3 + $0x3d0] sm:$0xff] }
 0x21a   : > { %2670 = vmatpush.msrb.mxu1 %v2384_v32  ;;  %v2432_v5 = vld [vmem:[%s7108_s3 + $0x4a8] sm:$0xff]  ;;  %2628 = vmatpush.msra.mxu3 %v2495_v49  ;;  %v2334_v49 = vld [vmem:[%s7108_s3 + $0x198] sm:$0xff] }
 0x21b   : > { %2650 = vmatpush.msrb.mxu0 %v2308_v19  ;;  %2689 = vmatpush.msrb.mxu2 %v2464_v22  ;;  %v1990_v28 = vpop.f32.mrf.mxu0  ;;  %v2325_v19 = vld [vmem:[%s7108_s3 + $0x150] sm:$0xff]  ;;  %v2428_v58 = vld [vmem:[%s7108_s3 + $0x488] sm:$0xff] }
 0x21c   : > { %2671 = vmatpush.msrb.mxu1 %v2380_v30  ;;  %v2409_v30 = vld [vmem:[%s7108_s3 + $0x3f0] sm:$0xff]  ;;  %v2528_v53 = vld [vmem:[%s7108_s3 + $0x7a8] sm:$0xff] }
 0x21d   : > { %2651 = vmatpush.msrb.mxu0 %v2304_v25  ;;  %2690 = vmatpush.msrb.mxu2 %v2460_v21  ;;  %v2321_v25 = vld [vmem:[%s7108_s3 + $0x130] sm:$0xff]  ;;  %v2520_v41 = vld [vmem:[%s7108_s3 + $0x768] sm:$0xff] }
 0x21e   : > { %2672 = vmatpush.msrb.mxu1 %v2376_v24  ;;  %v2313_v21 = vld [vmem:[%s7108_s3 + $0xf0] sm:$0xff] }
 0x21f   : > { %2652 = vmatpush.msrb.mxu0 %v2300_v36  ;;  %2691 = vmatpush.msrb.mxu2 %v2456_v42  ;;  %v2491_v36 = vld [vmem:[%s7108_s3 + $0x680] sm:$0xff]  ;;  %v2420_v42 = vld [vmem:[%s7108_s3 + $0x448] sm:$0xff] }
 0x220   : > { %2673 = vmatpush.msrb.mxu1 %v2372_v54  ;;  %v2317_v54 = vld [vmem:[%s7108_s3 + $0x110] sm:$0xff]  ;;  %2629 = vmatpush.msra.mxu3 %v2491_v36 }
 0x221   : > { %2653 = vmatpush.msrb.mxu0 %v2296_v27  ;;  %2692 = vmatpush.msrb.mxu2 %v2452_v11  ;;  %v2401_v27 = vld [vmem:[%s7108_s3 + $0x3b0] sm:$0xff] }
 0x222   : > { %2674 = vmatpush.msrb.mxu1 %v2368_v7  ;;  %v2013_v60 = vpop.f32.mrf.mxu1  ;;  %v2424_v7 = vld [vmem:[%s7108_s3 + $0x468] sm:$0xff]  ;;  %2630 = vmatpush.msra.mxu3 %v2487_v6  ;;  %v2305_v11 = vld [vmem:[%s7108_s3 + $0xb0] sm:$0xff] }
 0x223   : > { %2654 = vmatpush.msrb.mxu0 %v2292_v17  ;;  %v2036_v52 = vpop.f32.mrf.mxu2  ;;  %v2014_v46 = vadd.f32 %v2013_v60, %v1990_v28  ;;  %2693 = vmatpush.msrb.mxu2 %v2448_v12  ;;  %v2479_v28 = vld [vmem:[%s7108_s3 + $0x620] sm:$0xff]  ;;  %v2416_v60 = vld [vmem:[%s7108_s3 + $0x428] sm:$0xff]  ;;  %v2297_v12 = vld [vmem:[%s7108_s3 + $0x70] sm:$0xff] }
 0x224   : > { %2675 = vmatpush.msrb.mxu1 %v2364_v33  ;;  %v2483_v33 = vld [vmem:[%s7108_s3 + $0x640] sm:$0xff] }
 0x225   : > { %2655 = vmatpush.msrb.mxu0 %v2288_v29  ;;  %v2037_v43 = vadd.f32 %v2036_v52, %v2014_v46  ;;  %2694 = vmatpush.msrb.mxu2 %v2444_v48  ;;  %v2475_v52 = vld [vmem:[%s7108_s3 + $0x600] sm:$0xff]  ;;  %v2412_v46 = vld [vmem:[%s7108_s3 + $0x408] sm:$0xff]  ;;  %v2289_v48 = vld [vmem:[%s7108_s3 + $0x30] sm:$0xff] }
 0x226   : > { %2676 = vmatpush.msrb.mxu1 %v2360_v31  ;;  %v2059_v61 = vpop.f32.mrf.mxu3  ;;  %2631 = vmatpush.msra.mxu3 %v2483_v33 }
 0x227   : > { %2656 = vmatpush.msrb.mxu0 %v2284_v51  ;;  %v2060_v37 = vadd.f32 %v2059_v61, %v2037_v43  ;;  %2695 = vmatpush.msrb.mxu2 %v2440_v34  ;;  %v2389_v51 = vld [vmem:[%s7108_s3 + $0x350] sm:$0xff]  ;;  %v2532_v43 = vld [vmem:[%s7108_s3 + $0x7c8] sm:$0xff]  ;;  %v2346_v34 = vld [vmem:[%s7108_s3 + $0x1f8] sm:$0xff] }
 0x228   : > { %2677 = vmatpush.msrb.mxu1 %v2356_v44  ;;  %2657 = vmatmul.f32.vlgmr.msrb.gmra.mxu0 %v6376_v9  ;;  %v2536_v44 = vld [vmem:[%s7108_s3 + $0x7e8] sm:$0xff]  ;;  %v2293_v61 = vld [vmem:[%s7108_s3 + $0x50] sm:$0xff] }
 0x229   : > { %2733 = vmatpush.msra.mxu0 %v2345_v10  ;;  %v2250_v50 = vadd.f32 %v2060_v37, %v5765_v20  ;;  %2696 = vmatpush.msrb.mxu2 %v2436_v15  ;;  %v2385_v10 = vld [vmem:[%s7108_s3 + $0x330] sm:$0xff]  ;;  %v2524_v37 = vld [vmem:[%s7108_s3 + $0x788] sm:$0xff] }
 0x22a   : > { %2678 = vmatpush.msrb.mxu1 %v2352_v38  ;;  %2632 = vmatpush.msra.mxu3 %v2479_v28  ;;  %v2377_v38 = vld [vmem:[%s7108_s3 + $0x2f0] sm:$0xff] }
 0x22b   : > { %2734 = vmatpush.msra.mxu0 %v2341_v1  ;;  %v2268_v56 = vadd.f32 %v2260_v0, %v2250_v50  ;;  %v1993_v35 = vpop.f32.mrf.mxu0  ;;  %2697 = vmatpush.msrb.mxu2 %v2432_v5  ;;  %v2381_v1 = vld [vmem:[%s7108_s3 + $0x310] sm:$0xff]  ;;  %v2516_v50 = vld [vmem:[%s7108_s3 + $0x748] sm:$0xff] }
 0x22c   : > { %2679 = vmatpush.msrb.mxu1 %v2348_v40  ;;  %v2016_v20 = vpop.f32.mrf.mxu1  ;;  %v2039_v59 = vpop.f32.mrf.mxu2  ;;  %2633 = vmatpush.msra.mxu3 %v2475_v52  ;;  %v2369_v40 = vld [vmem:[%s7108_s3 + $0x2b0] sm:$0xff]  ;;  %v2488_v52 = vld [vmem:[%s7108_s3 + $0x668] sm:$0xff] }
 0x22d   : > { %2735 = vmatpush.msra.mxu0 %v2337_v57  ;;  %v6569_v32 = vmax.f32 %v2268_v56, 0.0  ;;  %v2017_v39 = vadd.f32 %v2016_v20, %v1993_v35  ;;  %2698 = vmatpush.msrb.mxu2 %v2428_v58  ;;  %v2373_v57 = vld [vmem:[%s7108_s3 + $0x2d0] sm:$0xff]  ;;  %v2512_v20 = vld [vmem:[%s7108_s3 + $0x728] sm:$0xff]  ;;  %v2261_v58 = vperm.slane %v6330_v2, 2 }
 0x22e   : > { %2710 = vmatpush.msrb.mxu3 %v2536_v44  ;;  %v2469_v44 = vld [vmem:[%s7108_s3 + $0x5d0] sm:$0xff] }
 0x22f   : > { %2736 = vmatpush.msra.mxu0 %v2333_v13  ;;  %v2040_v16 = vadd.f32 %v2039_v59, %v2017_v39  ;;  %v2062_v24 = vpop.f32.mrf.mxu3  ;;  %2588 = vmatmul.f32.vlgmr.msra.gmra.mxu1 %v6569_v32  ;;  %v2365_v13 = vld [vmem:[%s7108_s3 + $0x290] sm:$0xff]  ;;  %v2338_v59 = vld [vmem:[%s7108_s3 + $0x1b8] sm:$0xff] }
 0x230   : > { %2660 = vmatmul.f32.gmra.mxu0 %v6425_v23  ;;  %2756 = vmatpush.msra.mxu1 %v2409_v30  ;;  %v2357_v39 = vld [vmem:[%s7108_s3 + $0x250] sm:$0xff]  ;;  %v2508_v30 = vld [vmem:[%s7108_s3 + $0x708] sm:$0xff] }
 0x231   : > { %2737 = vmatpush.msra.mxu0 %v2329_v55  ;;  %v2063_v22 = vadd.f32 %v2062_v24, %v2040_v16  ;;  %2699 = vmatpush.msrb.mxu2 %v2424_v7  ;;  %v2361_v55 = vld [vmem:[%s7108_s3 + $0x270] sm:$0xff]  ;;  %v2504_v24 = vld [vmem:[%s7108_s3 + $0x6e8] sm:$0xff]  ;;  %v2326_v7 = vld [vmem:[%s7108_s3 + $0x158] sm:$0xff] }
 0x232   : > { %2757 = vmatpush.msra.mxu1 %v2405_v4  ;;  %2711 = vmatpush.msrb.mxu3 %v2532_v43  ;;  %v2353_v16 = vld [vmem:[%s7108_s3 + $0x230] sm:$0xff]  ;;  %v2330_v4 = vld [vmem:[%s7108_s3 + $0x178] sm:$0xff] }
 0x233   : > { %2738 = vmatpush.msra.mxu0 %v2325_v19  ;;  %v2254_v17 = vadd.f32 %v2063_v22, %v5819_v62  ;;  %v2309_v62 = vld [vmem:[%s7108_s3 + $0xd0] sm:$0xff]  ;;  %2700 = vmatpush.msrb.mxu2 %v2420_v42  ;;  %v2410_v22 = vld [vmem:[%s7108_s3 + $0x3f8] sm:$0xff] }
 0x234   : > { %2758 = vmatpush.msra.mxu1 %v2401_v27  ;;  %2712 = vmatpush.msrb.mxu3 %v2528_v53  ;;  %v2500_v27 = vld [vmem:[%s7108_s3 + $0x6c8] sm:$0xff]  ;;  %v2394_v53 = vld [vmem:[%s7108_s3 + $0x378] sm:$0xff] }
 0x235   : > { %2739 = vmatpush.msra.mxu0 %v2321_v25  ;;  %v2272_v29 = vadd.f32 %v2260_v0, %v2254_v17  ;;  %2701 = vmatpush.msrb.mxu2 %v2416_v60  ;;  %v2285_v0 = vld [vmem:[%s7108_s3 + $0x10] sm:$0xff]  ;;  %v2402_v60 = vld [vmem:[%s7108_s3 + $0x3b8] sm:$0xff] }
 0x236   : > { %2759 = vmatpush.msra.mxu1 %v2397_v8  ;;  %2713 = vmatpush.msrb.mxu3 %v2524_v37  ;;  %v2322_v8 = vld [vmem:[%s7108_s3 + $0x138] sm:$0xff] }
 0x237   : > { %2740 = vmatpush.msra.mxu0 %v2317_v54  ;;  %v6631_v31 = vmax.f32 %v2272_v29, 0.0  ;;  %2702 = vmatpush.msrb.mxu2 %v2412_v46  ;;  %v2349_v54 = vld [vmem:[%s7108_s3 + $0x210] sm:$0xff]  ;;  %v2306_v37 = vld [vmem:[%s7108_s3 + $0xb8] sm:$0xff] }
 0x238   : > { %2760 = vmatpush.msra.mxu1 %v2393_v45  ;;  %2714 = vmatpush.msrb.mxu3 %v2520_v41 }
 0x239   : > { %2741 = vmatpush.msra.mxu0 %v2313_v21  ;;  %2591 = vmatmul.f32.gmra.mxu1 %v6631_v31  ;;  %v2496_v21 = vld [vmem:[%s7108_s3 + $0x6a8] sm:$0xff] }
 0x23a   : > { %2761 = vmatpush.msra.mxu1 %v2389_v51  ;;  %2715 = vmatpush.msrb.mxu3 %v2516_v50  ;;  %v2473_v51 = vld [vmem:[%s7108_s3 + $0x5f0] sm:$0xff] }
 0x23b   : > { %2742 = vmatpush.msra.mxu0 %v2309_v62  ;;  %v2492_v62 = vld [vmem:[%s7108_s3 + $0x688] sm:$0xff] }
 0x23c   : > { %2762 = vmatpush.msra.mxu1 %v2385_v10  ;;  %2716 = vmatpush.msrb.mxu3 %v2512_v20  ;;  %v2314_v10 = vld [vmem:[%s7108_s3 + $0xf8] sm:$0xff] }
 0x23d   : > { %2743 = vmatpush.msra.mxu0 %v2305_v11  ;;  %v2318_v11 = vld [vmem:[%s7108_s3 + $0x118] sm:$0xff] }
 0x23e   : > { %2763 = vmatpush.msra.mxu1 %v2381_v1  ;;  %2717 = vmatpush.msrb.mxu3 %v2508_v30  ;;  %v2484_v1 = vld [vmem:[%s7108_s3 + $0x648] sm:$0xff]  ;;  %v2382_v20 = vld [vmem:[%s7108_s3 + $0x318] sm:$0xff] }
 0x23f   : > { %2744 = vmatpush.msra.mxu0 %v2301_v18  ;;  %v2286_v30 = vld [vmem:[%s7108_s3 + $0x18] sm:$0xff] }
 0x240   : > { %2764 = vmatpush.msra.mxu1 %v2377_v38  ;;  %2718 = vmatpush.msrb.mxu3 %v2504_v24  ;;  %v2465_v38 = vld [vmem:[%s7108_s3 + $0x5b0] sm:$0xff]  ;;  %v2370_v24 = vld [vmem:[%s7108_s3 + $0x2b8] sm:$0xff] }
 0x241   : > { %2745 = vmatpush.msra.mxu0 %v2297_v12  ;;  %2680 = vmatmul.f32.vlgmr.msrb.gmra.mxu1 %v6569_v32  ;;  %v2398_v12 = vld [vmem:[%s7108_s3 + $0x398] sm:$0xff] }
 0x242   : > { %2765 = vmatpush.msra.mxu1 %v2373_v57  ;;  %2719 = vmatpush.msrb.mxu3 %v2500_v27 }
 0x243   : > { %2746 = vmatpush.msra.mxu0 %v2293_v61  ;;  %v2310_v61 = vld [vmem:[%s7108_s3 + $0xd8] sm:$0xff] }
 0x244   : > { %2766 = vmatpush.msra.mxu1 %v2369_v40  ;;  %2720 = vmatpush.msrb.mxu3 %v2496_v21  ;;  %v2476_v40 = vld [vmem:[%s7108_s3 + $0x608] sm:$0xff]  ;;  %v2358_v21 = vld [vmem:[%s7108_s3 + $0x258] sm:$0xff] }
 0x245   : > { %2747 = vmatpush.msra.mxu0 %v2289_v48  ;;  %v2082_v15 = vpop.f32.mrf.mxu0  ;;  %v2480_v48 = vld [vmem:[%s7108_s3 + $0x628] sm:$0xff] }
 0x246   : > { %v2105_v56 = vpop.f32.mrf.mxu1  ;;  %v2128_v35 = vpop.f32.mrf.mxu2  ;;  %2767 = vmatpush.msra.mxu1 %v2365_v13  ;;  %2721 = vmatpush.msrb.mxu3 %v2492_v62  ;;  %v2390_v13 = vld [vmem:[%s7108_s3 + $0x358] sm:$0xff] }
 0x247   : > { %2748 = vmatpush.msra.mxu0 %v2285_v0  ;;  %v2106_v19 = vadd.f32 %v2105_v56, %v2082_v15  ;;  %v2461_v0 = vld [vmem:[%s7108_s3 + $0x590] sm:$0xff]  ;;  %v2294_v56 = vld [vmem:[%s7108_s3 + $0x58] sm:$0xff] }
 0x248   : > { %2749 = vmatmul.f32.vlgmr.msra.gmra.mxu0 %v6376_v9  ;;  %2768 = vmatpush.msra.mxu1 %v2361_v55  ;;  %v2453_v15 = vld [vmem:[%s7108_s3 + $0x550] sm:$0xff]  ;;  %v2386_v55 = vld [vmem:[%s7108_s3 + $0x338] sm:$0xff] }
 0x249   : > { %2825 = vmatpush.msrb.mxu0 %v2346_v34  ;;  %v2129_v5 = vadd.f32 %v2128_v35, %v2106_v19  ;;  %v2151_v25 = vpop.f32.mrf.mxu3  ;;  %2683 = vmatmul.f32.gmra.mxu1 %v6631_v31  ;;  %v2457_v34 = vld [vmem:[%s7108_s3 + $0x570] sm:$0xff] }
 0x24a   : > { %2769 = vmatpush.msra.mxu1 %v2357_v39  ;;  %2722 = vmatpush.msrb.mxu3 %v2488_v52  ;;  %v2449_v35 = vld [vmem:[%s7108_s3 + $0x530] sm:$0xff]  ;;  %v2378_v39 = vld [vmem:[%s7108_s3 + $0x2f8] sm:$0xff] }
 0x24b   : > { %2826 = vmatpush.msrb.mxu0 %v2342_v14  ;;  %v2152_v36 = vadd.f32 %v2151_v25, %v2129_v5  ;;  %v2298_v14 = vld [vmem:[%s7108_s3 + $0x78] sm:$0xff]  ;;  %v2445_v19 = vld [vmem:[%s7108_s3 + $0x510] sm:$0xff] }
 0x24c   : > { %2770 = vmatpush.msra.mxu1 %v2353_v16  ;;  %2723 = vmatpush.msrb.mxu3 %v2484_v1  ;;  %v2437_v5 = vld [vmem:[%s7108_s3 + $0x4d0] sm:$0xff]  ;;  %v2374_v25 = vld [vmem:[%s7108_s3 + $0x2d8] sm:$0xff] }
 0x24d   : > { %2827 = vmatpush.msrb.mxu0 %v2338_v59  ;;  %v2251_v6 = vadd.f32 %v2152_v36, %v5977_v26  ;;  %v2406_v26 = vld [vmem:[%s7108_s3 + $0x3d8] sm:$0xff]  ;;  %v2433_v16 = vld [vmem:[%s7108_s3 + $0x4b0] sm:$0xff] }
 0x24e   : > { %2771 = vmatpush.msra.mxu1 %v2349_v54  ;;  %2724 = vmatpush.msrb.mxu3 %v2480_v48  ;;  %v2290_v59 = vld [vmem:[%s7108_s3 + $0x38] sm:$0xff]  ;;  %v2429_v36 = vld [vmem:[%s7108_s3 + $0x490] sm:$0xff] }
 0x24f   : > { %2828 = vmatpush.msrb.mxu0 %v2334_v49  ;;  %v2269_v17 = vadd.f32 %v2261_v58, %v2251_v6  ;;  %v2085_v33 = vpop.f32.mrf.mxu0  ;;  %v2441_v49 = vld [vmem:[%s7108_s3 + $0x4f0] sm:$0xff]  ;;  %v2466_v1 = vld [vmem:[%s7108_s3 + $0x5b8] sm:$0xff] }
 0x250   : > { %2752 = vmatmul.f32.gmra.mxu0 %v6425_v23  ;;  %2848 = vmatpush.msrb.mxu1 %v2410_v22  ;;  %v2108_v42 = vpop.f32.mrf.mxu1  ;;  %v2131_v29 = vpop.f32.mrf.mxu2  ;;  %v2425_v54 = vld [vmem:[%s7108_s3 + $0x470] sm:$0xff]  ;;  %v2362_v22 = vld [vmem:[%s7108_s3 + $0x278] sm:$0xff] }
 0x251   : > { %2829 = vmatpush.msrb.mxu0 %v2330_v4  ;;  %v6763_v45 = vmax.f32 %v2269_v17, 0.0  ;;  %v2109_v28 = vadd.f32 %v2108_v42, %v2085_v33  ;;  %2772 = vmatmul.f32.vlgmr.msra.gmra.mxu1 %v6569_v32  ;;  %v2417_v33 = vld [vmem:[%s7108_s3 + $0x430] sm:$0xff]  ;;  %v2458_v48 = vld [vmem:[%s7108_s3 + $0x578] sm:$0xff] }
 0x252   : > { %2849 = vmatpush.msrb.mxu1 %v2406_v26  ;;  %2725 = vmatpush.msrb.mxu3 %v2476_v40  ;;  %v2354_v26 = vld [vmem:[%s7108_s3 + $0x238] sm:$0xff]  ;;  %v2521_v40 = vld [vmem:[%s7108_s3 + $0x770] sm:$0xff] }
 0x253   : > { %2830 = vmatpush.msrb.mxu0 %v2326_v7  ;;  %v2132_v18 = vadd.f32 %v2131_v29, %v2109_v28  ;;  %v2154_v46 = vpop.f32.mrf.mxu3  ;;  %2611 = vmatmul.f32.vlgmr.msra.gmra.mxu2 %v6763_v45  ;;  %v2421_v7 = vld [vmem:[%s7108_s3 + $0x450] sm:$0xff]  ;;  %v2262_v29 = vperm.slane %v6330_v2, 3  ;;  %v2350_v28 = vld [vmem:[%s7108_s3 + $0x218] sm:$0xff] }
 0x254   : > { %2779 = vmatpush.msra.mxu2 %v2473_v51  ;;  %2850 = vmatpush.msrb.mxu1 %v2402_v60  ;;  %v2474_v51 = vld [vmem:[%s7108_s3 + $0x5f8] sm:$0xff] }
 0x255   : > { %2831 = vmatpush.msrb.mxu0 %v2322_v8  ;;  %v2155_v43 = vadd.f32 %v2154_v46, %v2132_v18 }
 0x256   : > { %2780 = vmatpush.msra.mxu2 %v2469_v44  ;;  %2851 = vmatpush.msrb.mxu1 %v2398_v12  ;;  %v2537_v44 = vld [vmem:[%s7108_s3 + $0x7f0] sm:$0xff] }
 0x257   : > { %2832 = vmatpush.msrb.mxu0 %v2318_v11  ;;  %v2255_v57 = vadd.f32 %v2155_v43, %v6031_v63  ;;  %v2302_v63 = vld [vmem:[%s7108_s3 + $0x98] sm:$0xff]  ;;  %v2533_v43 = vld [vmem:[%s7108_s3 + $0x7d0] sm:$0xff] }
 0x258   : > { %2781 = vmatpush.msra.mxu2 %v2465_v38  ;;  %2852 = vmatpush.msrb.mxu1 %v2394_v53  ;;  %v2529_v53 = vld [vmem:[%s7108_s3 + $0x7b0] sm:$0xff] }
 0x259   : > { %2833 = vmatpush.msrb.mxu0 %v2314_v10  ;;  %v2273_v41 = vadd.f32 %v2261_v58, %v2255_v57  ;;  %2775 = vmatmul.f32.gmra.mxu1 %v6631_v31  ;;  %v2470_v10 = vld [vmem:[%s7108_s3 + $0x5d8] sm:$0xff] }
 0x25a   : > { %2782 = vmatpush.msra.mxu2 %v2461_v0  ;;  %2853 = vmatpush.msrb.mxu1 %v2390_v13  ;;  %v2442_v13 = vld [vmem:[%s7108_s3 + $0x4f8] sm:$0xff] }
 0x25b   : > { %2834 = vmatpush.msrb.mxu0 %v2310_v61  ;;  %v6822_v50 = vmax.f32 %v2273_v41, 0.0  ;;  %v2462_v61 = vld [vmem:[%s7108_s3 + $0x598] sm:$0xff] }
 0x25c   : > { %2783 = vmatpush.msra.mxu2 %v2457_v34  ;;  %2854 = vmatpush.msrb.mxu1 %v2386_v55  ;;  %v2450_v41 = vld [vmem:[%s7108_s3 + $0x538] sm:$0xff]  ;;  %v2513_v34 = vld [vmem:[%s7108_s3 + $0x730] sm:$0xff] }
 0x25d   : > { %2835 = vmatpush.msrb.mxu0 %v2306_v37  ;;  %2614 = vmatmul.f32.gmra.mxu2 %v6822_v50  ;;  %v2525_v37 = vld [vmem:[%s7108_s3 + $0x790] sm:$0xff] }
 0x25e   : > { %2784 = vmatpush.msra.mxu2 %v2453_v15  ;;  %2855 = vmatpush.msrb.mxu1 %v2382_v20  ;;  %v2438_v15 = vld [vmem:[%s7108_s3 + $0x4d8] sm:$0xff]  ;;  %v2505_v55 = vld [vmem:[%s7108_s3 + $0x6f0] sm:$0xff] }
 0x25f   : > { %2836 = vmatpush.msrb.mxu0 %v2302_v63  ;;  %v2446_v63 = vld [vmem:[%s7108_s3 + $0x518] sm:$0xff] }
 0x260   : > { %2785 = vmatpush.msra.mxu2 %v2449_v35  ;;  %2856 = vmatpush.msrb.mxu1 %v2378_v39  ;;  %v2501_v35 = vld [vmem:[%s7108_s3 + $0x6d0] sm:$0xff]  ;;  %v2430_v20 = vld [vmem:[%s7108_s3 + $0x498] sm:$0xff] }
 0x261   : > { %2837 = vmatpush.msrb.mxu0 %v2298_v14  ;;  %v2509_v14 = vld [vmem:[%s7108_s3 + $0x710] sm:$0xff] }
 0x262   : > { %2786 = vmatpush.msra.mxu2 %v2445_v19  ;;  %2857 = vmatpush.msrb.mxu1 %v2374_v25  ;;  %v2426_v19 = vld [vmem:[%s7108_s3 + $0x478] sm:$0xff]  ;;  %v2493_v39 = vld [vmem:[%s7108_s3 + $0x690] sm:$0xff] }
 0x263   : > { %2838 = vmatpush.msrb.mxu0 %v2294_v56  ;;  %v2434_v56 = vld [vmem:[%s7108_s3 + $0x4b8] sm:$0xff]  ;;  %v2485_v25 = vld [vmem:[%s7108_s3 + $0x650] sm:$0xff] }
 0x264   : > { %2787 = vmatpush.msra.mxu2 %v2441_v49  ;;  %v2174_v4 = vpop.f32.mrf.mxu0  ;;  %2858 = vmatpush.msrb.mxu1 %v2370_v24  ;;  %v2489_v49 = vld [vmem:[%s7108_s3 + $0x670] sm:$0xff] }
 0x265   : > { %2839 = vmatpush.msrb.mxu0 %v2290_v59  ;;  %2703 = vmatmul.f32.vlgmr.msrb.gmra.mxu2 %v6763_v45  ;;  %v2497_v59 = vld [vmem:[%s7108_s3 + $0x6b0] sm:$0xff] }
 0x266   : > { %2788 = vmatpush.msra.mxu2 %v2437_v5  ;;  %v2418_v5 = vld [vmem:[%s7108_s3 + $0x438] sm:$0xff]  ;;  %v2481_v24 = vld [vmem:[%s7108_s3 + $0x630] sm:$0xff] }
 0x267   : > { %2840 = vmatpush.msrb.mxu0 %v2286_v30  ;;  %v2422_v30 = vld [vmem:[%s7108_s3 + $0x458] sm:$0xff] }
 0x268   : > { %2841 = vmatmul.f32.vlgmr.msrb.gmra.mxu0 %v6376_v9  ;;  %v2366_v9 = vld [vmem:[%s7108_s3 + $0x298] sm:$0xff]  ;;  %2789 = vmatpush.msra.mxu2 %v2433_v16 }
 0x269   : > { %2859 = vmatpush.msrb.mxu1 %v2366_v9  ;;  %v2414_v16 = vld [vmem:[%s7108_s3 + $0x418] sm:$0xff] }
 0x26a   : > { %v2197_v58 = vpop.f32.mrf.mxu1  ;;  %2790 = vmatpush.msra.mxu2 %v2429_v36  ;;  %v2538_v36 = vld [vmem:[%s7108_s3 + $0x7f8] sm:$0xff] }
 0x26b   : > { %v2198_v27 = vadd.f32 %v2197_v58, %v2174_v4  ;;  %2860 = vmatpush.msrb.mxu1 %v2362_v22  ;;  %v2477_v4 = vld [vmem:[%s7108_s3 + $0x610] sm:$0xff]  ;;  %v2534_v9 = vld [vmem:[%s7108_s3 + $0x7d8] sm:$0xff] }
 0x26c   : > { %v2220_v6 = vpop.f32.mrf.mxu2  ;;  %2791 = vmatpush.msra.mxu2 %v2425_v54  ;;  %v2530_v58 = vld [vmem:[%s7108_s3 + $0x7b8] sm:$0xff] }
 0x26d   : > { %v2221_v17 = vadd.f32 %v2220_v6, %v2198_v27  ;;  %2706 = vmatmul.f32.gmra.mxu2 %v6822_v50  ;;  %2861 = vmatpush.msrb.mxu1 %v2358_v21  ;;  %v2177_v62 = vpop.f32.mrf.mxu0  ;;  %v2522_v54 = vld [vmem:[%s7108_s3 + $0x778] sm:$0xff] }
 0x26e   : > { %2792 = vmatpush.msra.mxu2 %v2421_v7  ;;  %v2518_v22 = vld [vmem:[%s7108_s3 + $0x758] sm:$0xff] }
 0x26f   : > { %v2243_v8 = vpop.f32.mrf.mxu3  ;;  %2862 = vmatpush.msrb.mxu1 %v2354_v26  ;;  %v2514_v27 = vld [vmem:[%s7108_s3 + $0x738] sm:$0xff] }
 0x270   : > { %2844 = vmatmul.f32.gmra.mxu0 %v6425_v23  ;;  %v2244_v42 = vadd.f32 %v2243_v8, %v2221_v17  ;;  %v2413_v23 = vld [vmem:[%s7108_s3 + $0x410] sm:$0xff]  ;;  %2793 = vmatpush.msra.mxu2 %v2417_v33  ;;  %v2506_v6 = vld [vmem:[%s7108_s3 + $0x6f8] sm:$0xff] }
 0x271   : > { %2863 = vmatpush.msrb.mxu1 %v2350_v28  ;;  %v2502_v7 = vld [vmem:[%s7108_s3 + $0x6d8] sm:$0xff]  ;;  %v7073_v28 = vld [vmem:[%s7109_s4] sm:$0xf] }
 0x272   : > { %v2252_v11 = vadd.f32 %v2244_v42, %v6189_v3  ;;  %v2200_v2 = vpop.f32.mrf.mxu1  ;;  %2794 = vmatpush.msra.mxu2 %v2413_v23  ;;  %2864 = vmatmul.f32.vlgmr.msrb.gmra.mxu1 %v6569_v32  ;;  %v2498_v21 = vld [vmem:[%s7108_s3 + $0x6b8] sm:$0xff] }
 0x273   : > { %v2201_v52 = vadd.f32 %v2200_v2, %v2177_v62  ;;  %v2494_v17 = vld [vmem:[%s7108_s3 + $0x698] sm:$0xff] }
 0x274   : > { %v2270_v60 = vadd.f32 %v2262_v29, %v2252_v11  ;;  %v2223_v18 = vpop.f32.mrf.mxu2  ;;  %2871 = vmatpush.msrb.mxu2 %v2474_v51  ;;  %v2490_v8 = vld [vmem:[%s7108_s3 + $0x678] sm:$0xff]  ;;  %v2541_v11 = vperm.slane %v7073_v28, 0 }
 0x275   : > { %v2224_v46 = vadd.f32 %v2223_v18, %v2201_v52  ;;  %2795 = vmatmul.f32.vlgmr.msra.gmra.mxu2 %v6763_v45  ;;  %v2486_v33 = vld [vmem:[%s7108_s3 + $0x658] sm:$0xff] }
 0x276   : > { %v6914_v3 = vmax.f32 %v2270_v60, 0.0  ;;  %2872 = vmatpush.msrb.mxu2 %v2470_v10  ;;  %v2482_v26 = vld [vmem:[%s7108_s3 + $0x638] sm:$0xff] }
 0x277   : > { %v2246_v12 = vpop.f32.mrf.mxu3  ;;  %v2478_v42 = vld [vmem:[%s7108_s3 + $0x618] sm:$0xff] }
 0x278   : > { %v2247_v32 = vadd.f32 %v2246_v12, %v2224_v46  ;;  %2634 = vmatmul.f32.vlgmr.msra.gmra.mxu3 %v6914_v3  ;;  %2873 = vmatpush.msrb.mxu2 %v2466_v1  ;;  %v3522_v12 = vld [vmem:[%s3847_s6] sm:$0xff] }
 0x279   : > { %2802 = vmatpush.msra.mxu3 %v2537_v44 }
 0x27a   : > { %v2256_v38 = vadd.f32 %v2247_v32, %v6238_v47  ;;  %2874 = vmatpush.msrb.mxu2 %v2462_v61  ;;  %2867 = vmatmul.f32.gmra.mxu1 %v6631_v31  ;;  %v2454_v47 = vld [vmem:[%s7108_s3 + $0x558] sm:$0xff]  ;;  %v2517_v31 = vld [vmem:[%s7108_s3 + $0x750] sm:$0xff] }
 0x27b   : > { %2803 = vmatpush.msra.mxu3 %v2533_v43 }
 0x27c   : > { %v2274_v57 = vadd.f32 %v2262_v29, %v2256_v38  ;;  %2875 = vmatpush.msrb.mxu2 %v2458_v48  ;;  %v2542_v38 = vperm.slane %v7073_v28, 1 }
 0x27d   : > { %2804 = vmatpush.msra.mxu3 %v2529_v53  ;;  %2798 = vmatmul.f32.gmra.mxu2 %v6822_v50 }
 0x27e   : > { %v6944_v0 = vmax.f32 %v2274_v57, 0.0  ;;  %2876 = vmatpush.msrb.mxu2 %v2454_v47 }
 0x27f   : > { %2805 = vmatpush.msra.mxu3 %v2525_v37 }
 0x280   : > { %2637 = vmatmul.f32.gmra.mxu3 %v6944_v0  ;;  %2877 = vmatpush.msrb.mxu2 %v2450_v41 }
 0x281   : > { %2806 = vmatpush.msra.mxu3 %v2521_v40 }
 0x282   : > { %2878 = vmatpush.msrb.mxu2 %v2446_v63 }
 0x283   : > { %2807 = vmatpush.msra.mxu3 %v2517_v31 }
 0x284   : > { %2879 = vmatpush.msrb.mxu2 %v2442_v13 }
 0x285   : > { %2808 = vmatpush.msra.mxu3 %v2513_v34  ;;  %v2566_v29 = vpop.f32.mrf.mxu0 }
 0x286   : > { %2880 = vmatpush.msrb.mxu2 %v2438_v15  ;;  %v2567_v51 = vadd.f32 %v2566_v29, %v2541_v11 }
 0x287   : > { %2809 = vmatpush.msra.mxu3 %v2509_v14 }
 0x288   : > { %2726 = vmatmul.f32.vlgmr.msrb.gmra.mxu3 %v6914_v3  ;;  %2881 = vmatpush.msrb.mxu2 %v2434_v56  ;;  %v3524_v56 = vld [vmem:[%s3847_s6 + $0x8] sm:$0xff] }
 0x289   : > { %2810 = vmatpush.msra.mxu3 %v2505_v55 }
 0x28a   : > { %2882 = vmatpush.msrb.mxu2 %v2430_v20 }
 0x28b   : > { %2811 = vmatpush.msra.mxu3 %v2501_v35 }
 0x28c   : > { %2883 = vmatpush.msrb.mxu2 %v2426_v19 }
 0x28d   : > { %2812 = vmatpush.msra.mxu3 %v2497_v59  ;;  %v2569_v2 = vpop.f32.mrf.mxu0 }
 0x28e   : > { %2884 = vmatpush.msrb.mxu2 %v2422_v30  ;;  %v2570_v44 = vadd.f32 %v2569_v2, %v2541_v11 }
 0x28f   : > { %2813 = vmatpush.msra.mxu3 %v2493_v39  ;;  %v2543_v39 = vperm.slane %v7073_v28, 2 }
 0x290   : > { %2729 = vmatmul.f32.gmra.mxu3 %v6944_v0  ;;  %2885 = vmatpush.msrb.mxu2 %v2418_v5 }
 0x291   : > { %2814 = vmatpush.msra.mxu3 %v2489_v49 }
 0x292   : > { %2886 = vmatpush.msrb.mxu2 %v2414_v16  ;;  %v3525_v16 = vld [vmem:[%s3847_s6 + $0x28] sm:$0xff] }
 0x293   : > { %2815 = vmatpush.msra.mxu3 %v2485_v25  ;;  %2887 = vmatmul.f32.vlgmr.msrb.gmra.mxu2 %v6763_v45  ;;  %v2526_v45 = vld [vmem:[%s7108_s3 + $0x798] sm:$0xff] }
 0x295   : > { %2816 = vmatpush.msra.mxu3 %v2481_v24 }
 0x297   : > { %2817 = vmatpush.msra.mxu3 %v2477_v4 }
 0x298   : > { %2818 = vmatmul.f32.vlgmr.msra.gmra.mxu3 %v6914_v3 }
 0x299   : > { %2894 = vmatpush.msrb.mxu3 %v2538_v36 }
 0x29b   : > { %2895 = vmatpush.msrb.mxu3 %v2534_v9  ;;  %2890 = vmatmul.f32.gmra.mxu2 %v6822_v50  ;;  %v2510_v50 = vld [vmem:[%s7108_s3 + $0x718] sm:$0xff] }
 0x29d   : > { %2896 = vmatpush.msrb.mxu3 %v2530_v58 }
 0x29f   : > { %2897 = vmatpush.msrb.mxu3 %v2526_v45 }
 0x2a0   : > { %2821 = vmatmul.f32.gmra.mxu3 %v6944_v0 }
 0x2a1   : > { %2898 = vmatpush.msrb.mxu3 %v2522_v54 }
 0x2a3   : > { %2899 = vmatpush.msrb.mxu3 %v2518_v22 }
 0x2a5   : > { %2900 = vmatpush.msrb.mxu3 %v2514_v27  ;;  %v2658_v32 = vpop.f32.mrf.mxu0 }
 0x2a6   : > { %v2659_v47 = vadd.f32 %v2658_v32, %v2542_v38 }
 0x2a7   : > { %2901 = vmatpush.msrb.mxu3 %v2510_v50  ;;  %v3526_v50 = vld [vmem:[%s3847_s6 + $0x10] sm:$0xff] }
 0x2a9   : > { %2902 = vmatpush.msrb.mxu3 %v2506_v6 }
 0x2ab   : > { %2903 = vmatpush.msrb.mxu3 %v2502_v7 }
 0x2ac   : > { %v2589_v62 = vpop.f32.mrf.mxu1 }
 0x2ad   : > { %2904 = vmatpush.msrb.mxu3 %v2498_v21  ;;  %v2590_v52 = vadd.f32 %v2589_v62, %v2567_v51  ;;  %v2661_v31 = vpop.f32.mrf.mxu0  ;;  %v2544_v62 = vperm.slane %v7073_v28, 3 }
 0x2ae   : > { %v2662_v55 = vadd.f32 %v2661_v31, %v2542_v38  ;;  %v3529_v38 = vld [vmem:[%s3847_s6 + $0x38] sm:$0xff] }
 0x2af   : > { %2905 = vmatpush.msrb.mxu3 %v2494_v17 }
 0x2b1   : > { %2906 = vmatpush.msrb.mxu3 %v2490_v8 }
 0x2b3   : > { %2907 = vmatpush.msrb.mxu3 %v2486_v33 }
 0x2b5   : > { %2908 = vmatpush.msrb.mxu3 %v2482_v26  ;;  %v3527_v26 = vld [vmem:[%s3847_s6 + $0x30] sm:$0xff] }
 0x2b6   : > { %v2592_v60 = vpop.f32.mrf.mxu1 }
 0x2b7   : > { %2909 = vmatpush.msrb.mxu3 %v2478_v42  ;;  %v2593_v43 = vadd.f32 %v2592_v60, %v2570_v44  ;;  %v3528_v44 = vld [vmem:[%s3847_s6 + $0x18] sm:$0xff] }
 0x2b8   : > { %2910 = vmatmul.f32.vlgmr.msrb.gmra.mxu3 %v6914_v3 }
 0x2be   : > { %v2681_v61 = vpop.f32.mrf.mxu1 }
 0x2bf   : > { %v2682_v41 = vadd.f32 %v2681_v61, %v2659_v47 }
 0x2c0   : > { %2913 = vmatmul.f32.gmra.mxu3 %v6944_v0  ;;  %v3523_v0 = vld [vmem:[%s3847_s6 + $0x20] sm:$0xff] }
 0x2c5   : > { %v2750_v59 = vpop.f32.mrf.mxu0 }
 0x2c6   : > { %v2684_v63 = vpop.f32.mrf.mxu1  ;;  %v2751_v4 = vadd.f32 %v2750_v59, %v2543_v39 }
 0x2c7   : > { %v2685_v20 = vadd.f32 %v2684_v63, %v2662_v55 }
 0x2cd   : > { %v2753_v58 = vpop.f32.mrf.mxu0 }
 0x2ce   : > { %v2773_v49 = vpop.f32.mrf.mxu1  ;;  %v2754_v27 = vadd.f32 %v2753_v58, %v2543_v39 }
 0x2cf   : > { %v2774_v36 = vadd.f32 %v2773_v49, %v2751_v4 }
 0x2d6   : > { %v2612_v23 = vpop.f32.mrf.mxu2  ;;  %v2776_v22 = vpop.f32.mrf.mxu1 }
 0x2d7   : > { %v2613_v10 = vadd.f32 %v2612_v23, %v2590_v52  ;;  %v2777_v21 = vadd.f32 %v2776_v22, %v2754_v27 }
 0x2e0   : > { %v2615_v18 = vpop.f32.mrf.mxu2 }
 0x2e1   : > { %v2616_v53 = vadd.f32 %v2615_v18, %v2593_v43 }
 0x2e5   : > { %v2842_v29 = vpop.f32.mrf.mxu0 }
 0x2e6   : > { %v2843_v51 = vadd.f32 %v2842_v29, %v2544_v62 }
 0x2e8   : > { %v2704_v48 = vpop.f32.mrf.mxu2 }
 0x2e9   : > { %v2705_v34 = vadd.f32 %v2704_v48, %v2682_v41 }
 0x2ed   : > { %v2845_v52 = vpop.f32.mrf.mxu0 }
 0x2ef   : > { %v2865_v23 = vpop.f32.mrf.mxu1 }
 0x2f0   : > { %v2707_v14 = vpop.f32.mrf.mxu2  ;;  %v2866_v2 = vadd.f32 %v2865_v23, %v2843_v51 }
 0x2f1   : > { %v2708_v19 = vadd.f32 %v2707_v14, %v2685_v20 }
 0x2f8   : > { %v2796_v25 = vpop.f32.mrf.mxu2 }
 0x2f9   : > { %v2797_v9 = vadd.f32 %v2796_v25, %v2774_v36 }
 0x2fb   : > { %v2635_v3 = vpop.f32.mrf.mxu3 }
 0x2fc   : > { %v2636_v46 = vadd.f32 %v2635_v3, %v2613_v10  ;;  %v2868_v3 = vpop.f32.mrf.mxu1 }
 0x2fe   : > { %v2917_v1 = vadd.f32 %v3522_v12, %v2636_v46  ;;  %v2846_v46 = vadd.f32 %v2845_v52, %v2544_v62 }
 0x300   : > { %2925 = vst [vmem:[%s7081_s27] sm:$0xff] %v2917_v1  ;;  %v2799_v7 = vpop.f32.mrf.mxu2  ;;  %v2869_v32 = vadd.f32 %v2868_v3, %v2846_v46 }
 0x301   : > { %v2800_v17 = vadd.f32 %v2799_v7, %v2777_v21 }
 0x303   : > { %v2638_v57 = vpop.f32.mrf.mxu3 }
 0x304   : > { %v2639_v37 = vadd.f32 %v2638_v57, %v2616_v53 }
 0x306   : > { %v2921_v40 = vadd.f32 %v3523_v0, %v2639_v37 }
 0x308   : > { %2929 = vst [vmem:[%s7081_s27 + $0x20] sm:$0xff] %v2921_v40 }
 0x30b   : > { %v2727_v13 = vpop.f32.mrf.mxu3 }
 0x30c   : > { %v2728_v15 = vadd.f32 %v2727_v13, %v2705_v34 }
 0x30e   : > { %v2918_v35 = vadd.f32 %v3524_v56, %v2728_v15 }
 0x310   : > { %2926 = vst [vmem:[%s7081_s27 + $0x8] sm:$0xff] %v2918_v35 }
 0x313   : > { %v2730_v30 = vpop.f32.mrf.mxu3 }
 0x314   : > { %v2731_v5 = vadd.f32 %v2730_v30, %v2708_v19 }
 0x316   : > { %v2922_v24 = vadd.f32 %v3525_v16, %v2731_v5  ;;  %v2888_v11 = vpop.f32.mrf.mxu2 }
 0x317   : > { %v2889_v60 = vadd.f32 %v2888_v11, %v2866_v2 }
 0x318   : > { %2930 = vst [vmem:[%s7081_s27 + $0x28] sm:$0xff] %v2922_v24 }
 0x31b   : > { %v2819_v45 = vpop.f32.mrf.mxu3 }
 0x31c   : > { %v2820_v54 = vadd.f32 %v2819_v45, %v2797_v9 }
 0x31e   : > { %v2919_v6 = vadd.f32 %v3526_v50, %v2820_v54  ;;  %v2891_v1 = vpop.f32.mrf.mxu2 }
 0x31f   : > { %v2892_v43 = vadd.f32 %v2891_v1, %v2869_v32 }
 0x320   : > { %2927 = vst [vmem:[%s7081_s27 + $0x10] sm:$0xff] %v2919_v6 }
 0x323   : > { %v2822_v8 = vpop.f32.mrf.mxu3 }
 0x324   : > { %v2823_v33 = vadd.f32 %v2822_v8, %v2800_v17 }
 0x326   : > { %v2923_v42 = vadd.f32 %v3527_v26, %v2823_v33 }
 0x328   : > { %2931 = vst [vmem:[%s7081_s27 + $0x30] sm:$0xff] %v2923_v42 }
 0x33b   : > { %v2911_v18 = vpop.f32.mrf.mxu3 }
 0x33c   : > { %v2912_v10 = vadd.f32 %v2911_v18, %v2889_v60 }
 0x33e   : > { %v2920_v12 = vadd.f32 %v3528_v44, %v2912_v10 }
 0x340   : > { %2928 = vst [vmem:[%s7081_s27 + $0x18] sm:$0xff] %v2920_v12 }
 0x343   : > { %v2914_v61 = vpop.f32.mrf.mxu3 }
 0x344   : > { %v2915_v28 = vadd.f32 %v2914_v61, %v2892_v43 }
 0x346   : > { %v2924_v53 = vadd.f32 %v3529_v38, %v2915_v28 }
 0x348   : > { %2932 = vst [vmem:[%s7081_s27 + $0x38] sm:$0xff] %v2924_v53 }
 0x349 PF: > { %s15_s18 = sadd.s32 1, %s3536_s18  }
 0x34a   : > { %p12_p4 = scmp.ge.s32.totalorder %s15_s18, 4  }
 0x34c   :  { %14 = sbr.rel (!%p12_p4) target bundleno = 1 (0x1), region = 72 }

</bundles_post_ra>
